<compile_context>
chip_gen: v7x
topology: tpu7x:2x2x1
jax: 0.10.0
libtpu: 0.0.40
codegen_flags: <defaults>
</compile_context>

<pallas_src>
import jax
import jax.numpy as jnp
from jax.experimental import pallas as pl
from jax.experimental.pallas import tpu as pltpu

# ------------------------- configuration (synthetic) -------------------------
T = 8                       # num_past_frames
N_AGENTS = 8                # agents per scene
SCENES = 32                 # scenes batched into one kernel call
ROWS = SCENES * N_AGENTS    # 256 total rows (agents x scenes)
D = 32                      # pre_cfg.tf_model_dim (d_model)
H1, H2 = 512, 256           # cfg.qnet_mlp default [512, 256]
NZ = 8                      # cfg.nz
K = 4                       # cfg.sample_k
KNZ = K * NZ                # 32
PZW = 2 * NZ                # 16  (prior head width)

LANE = 128
TD = T * D                  # 256  (lane-dense fused input width)
WBIG_COLS = H1 + LANE       # 640  ([w1_rep | slab block])

# output-slab lane layout (one f32 (rows, 128) slab):
#   [0          : D        )  pooled
#   [D          : D+KNZ    )  z_b
#   [D+KNZ      : D+2*KNZ  )  logvar
#   [D+2*KNZ    : PACK_W   )  p_z_params (pre-repeat)
#   [PACK_W     : 128      )  zero pad
PACK_W = D + 2 * KNZ + PZW  # 112
assert PACK_W <= LANE


# --------------------------------- kernel ------------------------------------
def dlow_sampler_kernel(
    mpf_ref,     # (tm, T*D)  f32   mask-premultiplied past_feature, row tile
    invc_ref,    # (tm, 1)    f32   1 / max(valid_frame_count, 1)
    wbig_ref,    # (T*D, 640) bf16  [w1 tiled T | I_D tiled T | 0 | wp tiled T | 0]
    bbig_ref,    # (1, 640)   f32   [b1 | 0 | 0 | bp | 0]
    w2_ref,      # (H1, H2)   bf16
    b2_ref,      # (1, H2)    f32
    wab_ref,     # (H2, 128)  bf16  [0 | wb | wa | 0]  (slab-aligned columns)
    bab_ref,     # (1, 128)   f32   [0 | bb | ba | 0]
    out_ref,     # (tm, 128)  f32   packed slab: pooled|z_b|logvar|pz|pad
):
    # ---- fused [sampler layer-1 | pooled | prior head]: native bf16 MXU ----
    mpf = mpf_ref[...].astype(jnp.bfloat16)                       # (tm, 256)
    fused = jnp.dot(mpf, wbig_ref[...],
                    preferred_element_type=jnp.float32)           # (tm, 640) f32
    # masked-mean fold: 1/cnt scaling must happen BEFORE the bias add
    fused = fused * invc_ref[...] + bbig_ref[...]

    h1 = jnp.maximum(fused[:, :H1], 0.0).astype(jnp.bfloat16)     # (tm, 512)
    slab1 = fused[:, H1:]                   # (tm, 128): pooled | 0 | 0 | pz | 0

    # ---- sampler_net layer-2 ----
    h2 = jnp.dot(h1, w2_ref[...], preferred_element_type=jnp.float32) + b2_ref[...]
    h2 = jnp.maximum(h2, 0.0).astype(jnp.bfloat16)                 # (tm, 256)

    # ---- fused sampler_A | sampler_b heads, slab-aligned columns ----
    ab = jnp.dot(h2, wab_ref[...], preferred_element_type=jnp.float32) + bab_ref[...]
    # ab lanes: [0:D)=0 | [D:D+KNZ)=z_b | [D+KNZ:D+2KNZ)=z_a | rest 0
    logv = jnp.log(ab * ab + 1e-8)                                 # f32, EUP
    lane = jax.lax.broadcasted_iota(jnp.int32, ab.shape, 1)
    slab2 = jnp.where((lane >= D + KNZ) & (lane < D + 2 * KNZ), logv,
                      jnp.where((lane >= D) & (lane < D + KNZ), ab, 0.0))

    # slab1 is zero exactly where slab2 is non-zero -> one unmasked 128-lane store
    out_ref[...] = slab1 + slab2


# -------------------------------- wrapper -------------------------------------
def prepare_params(params):
    """Fuse / pad / bf16-cast DLow's weights for the kernel (done once)."""
    (w1, b1, w2, b2, wa, ba, wb, bb, wp, bp) = params
    zc = lambda n: jnp.zeros((TD, n), jnp.float32)
    zr = lambda n: jnp.zeros((1, n), jnp.float32)

    # Vertical tiling over T frames: sum_t mpf[t] @ w == (masked_sum) @ w,
    # and the identity stack recovers masked_sum (-> pooled after * 1/cnt).
    w1_rep = jnp.tile(w1, (T, 1))                                  # (TD, 512)
    wp_rep = jnp.tile(wp, (T, 1))                                  # (TD, 16)
    eye_rep = jnp.tile(jnp.eye(D, dtype=jnp.float32), (T, 1))      # (TD, 32)
    slab_w = jnp.concatenate([eye_rep, zc(2 * KNZ), wp_rep,
                              zc(LANE - PACK_W)], axis=1)          # (TD, 128)
    wbig = jnp.concatenate([w1_rep, slab_w], axis=1)               # (TD, 640)
    bbig = jnp.concatenate([b1, zr(D + 2 * KNZ), bp, zr(LANE - PACK_W)], axis=1)

    # A|B head padded to 128 lanes, columns aligned with the output slab.
    wab = jnp.concatenate([jnp.zeros((H2, D), jnp.float32), wb, wa,
                           jnp.zeros((H2, LANE - D - 2 * KNZ), jnp.float32)], axis=1)
    bab = jnp.concatenate([zr(D), bb, ba, zr(LANE - D - 2 * KNZ)], axis=1)

    return (wbig.astype(jnp.bfloat16), bbig.astype(jnp.float32),
            w2.astype(jnp.bfloat16), b2.astype(jnp.float32),
            wab.astype(jnp.bfloat16), bab.astype(jnp.float32))


@jax.jit
def dlow_forward(past_feature, pre_mask, prepped):
    """past_feature: (T, rows, D) time-major, rows = scenes*agents;
       pre_mask: (T, rows) with 1.0 = valid frame."""
    wbig, bbig, w2, b2, wab, bab = prepped
    t, rows, d = past_feature.shape
    assert t == T and d == D

    # Layout plumbing (one fused XLA copy): pre-multiply the mask and make the
    # past-frame axis lane-dense -> (rows, T*D) contiguous kernel input.
    mpf = (past_feature * pre_mask[:, :, None]).transpose(1, 0, 2).reshape(rows, TD)
    cnt = jnp.sum(pre_mask, axis=0)[:, None]
    invc = 1.0 / jnp.maximum(cnt, 1.0)                             # (rows, 1)

    # One big row tile if it fits (grid=(1,) on single-TC v5e/v6e); row-tiled
    # "parallel" grid only for larger batches / v7x megacore.
    rows8 = ((rows + 7) // 8) * 8
    tm = rows8 if rows8 <= 512 else 512
    rows_p = ((rows + tm - 1) // tm) * tm
    if rows_p != rows:
        # TODO(synk): for large ragged row counts use a masked tail tile
        # (pl.BoundedSlice) instead of materializing a padded copy.
        mpf = jnp.pad(mpf, ((0, rows_p - rows), (0, 0)))
        invc = jnp.pad(invc, ((0, rows_p - rows), (0, 0)))

    cost = pl.CostEstimate(
        flops=2 * rows_p * (TD * WBIG_COLS + H1 * H2 + H2 * LANE),
        transcendentals=rows_p * LANE,
        bytes_accessed=(4 * rows_p * (TD + 1 + LANE)
                        + 2 * (TD * WBIG_COLS + H1 * H2 + H2 * LANE)
                        + 4 * (WBIG_COLS + H2 + LANE)),
    )

    slab = pl.pallas_call(
        dlow_sampler_kernel,
        grid=(rows_p // tm,),
        in_specs=[
            pl.BlockSpec((tm, TD), lambda i: (i, 0)),          # masked past_feature
            pl.BlockSpec((tm, 1), lambda i: (i, 0)),           # 1/cnt
            pl.BlockSpec((TD, WBIG_COLS), lambda i: (0, 0)),   # weights: VMEM-resident
            pl.BlockSpec((1, WBIG_COLS), lambda i: (0, 0)),
            pl.BlockSpec((H1, H2), lambda i: (0, 0)),
            pl.BlockSpec((1, H2), lambda i: (0, 0)),
            pl.BlockSpec((H2, LANE), lambda i: (0, 0)),
            pl.BlockSpec((1, LANE), lambda i: (0, 0)),
        ],
        out_specs=pl.BlockSpec((tm, LANE), lambda i: (i, 0)),
        out_shape=jax.ShapeDtypeStruct((rows_p, LANE), jnp.float32),
        compiler_params=pltpu.CompilerParams(dimension_semantics=("parallel",)),
        cost_estimate=cost,
    )(mpf, invc, wbig, bbig, w2, b2, wab, bab)

    slab = slab[:rows]
    pooled = slab[:, :D]
    zb_flat = slab[:, D:D + KNZ]
    logvar = slab[:, D + KNZ:D + 2 * KNZ].reshape(rows, K, NZ)
    pz = slab[:, D + 2 * KNZ:PACK_W]

    z_b = zb_flat.reshape(rows, K, NZ)                  # z_b.reshape(num_agent, -1, nz)
    # torch: p_z_params.repeat_interleave(sample_k, dim=1)
    p_z_params = jnp.repeat(pz, K, axis=1)
    # z_b.reshape(N, -1, K, NZ).transpose(1, 2) as fed to future_decoder.sample
    z_for_decoder = jnp.transpose(zb_flat.reshape(rows, 1, K, NZ), (0, 2, 1, 3))
    return pooled, z_b, logvar, p_z_params, z_for_decoder

# TODO(synk): AgentFormer sub-modules (context encoders, past_trj_enc,
# past_encoder, prior_net trunk, future_decoder.sample) and the Normal
# distribution wrapper are separate networks not re-implemented here; the
# kernel consumes a synthetic `past_feature` standing in for the past-encoder
# output and produces the distribution parameters (p_z_params, z_b, logvar).


# ----------------------------- pure-JAX reference -----------------------------
def dlow_reference(past_feature, pre_mask, params):
    (w1, b1, w2, b2, wa, ba, wb, bb, wp, bp) = params
    bf = lambda x: x.astype(jnp.bfloat16).astype(jnp.float32)   # mirror kernel bf16
    hp = jax.lax.Precision.HIGHEST
    mpf = bf(past_feature * pre_mask[:, :, None])               # kernel feeds bf16
    msum = jnp.sum(mpf, axis=0)                                  # (rows, D)
    inv = 1.0 / jnp.maximum(jnp.sum(pre_mask, axis=0)[:, None], 1.0)
    pooled = msum * inv
    h1 = jnp.maximum(jnp.dot(msum, bf(w1), precision=hp) * inv + b1, 0.0)
    pz = jnp.dot(msum, bf(wp), precision=hp) * inv + bp
    h2 = jnp.maximum(jnp.dot(bf(h1), bf(w2), precision=hp) + b2, 0.0)
    h2b = bf(h2)
    z_a = jnp.dot(h2b, bf(wa), precision=hp) + ba
    z_b = jnp.dot(h2b, bf(wb), precision=hp) + bb
    logvar = jnp.log(z_a * z_a + 1e-8)
    rows = pooled.shape[0]
    return (pooled, z_b.reshape(rows, K, NZ), logvar.reshape(rows, K, NZ),
            jnp.repeat(pz, K, axis=1))


# ----------------------------------- main -------------------------------------
if __name__ == "__main__":
    key = jax.random.PRNGKey(0)
    keys = jax.random.split(key, 12)

    past_feature = jax.random.normal(keys[0], (T, ROWS, D), dtype=jnp.float32)
    # deterministic mask: some trailing frames invalid for some rows
    frame_idx = jnp.arange(T)[:, None]                               # (T, 1)
    valid_len = (jnp.arange(ROWS) % T) + 1                           # (ROWS,)
    pre_mask = (frame_idx < valid_len[None, :]).astype(jnp.float32)  # (T, ROWS)

    def init(k, shape, scale=0.05):
        return scale * jax.random.normal(k, shape, dtype=jnp.float32)

    params = (
        init(keys[1], (D, H1)),       init(keys[2], (1, H1)),
        init(keys[3], (H1, H2)),      init(keys[4], (1, H2)),
        init(keys[5], (H2, KNZ)),     init(keys[6], (1, KNZ)),     # sampler_A
        init(keys[7], (H2, KNZ)),     init(keys[8], (1, KNZ)),     # sampler_b
        init(keys[9], (D, PZW)),      init(keys[10], (1, PZW)),    # prior head
    )
    prepped = prepare_params(params)

    outs = jax.block_until_ready(dlow_forward(past_feature, pre_mask, prepped))
    pooled, z_b, logvar, p_z_params, z_for_decoder = outs

    ref_pooled, ref_zb, ref_logvar, ref_pz = dlow_reference(
        past_feature, pre_mask, params)

    assert pooled.shape == ref_pooled.shape
    assert jnp.allclose(pooled, ref_pooled, rtol=1e-4, atol=1e-4), "pooled mismatch"
    assert z_b.shape == ref_zb.shape
    assert jnp.allclose(z_b, ref_zb, rtol=2e-3, atol=2e-3), "z_b mismatch"
    assert p_z_params.shape == ref_pz.shape
    assert jnp.allclose(p_z_params, ref_pz, rtol=2e-3, atol=2e-3), "p_z mismatch"
    assert logvar.shape == ref_logvar.shape
    # log(z_a^2 + 1e-8) is very sensitive near z_a ~ 0; allow a looser tolerance
    assert jnp.allclose(logvar, ref_logvar, rtol=1e-2, atol=5e-2), "logvar mismatch"
    assert z_for_decoder.shape == (ROWS, K, 1, NZ)

    print("KERNEL_OK")
</pallas_src>

<mosaic_0001>
module attributes {stable_mosaic.version = 11 : i64} {
  func.func @dlow_sampler_kernel(%arg0: i32, %arg1: memref<256x256xf32, #tpu.memory_space<vmem>>, %arg2: memref<256x1xf32, #tpu.memory_space<vmem>>, %arg3: memref<256x640xbf16, #tpu.memory_space<vmem>>, %arg4: memref<1x640xf32, #tpu.memory_space<vmem>>, %arg5: memref<512x256xbf16, #tpu.memory_space<vmem>>, %arg6: memref<1x256xf32, #tpu.memory_space<vmem>>, %arg7: memref<256x128xbf16, #tpu.memory_space<vmem>>, %arg8: memref<1x128xf32, #tpu.memory_space<vmem>>, %arg9: memref<256x128xf32, #tpu.memory_space<vmem>>) attributes {dimension_semantics = [#tpu.dimension_semantics<parallel>], iteration_bounds = array<i64: 1>, scalar_prefetch = 0 : i64, scratch_operands = 0 : i64, tpu.core_type = #tpu.core_type<tc>, window_params = [{transform_indices = @transform_0, window_bounds = array<i64: 256, 256>}, {transform_indices = @transform_1, window_bounds = array<i64: 256, 1>}, {pipeline_mode = #tpu.pipeline_mode<synchronous>, transform_indices = @transform_2, window_bounds = array<i64: 256, 640>}, {pipeline_mode = #tpu.pipeline_mode<synchronous>, transform_indices = @transform_3, window_bounds = array<i64: 1, 640>}, {pipeline_mode = #tpu.pipeline_mode<synchronous>, transform_indices = @transform_4, window_bounds = array<i64: 512, 256>}, {pipeline_mode = #tpu.pipeline_mode<synchronous>, transform_indices = @transform_5, window_bounds = array<i64: 1, 256>}, {pipeline_mode = #tpu.pipeline_mode<synchronous>, transform_indices = @transform_6, window_bounds = array<i64: 256, 128>}, {pipeline_mode = #tpu.pipeline_mode<synchronous>, transform_indices = @transform_7, window_bounds = array<i64: 1, 128>}, {transform_indices = @transform_8, window_bounds = array<i64: 256, 128>}]} {
    %c0 = arith.constant 0 : index
    %c0_0 = arith.constant 0 : index
    %0 = vector.load %arg1[%c0, %c0_0] : memref<256x256xf32, #tpu.memory_space<vmem>>, vector<256x256xf32>
    %1 = arith.truncf %0 : vector<256x256xf32> to vector<256x256xbf16>
    %c0_1 = arith.constant 0 : index
    %c0_2 = arith.constant 0 : index
    %2 = vector.load %arg3[%c0_1, %c0_2] : memref<256x640xbf16, #tpu.memory_space<vmem>>, vector<256x640xbf16>
    %cst = arith.constant dense<0.000000e+00> : vector<256x640xf32>
    %3 = tpu.matmul %1, %2, %cst {dimension_numbers = #tpu.dot_dimension_numbers<[1], [0], [0], [1], [0, 0, 1, 1], [], []>} : vector<256x256xbf16>, vector<256x640xbf16>, vector<256x640xf32> -> vector<256x640xf32>
    %c0_3 = arith.constant 0 : index
    %c0_4 = arith.constant 0 : index
    %4 = vector.load %arg2[%c0_3, %c0_4] : memref<256x1xf32, #tpu.memory_space<vmem>>, vector<256x1xf32>
    %5 = vector.broadcast %4 : vector<256x1xf32> to vector<256x640xf32>
    %6 = arith.mulf %3, %5 : vector<256x640xf32>
    %c0_5 = arith.constant 0 : index
    %c0_6 = arith.constant 0 : index
    %7 = vector.load %arg4[%c0_5, %c0_6] : memref<1x640xf32, #tpu.memory_space<vmem>>, vector<1x640xf32>
    %8 = vector.broadcast %7 : vector<1x640xf32> to vector<256x640xf32>
    %9 = arith.addf %6, %8 : vector<256x640xf32>
    %10 = vector.extract_strided_slice %9 {offsets = [0, 0], sizes = [256, 512], strides = [1, 1]} : vector<256x640xf32> to vector<256x512xf32>
    %cst_7 = arith.constant 0.000000e+00 : f32
    %11 = vector.broadcast %cst_7 : f32 to vector<256x512xf32>
    %12 = arith.maximumf %10, %11 : vector<256x512xf32>
    %13 = arith.truncf %12 : vector<256x512xf32> to vector<256x512xbf16>
    %14 = vector.extract_strided_slice %9 {offsets = [0, 512], sizes = [256, 128], strides = [1, 1]} : vector<256x640xf32> to vector<256x128xf32>
    %c0_8 = arith.constant 0 : index
    %c0_9 = arith.constant 0 : index
    %15 = vector.load %arg5[%c0_8, %c0_9] : memref<512x256xbf16, #tpu.memory_space<vmem>>, vector<512x256xbf16>
    %cst_10 = arith.constant dense<0.000000e+00> : vector<256x256xf32>
    %16 = tpu.matmul %13, %15, %cst_10 {dimension_numbers = #tpu.dot_dimension_numbers<[1], [0], [0], [1], [0, 0, 1, 1], [], []>} : vector<256x512xbf16>, vector<512x256xbf16>, vector<256x256xf32> -> vector<256x256xf32>
    %c0_11 = arith.constant 0 : index
    %c0_12 = arith.constant 0 : index
    %17 = vector.load %arg6[%c0_11, %c0_12] : memref<1x256xf32, #tpu.memory_space<vmem>>, vector<1x256xf32>
    %18 = vector.broadcast %17 : vector<1x256xf32> to vector<256x256xf32>
    %19 = arith.addf %16, %18 : vector<256x256xf32>
    %cst_13 = arith.constant 0.000000e+00 : f32
    %20 = vector.broadcast %cst_13 : f32 to vector<256x256xf32>
    %21 = arith.maximumf %19, %20 : vector<256x256xf32>
    %22 = arith.truncf %21 : vector<256x256xf32> to vector<256x256xbf16>
    %c0_14 = arith.constant 0 : index
    %c0_15 = arith.constant 0 : index
    %23 = vector.load %arg7[%c0_14, %c0_15] : memref<256x128xbf16, #tpu.memory_space<vmem>>, vector<256x128xbf16>
    %cst_16 = arith.constant dense<0.000000e+00> : vector<256x128xf32>
    %24 = tpu.matmul %22, %23, %cst_16 {dimension_numbers = #tpu.dot_dimension_numbers<[1], [0], [0], [1], [0, 0, 1, 1], [], []>} : vector<256x256xbf16>, vector<256x128xbf16>, vector<256x128xf32> -> vector<256x128xf32>
    %c0_17 = arith.constant 0 : index
    %c0_18 = arith.constant 0 : index
    %25 = vector.load %arg8[%c0_17, %c0_18] : memref<1x128xf32, #tpu.memory_space<vmem>>, vector<1x128xf32>
    %26 = vector.broadcast %25 : vector<1x128xf32> to vector<256x128xf32>
    %27 = arith.addf %24, %26 : vector<256x128xf32>
    %28 = arith.mulf %27, %27 : vector<256x128xf32>
    %cst_19 = arith.constant 9.99999993E-9 : f32
    %29 = vector.broadcast %cst_19 : f32 to vector<256x128xf32>
    %30 = arith.addf %28, %29 : vector<256x128xf32>
    %31 = math.log %30 : vector<256x128xf32>
    %32 = tpu.iota {dimensions = array<i32: 1>} : vector<256x128xi32>
    %c64_i32 = arith.constant 64 : i32
    %33 = vector.broadcast %c64_i32 : i32 to vector<256x128xi32>
    %34 = arith.cmpi sge, %32, %33 : vector<256x128xi32>
    %c96_i32 = arith.constant 96 : i32
    %35 = vector.broadcast %c96_i32 : i32 to vector<256x128xi32>
    %36 = arith.cmpi slt, %32, %35 : vector<256x128xi32>
    %37 = arith.andi %34, %36 : vector<256x128xi1>
    %c32_i32 = arith.constant 32 : i32
    %38 = vector.broadcast %c32_i32 : i32 to vector<256x128xi32>
    %39 = arith.cmpi sge, %32, %38 : vector<256x128xi32>
    %c64_i32_20 = arith.constant 64 : i32
    %40 = vector.broadcast %c64_i32_20 : i32 to vector<256x128xi32>
    %41 = arith.cmpi slt, %32, %40 : vector<256x128xi32>
    %42 = arith.andi %39, %41 : vector<256x128xi1>
    %cst_21 = arith.constant 0.000000e+00 : f32
    %43 = vector.broadcast %cst_21 : f32 to vector<256x128xf32>
    %44 = arith.select %42, %27, %43 : vector<256x128xi1>, vector<256x128xf32>
    %45 = arith.select %37, %31, %44 : vector<256x128xi1>, vector<256x128xf32>
    %46 = arith.addf %14, %45 : vector<256x128xf32>
    %c0_22 = arith.constant 0 : index
    %c0_23 = arith.constant 0 : index
    %47 = vector.load %arg9[%c0_22, %c0_23] : memref<256x128xf32, #tpu.memory_space<vmem>>, vector<256x128xf32>
    tpu.vector_store %arg9[%c0_22, %c0_23], %46 {strides = array<i32>} : memref<256x128xf32, #tpu.memory_space<vmem>>, vector<256x128xf32>,
    return
  }
  func.func @transform_0(%arg0: i32) -> (i32, i32) {
    %c0_i32 = arith.constant 0 : i32
    %c0_i32_0 = arith.constant 0 : i32
    return %arg0, %c0_i32 : i32, i32
  }
  func.func @transform_1(%arg0: i32) -> (i32, i32) {
    %c0_i32 = arith.constant 0 : i32
    %c0_i32_0 = arith.constant 0 : i32
    return %arg0, %c0_i32 : i32, i32
  }
  func.func @transform_2(%arg0: i32) -> (i32, i32) {
    %c0_i32 = arith.constant 0 : i32
    %c0_i32_0 = arith.constant 0 : i32
    %c0_i32_1 = arith.constant 0 : i32
    return %c0_i32, %c0_i32_0 : i32, i32
  }
  func.func @transform_3(%arg0: i32) -> (i32, i32) {
    %c0_i32 = arith.constant 0 : i32
    %c0_i32_0 = arith.constant 0 : i32
    %c0_i32_1 = arith.constant 0 : i32
    return %c0_i32, %c0_i32_0 : i32, i32
  }
  func.func @transform_4(%arg0: i32) -> (i32, i32) {
    %c0_i32 = arith.constant 0 : i32
    %c0_i32_0 = arith.constant 0 : i32
    %c0_i32_1 = arith.constant 0 : i32
    return %c0_i32, %c0_i32_0 : i32, i32
  }
  func.func @transform_5(%arg0: i32) -> (i32, i32) {
    %c0_i32 = arith.constant 0 : i32
    %c0_i32_0 = arith.constant 0 : i32
    %c0_i32_1 = arith.constant 0 : i32
    return %c0_i32, %c0_i32_0 : i32, i32
  }
  func.func @transform_6(%arg0: i32) -> (i32, i32) {
    %c0_i32 = arith.constant 0 : i32
    %c0_i32_0 = arith.constant 0 : i32
    %c0_i32_1 = arith.constant 0 : i32
    return %c0_i32, %c0_i32_0 : i32, i32
  }
  func.func @transform_7(%arg0: i32) -> (i32, i32) {
    %c0_i32 = arith.constant 0 : i32
    %c0_i32_0 = arith.constant 0 : i32
    %c0_i32_1 = arith.constant 0 : i32
    return %c0_i32, %c0_i32_0 : i32, i32
  }
  func.func @transform_8(%arg0: i32) -> (i32, i32) {
    %c0_i32 = arith.constant 0 : i32
    %c0_i32_0 = arith.constant 0 : i32
    return %arg0, %c0_i32 : i32, i32
  }
}

</mosaic_0001>

<bundles_post_ra>
// kernel: dlow_forward.1
= control target key start
LH: loop header
LB: loop body
LE: loop exit
PB: predicated region body
PF: predicated region fallthrough
CT: control target
= control target key end

     0   :  { %v4163_v1 = vmov 0   ;;  %s6218_s2 = inlined_call_operand.vmem [shape: bf16[256,640], index: 2, kind: input, shape index: {}]   ;;  %s6219_s0 = inlined_call_operand.vmem [shape: f32[256,256], index: 0, kind: input, shape index: {}]   ;;  %s6220_s1 = inlined_call_operand.vmem [shape: f32[256,1], index: 1, kind: input, shape index: {}]   ;;  %s6221_s4 = inlined_call_operand.vmem [shape: bf16[512,256], index: 4, kind: input, shape index: {}]   ;;  %s6222_s3 = inlined_call_operand.vmem [shape: f32[1,640], index: 3, kind: input, shape index: {}]   ;;  %s6223_s6 = inlined_call_operand.vmem [shape: bf16[256,128], index: 6, kind: input, shape index: {}]   ;;  %s6224_s5 = inlined_call_operand.vmem [shape: f32[1,256], index: 5, kind: input, shape index: {}]   ;;  %s6225_s7 = inlined_call_operand.vmem [shape: f32[1,128], index: 7, kind: input, shape index: {}]   ;;  %s6226_s8 = inlined_call_operand.vmem [shape: f32[256,128], index: 8, kind: output, shape index: {}]  }
   0x1   :  { %v3874_v0 = vld [vmem:[%s6218_s2 + $0x4] ss:$20 sps:$4 sm:$0xff]   ;;  %3872 = vset.pattern.permute.xlu0 %v4163_v1  ;;  %3873 = vset.pattern.permute.xlu1 %v4163_v1  ;;  %v3876_v2 = vld [vmem:[%s6218_s2 + $0xc] ss:$20 sps:$4 sm:$0xff]   ;;  %v3879_v4 = vld [vmem:[%s6218_s2 + $0x8] ss:$20 sps:$4 sm:$0xff]  }
   0x2   :  { %638 = vmatprep.subr.bf16.mxu0 %v3874_v0  ;;  %v3878_v3 = vld [vmem:[%s6218_s2] ss:$20 sps:$4 sm:$0xff]   ;;  %831 = vmatprep.subr.bf16.mxu1 %v3876_v2  ;;  %v3884_v7 = vld [vmem:[%s6218_s2 + $0x28] ss:$20 sps:$4 sm:$0xff]   ;;  %v3885_v8 = vld [vmem:[%s6218_s2 + $0x30] ss:$20 sps:$4 sm:$0xff]  }
   0x3   :  { %v3880_v5 = vld [vmem:[%s6218_s2 + $0x2c] ss:$20 sps:$4 sm:$0xff]   ;;  %639 = vmatpush1.bf16.msra.mxu0 %v3878_v3  ;;  %832 = vmatpush1.bf16.msra.mxu1 %v3879_v4  ;;  %v3882_v6 = vld [vmem:[%s6218_s2 + $0x34] ss:$20 sps:$4 sm:$0xff]   ;;  %v3888_v10 = vld [vmem:[%s6218_s2 + $0x5c] ss:$20 sps:$4 sm:$0xff]  }
   0x4   :  { %640 = vmatprep.subr.bf16.mxu0 %v3880_v5  ;;  %833 = vmatprep.subr.bf16.mxu1 %v3882_v6  ;;  %v3886_v9 = vld [vmem:[%s6218_s2 + $0x54] ss:$20 sps:$4 sm:$0xff]   ;;  %v3890_v11 = vld [vmem:[%s6218_s2 + $0x50] ss:$20 sps:$4 sm:$0xff]   ;;  %v3891_v12 = vld [vmem:[%s6218_s2 + $0x58] ss:$20 sps:$4 sm:$0xff]  }
   0x5   :  { %v3892_v13 = vld [vmem:[%s6218_s2 + $0x7c] ss:$20 sps:$4 sm:$0xff]   ;;  %v3894_v14 = vld [vmem:[%s6218_s2 + $0x84] ss:$20 sps:$4 sm:$0xff]   ;;  %v3897_v16 = vld [vmem:[%s6218_s2 + $0x80] ss:$20 sps:$4 sm:$0xff]  }
   0x6   :  { %v3896_v15 = vld [vmem:[%s6218_s2 + $0x78] ss:$20 sps:$4 sm:$0xff]   ;;  %v3902_v19 = vld [vmem:[%s6218_s2 + $0xa0] ss:$20 sps:$4 sm:$0xff]   ;;  %v3903_v20 = vld [vmem:[%s6218_s2 + $0xa8] ss:$20 sps:$4 sm:$0xff]  }
   0x7   :  { %641 = vmatpush1.bf16.msra.mxu0 %v3884_v7  ;;  %834 = vmatpush1.bf16.msra.mxu1 %v3885_v8  ;;  %v3898_v17 = vld [vmem:[%s6218_s2 + $0xa4] ss:$20 sps:$4 sm:$0xff]   ;;  %v3900_v18 = vld [vmem:[%s6218_s2 + $0xac] ss:$20 sps:$4 sm:$0xff]   ;;  %v3906_v22 = vld [vmem:[%s6218_s2 + $0xd4] ss:$20 sps:$4 sm:$0xff]  }
   0x8   :  { %642 = vmatprep.subr.bf16.mxu0 %v3886_v9  ;;  %835 = vmatprep.subr.bf16.mxu1 %v3888_v10  ;;  %v3904_v21 = vld [vmem:[%s6218_s2 + $0xcc] ss:$20 sps:$4 sm:$0xff]   ;;  %v3908_v23 = vld [vmem:[%s6218_s2 + $0xc8] ss:$20 sps:$4 sm:$0xff]   ;;  %v3909_v24 = vld [vmem:[%s6218_s2 + $0xd0] ss:$20 sps:$4 sm:$0xff]  }
   0x9   :  { %v3910_v25 = vld [vmem:[%s6218_s2 + $0xf4] ss:$20 sps:$4 sm:$0xff]   ;;  %v3912_v26 = vld [vmem:[%s6218_s2 + $0xfc] ss:$20 sps:$4 sm:$0xff]   ;;  %v3915_v28 = vld [vmem:[%s6218_s2 + $0xf8] ss:$20 sps:$4 sm:$0xff]  }
   0xa   :  { %v3914_v27 = vld [vmem:[%s6218_s2 + $0xf0] ss:$20 sps:$4 sm:$0xff]   ;;  %v3920_v31 = vld [vmem:[%s6218_s2 + $0x118] ss:$20 sps:$4 sm:$0xff]   ;;  %v3921_v32 = vld [vmem:[%s6218_s2 + $0x120] ss:$20 sps:$4 sm:$0xff]  }
   0xb   :  { %643 = vmatpush1.bf16.msra.mxu0 %v3890_v11  ;;  %836 = vmatpush1.bf16.msra.mxu1 %v3891_v12  ;;  %v3916_v29 = vld [vmem:[%s6218_s2 + $0x11c] ss:$20 sps:$4 sm:$0xff]   ;;  %v3918_v30 = vld [vmem:[%s6218_s2 + $0x124] ss:$20 sps:$4 sm:$0xff]   ;;  %v3924_v34 = vld [vmem:[%s6218_s2 + $0x14c] ss:$20 sps:$4 sm:$0xff]  }
   0xc   :  { %644 = vmatprep.subr.bf16.mxu0 %v3892_v13  ;;  %837 = vmatprep.subr.bf16.mxu1 %v3894_v14  ;;  %v3922_v33 = vld [vmem:[%s6218_s2 + $0x144] ss:$20 sps:$4 sm:$0xff]   ;;  %v3926_v35 = vld [vmem:[%s6218_s2 + $0x140] ss:$20 sps:$4 sm:$0xff]   ;;  %v3927_v36 = vld [vmem:[%s6218_s2 + $0x148] ss:$20 sps:$4 sm:$0xff]  }
   0xd   :  { %v3928_v37 = vld [vmem:[%s6218_s2 + $0x16c] ss:$20 sps:$4 sm:$0xff]   ;;  %v3930_v38 = vld [vmem:[%s6218_s2 + $0x174] ss:$20 sps:$4 sm:$0xff]   ;;  %v3933_v40 = vld [vmem:[%s6218_s2 + $0x170] ss:$20 sps:$4 sm:$0xff]  }
   0xe   :  { %v3932_v39 = vld [vmem:[%s6218_s2 + $0x168] ss:$20 sps:$4 sm:$0xff]   ;;  %v3938_v43 = vld [vmem:[%s6218_s2 + $0x190] ss:$20 sps:$4 sm:$0xff]   ;;  %v3939_v44 = vld [vmem:[%s6218_s2 + $0x198] ss:$20 sps:$4 sm:$0xff]  }
   0xf   :  { %645 = vmatpush1.bf16.msra.mxu0 %v3896_v15  ;;  %838 = vmatpush1.bf16.msra.mxu1 %v3897_v16  ;;  %v3934_v41 = vld [vmem:[%s6218_s2 + $0x194] ss:$20 sps:$4 sm:$0xff]   ;;  %v3936_v42 = vld [vmem:[%s6218_s2 + $0x19c] ss:$20 sps:$4 sm:$0xff]   ;;  %v3942_v46 = vld [vmem:[%s6218_s2 + $0x1c4] ss:$20 sps:$4 sm:$0xff]  }
  0x10   :  { %646 = vmatprep.subr.bf16.mxu0 %v3898_v17  ;;  %839 = vmatprep.subr.bf16.mxu1 %v3900_v18  ;;  %v3940_v45 = vld [vmem:[%s6218_s2 + $0x1bc] ss:$20 sps:$4 sm:$0xff]   ;;  %v31_v47 = vld [vmem:[%s6219_s0 + $0x8] sm:$0xff]  ;;  %v3945_v50 = vld [vmem:[%s6218_s2 + $0x1c0] ss:$20 sps:$4 sm:$0xff]  }
  0x11   :  { %v33_v48 = vld [vmem:[%s6219_s0 + $0x18] sm:$0xff]  ;;  %v3948_v53 = vld [vmem:[%s6218_s2 + $0x1ec] ss:$20 sps:$4 sm:$0xff]   ;;  %v1187_v58 = vld [vmem:[%s6220_s1 + $0x10] sm:$0xff] }
  0x12   :  { %v3944_v49 = vld [vmem:[%s6218_s2 + $0x1b8] ss:$20 sps:$4 sm:$0xff]   ;;  %v4359_v51 = vpack.c.bf16 %v33_v48, %v31_v47  ;;  %v1185_v54 = vld [vmem:[%s6220_s1] sm:$0xff]  ;;  %v3951_v56 = vld [vmem:[%s6218_s2 + $0x1e8] ss:$20 sps:$4 sm:$0xff]   ;;  %1229 = vperm.xlu1 %3873, %v1187_v58  }
  0x13   :  { %647 = vmatpush1.bf16.msra.mxu0 %v3902_v19  ;;  %840 = vmatpush1.bf16.msra.mxu1 %v3903_v20  ;;  %v3946_v52 = vld [vmem:[%s6218_s2 + $0x1e4] ss:$20 sps:$4 sm:$0xff]   ;;  %v3950_v55 = vld [vmem:[%s6218_s2 + $0x1e0] ss:$20 sps:$4 sm:$0xff]   ;;  %v1186_v57 = vld [vmem:[%s6220_s1 + $0x8] sm:$0xff] }
  0x14   :  { %648 = vmatprep.subr.bf16.mxu0 %v3904_v21  ;;  %841 = vmatprep.subr.bf16.mxu1 %v3906_v22  ;;  %v3952_v59 = vld [vmem:[%s6218_s2 + $0x20c] ss:$20 sps:$4 sm:$0xff]   ;;  %v3954_v60 = vld [vmem:[%s6218_s2 + $0x214] ss:$20 sps:$4 sm:$0xff]   ;;  %v1188_v61 = vld [vmem:[%s6220_s1 + $0x18] sm:$0xff] }
  0x15   :  { %670 = vmatprep.mubr.bf16.mxu0 %v4359_v51  ;;  %863 = vmatprep.mubr.bf16.mxu1 %v4359_v51  ;;  %v3956_v62 = vld [vmem:[%s6218_s2 + $0x208] ss:$20 sps:$4 sm:$0xff]   ;;  %v3957_v63 = vld [vmem:[%s6218_s2 + $0x210] ss:$20 sps:$4 sm:$0xff]   ;;  %v3963_v5 = vld [vmem:[%s6218_s2 + $0x238] ss:$20 sps:$4 sm:$0xff]  }
  0x16   :  { %1219 = vperm.xlu0 %3872, %v1185_v54   ;;  %v1189_v0 = vld [vmem:[%s6220_s1 + $0x20] sm:$0xff]  ;;  %v3958_v1 = vld [vmem:[%s6218_s2 + $0x234] ss:$20 sps:$4 sm:$0xff]   ;;  %v3960_v2 = vld [vmem:[%s6218_s2 + $0x23c] ss:$20 sps:$4 sm:$0xff]   ;;  %1234 = vperm.xlu1 %3873, %v1188_v61  }
  0x17   :  { %649 = vmatpush1.bf16.msra.mxu0 %v3908_v23  ;;  %842 = vmatpush1.bf16.msra.mxu1 %v3909_v24  ;;  %v1190_v3 = vld [vmem:[%s6220_s1 + $0x28] sm:$0xff]  ;;  %v3962_v4 = vld [vmem:[%s6218_s2 + $0x230] ss:$20 sps:$4 sm:$0xff]   ;;  %v3969_v10 = vld [vmem:[%s6218_s2 + $0x260] ss:$20 sps:$4 sm:$0xff]  }
  0x18   :  { %650 = vmatprep.subr.bf16.mxu0 %v3910_v25  ;;  %843 = vmatprep.subr.bf16.mxu1 %v3912_v26  ;;  %v1191_v6 = vld [vmem:[%s6220_s1 + $0x30] sm:$0xff]  ;;  %v3966_v8 = vld [vmem:[%s6218_s2 + $0x264] ss:$20 sps:$4 sm:$0xff]   ;;  %v35_v15 = vld [vmem:[%s6219_s0 + $0x28] sm:$0xff] }
  0x19   :  { %v3964_v7 = vld [vmem:[%s6218_s2 + $0x25c] ss:$20 sps:$4 sm:$0xff]   ;;  %v3968_v9 = vld [vmem:[%s6218_s2 + $0x258] ss:$20 sps:$4 sm:$0xff]   ;;  %v30_v12 = vld [vmem:[%s6219_s0] sm:$0xff] }
  0x1a   :  { %1224 = vperm.xlu0 %3872, %v1186_v57   ;;  %1244 = vperm.xlu1 %3873, %v1190_v3   ;;  %v1192_v11 = vld [vmem:[%s6220_s1 + $0x38] sm:$0xff]  ;;  %v32_v13 = vld [vmem:[%s6219_s0 + $0x10] sm:$0xff]  ;;  %v1193_v14 = vld [vmem:[%s6220_s1 + $0x40] sm:$0xff] }
  0x1b   :  { %651 = vmatpush1.bf16.msra.mxu0 %v3914_v27  ;;  %844 = vmatpush1.bf16.msra.mxu1 %v3915_v28  ;;  %v37_v16 = vld [vmem:[%s6219_s0 + $0x38] sm:$0xff]  ;;  %v4450_v17 = vpack.c.bf16 %v32_v13, %v30_v12  ;;  %v1194_v18 = vld [vmem:[%s6220_s1 + $0x48] sm:$0xff]  ;;  %v1195_v20 = vld [vmem:[%s6220_s1 + $0x50] sm:$0xff] }
  0x1c   :  { %652 = vmatprep.subr.bf16.mxu0 %v3916_v29  ;;  %845 = vmatprep.subr.bf16.mxu1 %v3918_v30  ;;  %v4455_v19 = vpack.c.bf16 %v37_v16, %v35_v15  ;;  %v1196_v21 = vld [vmem:[%s6220_s1 + $0x58] sm:$0xff]  ;;  %v34_v22 = vld [vmem:[%s6219_s0 + $0x20] sm:$0xff]  ;;  %v36_v23 = vld [vmem:[%s6219_s0 + $0x30] sm:$0xff] }
  0x1d   :  { %v39_v24 = vld [vmem:[%s6219_s0 + $0x48] sm:$0xff]  ;;  %v41_v25 = vld [vmem:[%s6219_s0 + $0x58] sm:$0xff]  ;;  %v1197_v26 = vld [vmem:[%s6220_s1 + $0x60] sm:$0xff]  ;;  %v4482_v27 = vpack.c.bf16 %v36_v23, %v34_v22 }
  0x1e   :  { %1239 = vperm.xlu0 %3872, %v1189_v0   ;;  %1254 = vperm.xlu1 %3873, %v1192_v11   ;;  %v1198_v28 = vld [vmem:[%s6220_s1 + $0x68] sm:$0xff]  ;;  %v4490_v30 = vpack.c.bf16 %v41_v25, %v39_v24  ;;  %v1203_v48 = vld [vmem:[%s6220_s1 + $0x90] sm:$0xff]  ;;  %v49_v57 = vld [vmem:[%s6219_s0 + $0x98] sm:$0xff] }
  0x1f   :  { %653 = vmatpush1.bf16.msra.mxu0 %v3920_v31  ;;  %846 = vmatpush1.bf16.msra.mxu1 %v3921_v32  ;;  %v3972_v29 = vld [vmem:[%s6221_s4 + $0x4] ss:$8 sps:$4 sm:$0xff]   ;;  %v1199_v31 = vld [vmem:[%s6220_s1 + $0x70] sm:$0xff]  ;;  %v3984_v58 = vld [vmem:[%s6221_s4 + $0x20] ss:$8 sps:$4 sm:$0xff]  }
  0x20   :  { %654 = vmatprep.subr.bf16.mxu0 %v3922_v33  ;;  %847 = vmatprep.subr.bf16.mxu1 %v3924_v34  ;;  %v3973_v32 = vld [vmem:[%s6218_s2 + $0x150] ss:$20 sps:$4 sm:$0xff]   ;;  %v1200_v33 = vld [vmem:[%s6220_s1 + $0x78] sm:$0xff]  ;;  %v3970_v34 = vld [vmem:[%s6221_s4] ss:$8 sps:$4 sm:$0xff]  }
  0x21   :  { %v3981_v54 = vld [vmem:[%s6218_s2 + $0x60] ss:$20 sps:$4 sm:$0xff]   ;;  %v3983_v61 = vld [vmem:[%s6218_s2 + $0x88] ss:$20 sps:$4 sm:$0xff]   ;;  %v3991_v11 = vld [vmem:[%s6221_s4 + $0x30] ss:$8 sps:$4 sm:$0xff]  }
  0x22   :  { %1249 = vperm.xlu0 %3872, %v1191_v6   ;;  %1264 = vperm.xlu1 %3873, %v1194_v18   ;;  %v46_v3 = vld [vmem:[%s6219_s0 + $0x80] sm:$0xff]  ;;  %v51_v6 = vld [vmem:[%s6219_s0 + $0xa8] sm:$0xff]  ;;  %v1211_v18 = vld [vmem:[%s6220_s1 + $0xd0] sm:$0xff] }
  0x23   :  { %655 = vmatpush1.bf16.msra.mxu0 %v3926_v35  ;;  %848 = vmatpush1.bf16.msra.mxu1 %v3927_v36  ;;  %v38_v35 = vld [vmem:[%s6219_s0 + $0x40] sm:$0xff]  ;;  %v40_v36 = vld [vmem:[%s6219_s0 + $0x50] sm:$0xff]  ;;  %v3990_v13 = vld [vmem:[%s6218_s2 + $0xd8] ss:$20 sps:$4 sm:$0xff]  }
  0x24   :  { %656 = vmatprep.subr.bf16.mxu0 %v3928_v37  ;;  %849 = vmatprep.subr.bf16.mxu1 %v3930_v38  ;;  %v3974_v37 = vld [vmem:[%s6218_s2 + $0x10] ss:$20 sps:$4 sm:$0xff]   ;;  %v3975_v38 = vld [vmem:[%s6218_s2 + $0x178] ss:$20 sps:$4 sm:$0xff]   ;;  %v3995_v24 = vld [vmem:[%s6218_s2 + $0x100] ss:$20 sps:$4 sm:$0xff]  }
  0x25   :  { %v1209_v12 = vld [vmem:[%s6220_s1 + $0xc0] sm:$0xff]  ;;  %v1210_v15 = vld [vmem:[%s6220_s1 + $0xc8] sm:$0xff]  ;;  %v52_v22 = vld [vmem:[%s6219_s0 + $0xb0] sm:$0xff] }
  0x26   :  { %1259 = vperm.xlu0 %3872, %v1193_v14   ;;  %1274 = vperm.xlu1 %3873, %v1196_v21   ;;  %v50_v21 = vld [vmem:[%s6219_s0 + $0xa0] sm:$0xff]  ;;  %v1212_v23 = vld [vmem:[%s6220_s1 + $0xd8] sm:$0xff]  ;;  %v55_v25 = vld [vmem:[%s6219_s0 + $0xc8] sm:$0xff] }
  0x27   :  { %657 = vmatpush1.bf16.msra.mxu0 %v3932_v39  ;;  %850 = vmatpush1.bf16.msra.mxu1 %v3933_v40  ;;  %v43_v39 = vld [vmem:[%s6219_s0 + $0x68] sm:$0xff]  ;;  %v45_v40 = vld [vmem:[%s6219_s0 + $0x78] sm:$0xff] }
  0x28   :  { %658 = vmatprep.subr.bf16.mxu0 %v3934_v41  ;;  %851 = vmatprep.subr.bf16.mxu1 %v3936_v42  ;;  %v3977_v41 = vld [vmem:[%s6221_s4 + $0x10] ss:$8 sps:$4 sm:$0xff]   ;;  %v3979_v42 = vld [vmem:[%s6221_s4 + $0x14] ss:$8 sps:$4 sm:$0xff]   ;;  %v4543_v47 = vpack.c.bf16 %v45_v40, %v43_v39  ;;  %v4006_v40 = vld [vmem:[%s6221_s4 + $0x64] ss:$8 sps:$4 sm:$0xff]  }
  0x29   :  { %v1215_v39 = vld [vmem:[%s6220_s1 + $0xf0] sm:$0xff] }
  0x2a   :  { %1269 = vperm.xlu0 %3872, %v1195_v20   ;;  %1284 = vperm.xlu1 %3873, %v1198_v28   ;;  %v3994_v20 = vld [vmem:[%s6218_s2 + $0x240] ss:$20 sps:$4 sm:$0xff]   ;;  %v3996_v28 = vld [vmem:[%s6218_s2 + $0x268] ss:$20 sps:$4 sm:$0xff]  }
  0x2b   :  { %659 = vmatpush1.bf16.msra.mxu0 %v3938_v43  ;;  %852 = vmatpush1.bf16.msra.mxu1 %v3939_v44  ;;  %v1201_v43 = vld [vmem:[%s6220_s1 + $0x80] sm:$0xff]  ;;  %v3976_v44 = vld [vmem:[%s6218_s2 + $0x38] ss:$20 sps:$4 sm:$0xff]  }
  0x2c   :  { %660 = vmatprep.subr.bf16.mxu0 %v3940_v45  ;;  %853 = vmatprep.subr.bf16.mxu1 %v3942_v46  ;;  %v4538_v45 = vpack.c.bf16 %v40_v36, %v38_v35  ;;  %v1202_v46 = vld [vmem:[%s6220_s1 + $0x88] sm:$0xff]  ;;  %v4691_v35 = vpack.c.bf16 %v52_v22, %v50_v21  ;;  %v4027_v22 = vld [vmem:[%s6221_s4 + $0xd4] ss:$8 sps:$4 sm:$0xff]  }
  0x2d   :  { %v1214_v36 = vld [vmem:[%s6220_s1 + $0xe8] sm:$0xff] }
  0x2e   :  { %1279 = vperm.xlu0 %3872, %v1197_v26   ;;  %1294 = vperm.xlu1 %3873, %v1200_v33   ;;  %v57_v26 = vld [vmem:[%s6219_s0 + $0xd8] sm:$0xff]  ;;  %v1213_v33 = vld [vmem:[%s6220_s1 + $0xe0] sm:$0xff] }
  0x2f   :  { %661 = vmatpush1.bf16.msra.mxu0 %v3944_v49  ;;  %854 = vmatpush1.bf16.msra.mxu1 %v3945_v50  ;;  %v3980_v49 = vld [vmem:[%s6218_s2 + $0x1a0] ss:$20 sps:$4 sm:$0xff]  }
  0x30   :  { %662 = vmatprep.subr.bf16.mxu0 %v3946_v52  ;;  %855 = vmatprep.subr.bf16.mxu1 %v3948_v53  ;;  %v42_v50 = vld [vmem:[%s6219_s0 + $0x60] sm:$0xff]  ;;  %v44_v52 = vld [vmem:[%s6219_s0 + $0x70] sm:$0xff]  ;;  %v1204_v53 = vld [vmem:[%s6220_s1 + $0x98] sm:$0xff] }
  0x31   :  { %v4022_v21 = vld [vmem:[%s6221_s4 + $0xc0] ss:$8 sps:$4 sm:$0xff]  }
  0x32   :  { %1289 = vperm.xlu0 %3872, %v1199_v31   ;;  %1304 = vperm.xlu1 %3873, %v1202_v46   ;;  %v3998_v31 = vld [vmem:[%s6221_s4 + $0x40] ss:$8 sps:$4 sm:$0xff]   ;;  %v61_v46 = vld [vmem:[%s6219_s0 + $0xf8] sm:$0xff] }
  0x33   :  { %663 = vmatpush1.bf16.msra.mxu0 %v3950_v55  ;;  %856 = vmatpush1.bf16.msra.mxu1 %v3951_v56  ;;  %v47_v55 = vld [vmem:[%s6219_s0 + $0x88] sm:$0xff] }
  0x34   :  { %664 = vmatprep.subr.bf16.mxu0 %v3952_v59  ;;  %857 = vmatprep.subr.bf16.mxu1 %v3954_v60  ;;  %v3982_v56 = vld [vmem:[%s6218_s2 + $0x1c8] ss:$20 sps:$4 sm:$0xff]   ;;  %v3986_v59 = vld [vmem:[%s6221_s4 + $0x24] ss:$8 sps:$4 sm:$0xff]   ;;  %v4593_v0 = vpack.c.bf16 %v49_v57, %v47_v55 }
  0x35   :  { %v1205_v60 = vld [vmem:[%s6220_s1 + $0xa0] sm:$0xff]  ;;  %v63_v57 = vld [vmem:[%s6219_s0 + $0x108] sm:$0xff] }
  0x36   :  { %1299 = vperm.xlu0 %3872, %v1201_v43   ;;  %1314 = vperm.xlu1 %3873, %v1204_v53   ;;  %v56_v43 = vld [vmem:[%s6219_s0 + $0xd0] sm:$0xff]  ;;  %v58_v55 = vld [vmem:[%s6219_s0 + $0xe0] sm:$0xff] }
  0x37   :  { %665 = vmatpush1.bf16.msra.mxu0 %v3956_v62  ;;  %858 = vmatpush1.bf16.msra.mxu1 %v3957_v63  ;;  %v4588_v62 = vpack.c.bf16 %v44_v52, %v42_v50  ;;  %v1206_v63 = vld [vmem:[%s6220_s1 + $0xa8] sm:$0xff]  ;;  %v4007_v52 = vld [vmem:[%s6221_s4 + $0x70] ss:$8 sps:$4 sm:$0xff]  }
  0x38   :  { %666 = vmatprep.subr.bf16.mxu0 %v3958_v1  ;;  %859 = vmatprep.subr.bf16.mxu1 %v3960_v2  ;;  %v1207_v1 = vld [vmem:[%s6220_s1 + $0xb0] sm:$0xff] }
  0x39   :  { %v3987_v2 = vld [vmem:[%s6218_s2 + $0x1f0] ss:$20 sps:$4 sm:$0xff]  }
  0x3a   :  { %1309 = vperm.xlu0 %3872, %v1203_v48   ;;  %1324 = vperm.xlu1 %3873, %v1206_v63   ;;  %v4004_v48 = vld [vmem:[%s6221_s4 + $0x60] ss:$8 sps:$4 sm:$0xff]  }
  0x3b   :  { %667 = vmatpush1.bf16.msra.mxu0 %v3962_v4  ;;  %860 = vmatpush1.bf16.msra.mxu1 %v3963_v5  ;;  %v48_v4 = vld [vmem:[%s6219_s0 + $0x90] sm:$0xff] }
  0x3c   :  { %668 = vmatprep.subr.bf16.mxu0 %v3964_v7  ;;  %861 = vmatprep.subr.bf16.mxu1 %v3966_v8  ;;  %v3988_v5 = vld [vmem:[%s6218_s2 + $0xb0] ss:$20 sps:$4 sm:$0xff]   ;;  %v53_v7 = vld [vmem:[%s6219_s0 + $0xb8] sm:$0xff]  ;;  %v4638_v14 = vpack.c.bf16 %v48_v4, %v46_v3 }
  0x3d   :  { %v1208_v8 = vld [vmem:[%s6220_s1 + $0xb8] sm:$0xff]  ;;  %v4643_v16 = vpack.c.bf16 %v53_v7, %v51_v6  ;;  %v62_v3 = vld [vmem:[%s6219_s0 + $0x100] sm:$0xff]  ;;  %v64_v4 = vld [vmem:[%s6219_s0 + $0x110] sm:$0xff] }
  0x3e   :  { %1319 = vperm.xlu0 %3872, %v1205_v60   ;;  %1334 = vperm.xlu1 %3873, %v1208_v8   ;;  %v4015_v60 = vld [vmem:[%s6221_s4 + $0x94] ss:$8 sps:$4 sm:$0xff]   ;;  %v4016_v7 = vld [vmem:[%s6221_s4 + $0xa0] ss:$8 sps:$4 sm:$0xff]  }
  0x3f   :  { %669 = vmatpush1.bf16.msra.mxu0 %v3968_v9  ;;  %862 = vmatpush1.bf16.msra.mxu1 %v3969_v10  ;;  %v3989_v9 = vld [vmem:[%s6218_s2 + $0x218] ss:$20 sps:$4 sm:$0xff]   ;;  %v3993_v10 = vld [vmem:[%s6221_s4 + $0x34] ss:$8 sps:$4 sm:$0xff]  }
  0x40   :  { %2312 = vmatprep.subr.bf16.mxu1 %v3972_v29  ;;  %3519 = vmatprep.subr.bf16.mxu0 %v3973_v32  ;;  %v4000_v29 = vld [vmem:[%s6221_s4 + $0x44] ss:$8 sps:$4 sm:$0xff]   ;;  %v4003_v32 = vld [vmem:[%s6221_s4 + $0x54] ss:$8 sps:$4 sm:$0xff]  }
  0x41   :  { %v69_v6 = vld [vmem:[%s6219_s0 + $0x138] sm:$0xff] }
  0x42   :  { %671 = vmatmul.mubr.bf16.vlgmr.msra.gmra.mrb[0].mxu0 %v4450_v17  ;;  %864 = vmatmul.mubr.bf16.vlgmr.msra.gmra.mrb[0].mxu1 %v4450_v17  ;;  %v4021_v8 = vld [vmem:[%s6221_s4 + $0xb4] ss:$8 sps:$4 sm:$0xff]  }
  0x43   :  { %680 = vmatprep.mubr.bf16.mxu0 %v4455_v19  ;;  %873 = vmatprep.mubr.bf16.mxu1 %v4455_v19 }
  0x44   :  { %2313 = vmatpush1.bf16.msra.mxu1 %v3970_v34  ;;  %3520 = vmatpush3.bf16.msra.mxu0 %v3974_v37  ;;  %v3997_v34 = vld [vmem:[%s6218_s2 + $0x128] ss:$20 sps:$4 sm:$0xff]   ;;  %v4001_v37 = vld [vmem:[%s6221_s4 + $0x50] ss:$8 sps:$4 sm:$0xff]  }
  0x45   :  { %3521 = vmatprep.subr.bf16.mxu0 %v3975_v38  ;;  %2314 = vmatprep.subr.bf16.mxu1 %v3979_v42  ;;  %v4699_v38 = vpack.c.bf16 %v57_v26, %v55_v25  ;;  %v54_v42 = vld [vmem:[%s6219_s0 + $0xc0] sm:$0xff]  ;;  %v4025_v25 = vld [vmem:[%s6221_s4 + $0xd0] ss:$8 sps:$4 sm:$0xff]  }
  0x46   :  { %1329 = vperm.xlu0 %3872, %v1207_v1   ;;  %1344 = vperm.xlu1 %3873, %v1210_v15   ;;  %v4732_v50 = vpack.c.bf16 %v56_v43, %v54_v42  ;;  %v4013_v1 = vld [vmem:[%s6221_s4 + $0x90] ss:$8 sps:$4 sm:$0xff]   ;;  %v70_v26 = vld [vmem:[%s6219_s0 + $0x140] sm:$0xff] }
  0x47   :  { %v68_v15 = vld [vmem:[%s6219_s0 + $0x130] sm:$0xff] }
  0x48   :  { %2315 = vmatpush1.bf16.msra.mxu1 %v3977_v41  ;;  %3522 = vmatpush3.bf16.msra.mxu0 %v3976_v44  ;;  %v1216_v41 = vld [vmem:[%s6220_s1 + $0xf8] sm:$0xff]  ;;  %v59_v44 = vld [vmem:[%s6219_s0 + $0xe8] sm:$0xff] }
  0x49   :  { %3523 = vmatprep.subr.bf16.mxu0 %v3980_v49  ;;  %2316 = vmatprep.subr.bf16.mxu1 %v3986_v59  ;;  %v4009_v49 = vld [vmem:[%s6221_s4 + $0x74] ss:$8 sps:$4 sm:$0xff]   ;;  %v4737_v53 = vpack.c.bf16 %v61_v46, %v59_v44  ;;  %v4010_v59 = vld [vmem:[%s6221_s4 + $0x80] ss:$8 sps:$4 sm:$0xff]  }
  0x4a   :  { %681 = vmatmul.mubr.bf16.gmra.mrb[4].mxu0 %v4482_v27  ;;  %874 = vmatmul.mubr.bf16.gmra.mrb[4].mxu1 %v4482_v27  ;;  %v78_v44 = vld [vmem:[%s6219_s0 + $0x180] sm:$0xff]  ;;  %v80_v46 = vld [vmem:[%s6219_s0 + $0x190] sm:$0xff] }
  0x4b   :  { %690 = vmatprep.mubr.bf16.mxu0 %v4490_v30  ;;  %883 = vmatprep.mubr.bf16.mxu1 %v4490_v30 }
  0x4c   :  { %3524 = vmatpush3.bf16.msra.mxu0 %v3981_v54  ;;  %2317 = vmatpush1.bf16.msra.mxu1 %v3984_v58  ;;  %v4012_v54 = vld [vmem:[%s6221_s4 + $0x84] ss:$8 sps:$4 sm:$0xff]   ;;  %v65_v58 = vld [vmem:[%s6219_s0 + $0x118] sm:$0xff] }
  0x4d   :  { %3525 = vmatprep.subr.bf16.mxu0 %v3982_v56  ;;  %2318 = vmatprep.subr.bf16.mxu1 %v3993_v10  ;;  %v60_v56 = vld [vmem:[%s6219_s0 + $0xf0] sm:$0xff]  ;;  %v4766_v63 = vpack.c.bf16 %v65_v58, %v63_v57  ;;  %v82_v57 = vld [vmem:[%s6219_s0 + $0x1a0] sm:$0xff] }
  0x4e   :  { %1339 = vperm.xlu0 %3872, %v1209_v12   ;;  %1354 = vperm.xlu1 %3873, %v1212_v23   ;;  %v4024_v12 = vld [vmem:[%s6221_s4 + $0xc4] ss:$8 sps:$4 sm:$0xff]   ;;  %v84_v58 = vld [vmem:[%s6219_s0 + $0x1b0] sm:$0xff] }
  0x50   :  { %3526 = vmatpush3.bf16.msra.mxu0 %v3983_v61  ;;  %2319 = vmatpush1.bf16.msra.mxu1 %v3991_v11  ;;  %v4764_v61 = vpack.c.bf16 %v60_v56, %v58_v55  ;;  %v4019_v11 = vld [vmem:[%s6221_s4 + $0xb0] ss:$8 sps:$4 sm:$0xff]   ;;  %v4903_v55 = vpack.c.bf16 %v80_v46, %v78_v44 }
  0x51   :  { %3527 = vmatprep.subr.bf16.mxu0 %v3987_v2  ;;  %2320 = vmatprep.subr.bf16.mxu1 %v4000_v29  ;;  %v4018_v2 = vld [vmem:[%s6221_s4 + $0xa4] ss:$8 sps:$4 sm:$0xff]  }
  0x52   :  { %691 = vmatmul.mubr.bf16.gmra.mrb[8].mxu0 %v4538_v45  ;;  %884 = vmatmul.mubr.bf16.gmra.mrb[8].mxu1 %v4538_v45  ;;  %v4030_v29 = vld [vmem:[%s6221_s4 + $0xe4] ss:$8 sps:$4 sm:$0xff]  }
  0x53   :  { %700 = vmatprep.mubr.bf16.mxu0 %v4543_v47  ;;  %893 = vmatprep.mubr.bf16.mxu1 %v4543_v47 }
  0x54   :  { %3528 = vmatpush3.bf16.msra.mxu0 %v3988_v5  ;;  %1349 = vperm.xlu0 %3872, %v1211_v18   ;;  %v67_v5 = vld [vmem:[%s6219_s0 + $0x128] sm:$0xff] }
  0x55   :  { %3529 = vmatprep.subr.bf16.mxu0 %v3989_v9  ;;  %2321 = vmatpush1.bf16.msra.mxu1 %v3998_v31  ;;  %v4796_v9 = vpack.c.bf16 %v64_v4, %v62_v3  ;;  %v4798_v10 = vpack.c.bf16 %v69_v6, %v67_v5  ;;  %v71_v18 = vld [vmem:[%s6219_s0 + $0x148] sm:$0xff]  ;;  %v86_v4 = vld [vmem:[%s6219_s0 + $0x1c0] sm:$0xff]  ;;  %v88_v5 = vld [vmem:[%s6219_s0 + $0x1d0] sm:$0xff] }
  0x56   :  { %2322 = vmatprep.subr.bf16.mxu1 %v4003_v32  ;;  %1364 = vperm.xlu1 %3873, %v1214_v36   ;;  %v75_v31 = vld [vmem:[%s6219_s0 + $0x168] sm:$0xff]  ;;  %v77_v32 = vld [vmem:[%s6219_s0 + $0x178] sm:$0xff] }
  0x57   :  { %v4859_v36 = vpack.c.bf16 %v77_v32, %v75_v31  ;;  %v91_v6 = vld [vmem:[%s6219_s0 + $0x1e8] sm:$0xff] }
  0x58   :  { %3530 = vmatpush3.bf16.msra.mxu0 %v3990_v13  ;;  %1359 = vperm.xlu0 %3872, %v1213_v33   ;;  %v66_v13 = vld [vmem:[%s6219_s0 + $0x120] sm:$0xff] }
  0x59   :  { %3531 = vmatprep.subr.bf16.mxu0 %v3994_v20  ;;  %2323 = vmatpush1.bf16.msra.mxu1 %v4001_v37  ;;  %v73_v20 = vld [vmem:[%s6219_s0 + $0x158] sm:$0xff]  ;;  %v4828_v23 = vpack.c.bf16 %v68_v15, %v66_v13  ;;  %v4028_v33 = vld [vmem:[%s6221_s4 + $0xe0] ss:$8 sps:$4 sm:$0xff]   ;;  %v92_v13 = vld [vmem:[%s6219_s0 + $0x1f0] sm:$0xff] }
  0x5a   :  { %701 = vmatmul.mubr.bf16.gmra.mrb[12].mxu0 %v4588_v62  ;;  %894 = vmatmul.mubr.bf16.gmra.mrb[12].mxu1 %v4588_v62  ;;  %v74_v37 = vld [vmem:[%s6219_s0 + $0x160] sm:$0xff] }
  0x5b   :  { %710 = vmatprep.mubr.bf16.mxu0 %v4593_v0  ;;  %903 = vmatprep.mubr.bf16.mxu1 %v4593_v0 }
  0x5c   :  { %3532 = vmatpush3.bf16.msra.mxu0 %v3995_v24  ;;  %1369 = vperm.xlu0 %3872, %v1215_v39   ;;  %v4830_v24 = vpack.c.bf16 %v73_v20, %v71_v18  ;;  %v76_v39 = vld [vmem:[%s6219_s0 + $0x170] sm:$0xff] }
  0x5d   :  { %3533 = vmatprep.subr.bf16.mxu0 %v3996_v28  ;;  %1374 = vperm.xlu1 %3873, %v1216_v41   ;;  %v72_v28 = vld [vmem:[%s6219_s0 + $0x150] sm:$0xff]  ;;  %v81_v41 = vld [vmem:[%s6219_s0 + $0x198] sm:$0xff]  ;;  %v4877_v42 = vpack.c.bf16 %v76_v39, %v74_v37 }
  0x5e   :  { %2324 = vmatprep.subr.bf16.mxu1 %v4006_v40  ;;  %v79_v40 = vld [vmem:[%s6219_s0 + $0x188] sm:$0xff] }
  0x5f   :  { %2325 = vmatpush1.bf16.msra.mxu1 %v4004_v48  ;;  %v4879_v43 = vpack.c.bf16 %v81_v41, %v79_v40  ;;  %v83_v48 = vld [vmem:[%s6219_s0 + $0x1a8] sm:$0xff] }
  0x60   :  { %3534 = vmatpush3.bf16.msra.mxu0 %v3997_v34  ;;  %2326 = vmatprep.subr.bf16.mxu1 %v4009_v49  ;;  %v4857_v34 = vpack.c.bf16 %v72_v28, %v70_v26  ;;  %v85_v49 = vld [vmem:[%s6219_s0 + $0x1b8] sm:$0xff] }
  0x61   :  { %v4905_v56 = vpack.c.bf16 %v85_v49, %v83_v48 }
  0x62   :  { %711 = vmatmul.mubr.bf16.gmra.mrb[16].mxu0 %v4638_v14  ;;  %904 = vmatmul.mubr.bf16.gmra.mrb[16].mxu1 %v4638_v14 }
  0x63   :  { %720 = vmatprep.mubr.bf16.mxu0 %v4643_v16  ;;  %913 = vmatprep.mubr.bf16.mxu1 %v4643_v16 }
  0x64   :  { %2327 = vmatpush1.bf16.msra.mxu1 %v4007_v52  ;;  %v4033_v52 = vld [vmem:[%s6221_s4 + $0xf4] ss:$8 sps:$4 sm:$0xff]  }
  0x65   :  { %2328 = vmatprep.subr.bf16.mxu1 %v4012_v54  ;;  %v4031_v54 = vld [vmem:[%s6221_s4 + $0xf0] ss:$8 sps:$4 sm:$0xff]  }
  0x68   :  { %2329 = vmatpush1.bf16.msra.mxu1 %v4010_v59  ;;  %v87_v59 = vld [vmem:[%s6219_s0 + $0x1c8] sm:$0xff] }
  0x69   :  { %2330 = vmatprep.subr.bf16.mxu1 %v4015_v60  ;;  %v89_v60 = vld [vmem:[%s6219_s0 + $0x1d8] sm:$0xff] }
  0x6a   :  { %721 = vmatmul.mubr.bf16.gmra.mrb[20].mxu0 %v4691_v35  ;;  %914 = vmatmul.mubr.bf16.gmra.mrb[20].mxu1 %v4691_v35  ;;  %v4928_v3 = vpack.c.bf16 %v89_v60, %v87_v59 }
  0x6b   :  { %730 = vmatprep.mubr.bf16.mxu0 %v4699_v38  ;;  %923 = vmatprep.mubr.bf16.mxu1 %v4699_v38 }
  0x6c   :  { %2331 = vmatpush1.bf16.msra.mxu1 %v4013_v1  ;;  %v4036_v1 = vld [vmem:[%s6221_s4 + $0x104] ss:$8 sps:$4 sm:$0xff]  }
  0x6d   :  { %2332 = vmatprep.subr.bf16.mxu1 %v4018_v2  ;;  %v4926_v2 = vpack.c.bf16 %v84_v58, %v82_v57 }
  0x70   :  { %2333 = vmatpush1.bf16.msra.mxu1 %v4016_v7  ;;  %v93_v7 = vld [vmem:[%s6219_s0 + $0x1f8] sm:$0xff] }
  0x71   :  { %2334 = vmatprep.subr.bf16.mxu1 %v4021_v8  ;;  %v4946_v8 = vpack.c.bf16 %v88_v5, %v86_v4 }
  0x72   :  { %731 = vmatmul.mubr.bf16.gmra.mrb[24].mxu0 %v4732_v50  ;;  %924 = vmatmul.mubr.bf16.gmra.mrb[24].mxu1 %v4732_v50 }
  0x73   :  { %740 = vmatprep.mubr.bf16.mxu0 %v4737_v53  ;;  %933 = vmatprep.mubr.bf16.mxu1 %v4737_v53 }
  0x74   :  { %2335 = vmatpush1.bf16.msra.mxu1 %v4019_v11  ;;  %v4948_v11 = vpack.c.bf16 %v93_v7, %v91_v6 }
  0x75   :  { %2336 = vmatprep.subr.bf16.mxu1 %v4024_v12  ;;  %v90_v12 = vld [vmem:[%s6219_s0 + $0x1e0] sm:$0xff] }
  0x76   :  { %v4960_v15 = vpack.c.bf16 %v92_v13, %v90_v12 }
  0x78   :  { %2337 = vmatpush1.bf16.msra.mxu1 %v4022_v21 }
  0x79   :  { %2338 = vmatprep.subr.bf16.mxu1 %v4027_v22 }
  0x7a   :  { %741 = vmatmul.mubr.bf16.gmra.mrb[28].mxu0 %v4764_v61  ;;  %934 = vmatmul.mubr.bf16.gmra.mrb[28].mxu1 %v4764_v61 }
  0x7b   :  { %750 = vmatprep.mubr.bf16.mxu0 %v4766_v63  ;;  %943 = vmatprep.mubr.bf16.mxu1 %v4766_v63 }
  0x7c   :  { %2339 = vmatpush1.bf16.msra.mxu1 %v4025_v25 }
  0x7d   :  { %2340 = vmatprep.subr.bf16.mxu1 %v4030_v29 }
  0x80   :  { %2341 = vmatpush1.bf16.msra.mxu1 %v4028_v33 }
  0x81   :  { %2342 = vmatprep.subr.bf16.mxu1 %v4033_v52 }
  0x82   :  { %751 = vmatmul.mubr.bf16.gmra.mrb[32].mxu0 %v4796_v9  ;;  %944 = vmatmul.mubr.bf16.gmra.mrb[32].mxu1 %v4796_v9 }
  0x83   :  { %760 = vmatprep.mubr.bf16.mxu0 %v4798_v10  ;;  %953 = vmatprep.mubr.bf16.mxu1 %v4798_v10 }
  0x84   :  { %2343 = vmatpush1.bf16.msra.mxu1 %v4031_v54 }
  0x85   :  { %2505 = vmatprep.subr.bf16.mxu1 %v4036_v1 }
  0x8a   :  { %761 = vmatmul.mubr.bf16.gmra.mrb[36].mxu0 %v4828_v23  ;;  %954 = vmatmul.mubr.bf16.gmra.mrb[36].mxu1 %v4828_v23 }
  0x8b   :  { %770 = vmatprep.mubr.bf16.mxu0 %v4830_v24  ;;  %963 = vmatprep.mubr.bf16.mxu1 %v4830_v24 }
  0x92   :  { %771 = vmatmul.mubr.bf16.gmra.mrb[40].mxu0 %v4857_v34  ;;  %964 = vmatmul.mubr.bf16.gmra.mrb[40].mxu1 %v4857_v34 }
  0x93   :  { %780 = vmatprep.mubr.bf16.mxu0 %v4859_v36  ;;  %973 = vmatprep.mubr.bf16.mxu1 %v4859_v36 }
  0x9a   :  { %781 = vmatmul.mubr.bf16.gmra.mrb[44].mxu0 %v4877_v42  ;;  %974 = vmatmul.mubr.bf16.gmra.mrb[44].mxu1 %v4877_v42 }
  0x9b   :  { %790 = vmatprep.mubr.bf16.mxu0 %v4879_v43  ;;  %983 = vmatprep.mubr.bf16.mxu1 %v4879_v43 }
  0xa2   :  { %791 = vmatmul.mubr.bf16.gmra.mrb[48].mxu0 %v4903_v55  ;;  %984 = vmatmul.mubr.bf16.gmra.mrb[48].mxu1 %v4903_v55 }
  0xa3   :  { %800 = vmatprep.mubr.bf16.mxu0 %v4905_v56  ;;  %993 = vmatprep.mubr.bf16.mxu1 %v4905_v56 }
  0xaa   :  { %801 = vmatmul.mubr.bf16.gmra.mrb[52].mxu0 %v4926_v2  ;;  %994 = vmatmul.mubr.bf16.gmra.mrb[52].mxu1 %v4926_v2 }
  0xab   :  { %810 = vmatprep.mubr.bf16.mxu0 %v4928_v3  ;;  %1003 = vmatprep.mubr.bf16.mxu1 %v4928_v3 }
  0xb2   :  { %811 = vmatmul.mubr.bf16.gmra.mrb[56].mxu0 %v4946_v8  ;;  %1004 = vmatmul.mubr.bf16.gmra.mrb[56].mxu1 %v4946_v8 }
  0xb3   :  { %820 = vmatprep.mubr.bf16.mxu0 %v4948_v11  ;;  %1013 = vmatprep.mubr.bf16.mxu1 %v4948_v11 }
  0xba   :  { %821 = vmatmul.mubr.bf16.gmra.mrb[60].mxu0 %v4960_v15  ;;  %1014 = vmatmul.mubr.bf16.gmra.mrb[60].mxu1 %v4960_v15 }
  0xbb   :  { %1056 = vmatprep.mubr.bf16.mxu0 %v4359_v51  ;;  %v6227_v51 = vlaneseq }
  0xc2   :  { %1057 = vmatmul.mubr.bf16.vlgmr.msra.gmra.mrb[64].mxu0 %v4450_v17  ;;  %v4986_v17 = vshrl.u32 %v6227_v51, 7 }
  0xc3   :  { %1064 = vmatprep.mubr.bf16.mxu0 %v4455_v19  ;;  %v4988_v19 = vpop.permute.xlu0 %1219 }
  0xca   :  { %1065 = vmatmul.mubr.bf16.gmra.mrb[68].mxu0 %v4482_v27  ;;  %v6229_v27 = vsub.s32 0, %v4986_v17 }
  0xcb   :  { %1072 = vmatprep.mubr.bf16.mxu0 %v4490_v30  ;;  %v1549_v30 = vsub.s32 2, %v4986_v17 }
  0xd2   :  { %1073 = vmatmul.mubr.bf16.gmra.mrb[72].mxu0 %v4538_v45  ;;  %v1537_v45 = vld [vmem:[%s6222_s3] sm:$0x1f] }
  0xd3   :  { %1080 = vmatprep.mubr.bf16.mxu0 %v4543_v47  ;;  %v6228_v47 = vsub.s32 1, %v4986_v17 }
  0xda   :  { %1081 = vmatmul.mubr.bf16.gmra.mrb[76].mxu0 %v4588_v62  ;;  %v1553_v62 = vsub.s32 3, %v4986_v17 }
  0xdb   :  { %1088 = vmatprep.mubr.bf16.mxu0 %v4593_v0  ;;  %v4999_v0 = vpop.permute.xlu0 %1224 }
  0xe2   :  { %1089 = vmatmul.mubr.bf16.gmra.mrb[80].mxu0 %v4638_v14  ;;  %v5001_v14 = vpop.permute.xlu1 %1229 }
  0xe3   :  { %1096 = vmatprep.mubr.bf16.mxu0 %v4643_v16  ;;  %v5005_v16 = vrot.slane %v1537_v45, %v6229_v27 }
  0xe6   :  { %v5033_v44 = vpop.permute.xlu1 %1234 }
  0xea   :  { %1097 = vmatmul.mubr.bf16.gmra.mrb[84].mxu0 %v4691_v35  ;;  %v5007_v35 = vrot.slane %v1537_v45, %v1549_v30 }
  0xeb   :  { %1104 = vmatprep.mubr.bf16.mxu0 %v4699_v38 }
  0xf2   :  { %1105 = vmatmul.mubr.bf16.gmra.mrb[88].mxu0 %v4732_v50 }
  0xf3   :  { %1112 = vmatprep.mubr.bf16.mxu0 %v4737_v53  ;;  %v5011_v53 = vrot.slane %v1537_v45, %v6228_v47 }
  0xfa   :  { %1113 = vmatmul.mubr.bf16.gmra.mrb[92].mxu0 %v4764_v61  ;;  %v5013_v61 = vrot.slane %v1537_v45, %v1553_v62 }
  0xfb   :  { %1120 = vmatprep.mubr.bf16.mxu0 %v4766_v63 }
 0x102   :  { %1121 = vmatmul.mubr.bf16.gmra.mrb[96].mxu0 %v4796_v9 }
 0x103   :  { %1128 = vmatprep.mubr.bf16.mxu0 %v4798_v10 }
 0x10a   :  { %1129 = vmatmul.mubr.bf16.gmra.mrb[100].mxu0 %v4828_v23 }
 0x10b   :  { %1136 = vmatprep.mubr.bf16.mxu0 %v4830_v24 }
 0x112   :  { %1137 = vmatmul.mubr.bf16.gmra.mrb[104].mxu0 %v4857_v34 }
 0x113   :  { %1144 = vmatprep.mubr.bf16.mxu0 %v4859_v36 }
 0x115   :  { %v672_v38 = vpop.f32.mrb[0].mxu0  ;;  %v865_v50 = vpop.f32.mrb[0].mxu1 }
 0x116   :  { %v1377_v63 = vmul.f32 %v4988_v19, %v672_v38  ;;  %v1379_v9 = vmul.f32 %v4988_v19, %v865_v50  ;;  %v674_v10 = vpop.f32.mrb[1].mxu0  ;;  %v867_v18 = vpop.f32.mrb[1].mxu1  ;;  %v4034_v38 = vld [vmem:[%s6221_s4 + $0x100] ss:$8 sps:$4 sm:$0xff]  }
 0x117   :  { %v1378_v20 = vmul.f32 %v4988_v19, %v674_v10  ;;  %v1380_v21 = vmul.f32 %v4988_v19, %v867_v18  ;;  %v676_v22 = vpop.f32.mrb[2].mxu0  ;;  %v869_v23 = vpop.f32.mrb[2].mxu1 }
 0x118   :  { %v1564_v24 = vadd.f32 %v5005_v16, %v1377_v63  ;;  %v1566_v25 = vadd.f32 %v5007_v35, %v1379_v9  ;;  %v1382_v26 = vmul.f32 %v4999_v0, %v676_v22  ;;  %v1384_v28 = vmul.f32 %v4999_v0, %v869_v23  ;;  %v678_v29 = vpop.f32.mrb[3].mxu0  ;;  %v871_v31 = vpop.f32.mrb[3].mxu1  ;;  %v4039_v22 = vld [vmem:[%s6221_s4 + $0x114] ss:$8 sps:$4 sm:$0xff]  }
 0x119   :  { %v1565_v32 = vadd.f32 %v5011_v53, %v1378_v20  ;;  %v1567_v33 = vadd.f32 %v5013_v61, %v1380_v21  ;;  %v1383_v34 = vmul.f32 %v4999_v0, %v678_v29  ;;  %v1385_v36 = vmul.f32 %v4999_v0, %v871_v31 }
 0x11a   :  { %v1569_v37 = vadd.f32 %v5005_v16, %v1382_v26  ;;  %v1571_v39 = vadd.f32 %v5007_v35, %v1384_v28  ;;  %1145 = vmatmul.mubr.bf16.gmra.mrb[108].mxu0 %v4877_v42  ;;  %v1724_v46 = vmax.f32 %v1564_v24, 0.0  ;;  %v1726_v48 = vmax.f32 %v1566_v25, 0.0 }
 0x11b   :  { %v1570_v40 = vadd.f32 %v5011_v53, %v1383_v34  ;;  %v1572_v41 = vadd.f32 %v5013_v61, %v1385_v36  ;;  %1152 = vmatprep.mubr.bf16.mxu0 %v4879_v43  ;;  %v1725_v54 = vmax.f32 %v1565_v32, 0.0  ;;  %v1727_v57 = vmax.f32 %v1567_v33, 0.0  ;;  %v4037_v33 = vld [vmem:[%s6221_s4 + $0x110] ss:$8 sps:$4 sm:$0xff]   ;;  %v5066_v34 = vpop.permute.xlu0 %1239  ;;  %v5068_v36 = vpop.permute.xlu1 %1244 }
 0x11c   :  { %v1728_v49 = vmax.f32 %v1569_v37, 0.0  ;;  %v1730_v52 = vmax.f32 %v1571_v39, 0.0  ;;  %6255 = vst [vmem:[#allocation2_spill] sm:$0xff] %v5068_v36 }
 0x11d   :  { %v1729_v58 = vmax.f32 %v1570_v40, 0.0  ;;  %v1731_v59 = vmax.f32 %v1572_v41, 0.0  ;;  %v682_v60 = vpop.f32.mrb[4].mxu0  ;;  %v875_v1 = vpop.f32.mrb[4].mxu1  ;;  %v4042_v41 = vld [vmem:[%s6221_s4 + $0x124] ss:$8 sps:$4 sm:$0xff]  }
 0x11e   :  { %v1852_v4 = vpack.c.bf16 %v1728_v49, %v1724_v46  ;;  %v5035_v42 = vpack.c.bf16 %v1730_v52, %v1726_v48  ;;  %v1387_v5 = vmul.f32 %v5001_v14, %v682_v60  ;;  %v1389_v6 = vmul.f32 %v5001_v14, %v875_v1  ;;  %v684_v43 = vpop.f32.mrb[5].mxu0  ;;  %v877_v7 = vpop.f32.mrb[5].mxu1 }
 0x11f   :  { %v1388_v12 = vmul.f32 %v5001_v14, %v684_v43  ;;  %v1390_v13 = vmul.f32 %v5001_v14, %v877_v7  ;;  %v686_v30 = vpop.f32.mrb[6].mxu0  ;;  %v879_v45 = vpop.f32.mrb[6].mxu1  ;;  %v1853_v62 = vpack.c.bf16 %v1729_v58, %v1725_v54  ;;  %v5044_v50 = vpack.c.bf16 %v1731_v59, %v1727_v57 }
 0x120   :  { %v1574_v63 = vadd.f32 %v5005_v16, %v1387_v5  ;;  %v1576_v9 = vadd.f32 %v5007_v35, %v1389_v6  ;;  %v1392_v10 = vmul.f32 %v5033_v44, %v686_v30  ;;  %v1394_v18 = vmul.f32 %v5033_v44, %v879_v45  ;;  %v688_v20 = vpop.f32.mrb[7].mxu0  ;;  %v881_v21 = vpop.f32.mrb[7].mxu1 }
 0x121   :  { %v1575_v23 = vadd.f32 %v5011_v53, %v1388_v12  ;;  %v1577_v24 = vadd.f32 %v5013_v61, %v1390_v13  ;;  %v1393_v25 = vmul.f32 %v5033_v44, %v688_v20  ;;  %v1395_v26 = vmul.f32 %v5033_v44, %v881_v21  ;;  %2344 = vmatprep.mubr.bf16.mxu1 %v1853_v62  ;;  %v4040_v13 = vld [vmem:[%s6221_s4 + $0x120] ss:$8 sps:$4 sm:$0xff]  }
 0x122   :  { %v1579_v28 = vadd.f32 %v5005_v16, %v1392_v10  ;;  %v1581_v29 = vadd.f32 %v5007_v35, %v1394_v18  ;;  %1153 = vmatmul.mubr.bf16.gmra.mrb[112].mxu0 %v4903_v55  ;;  %2345 = vmatmul.mubr.bf16.vlgmr.msra.gmra.mrb[64].mxu1 %v1852_v4  ;;  %v1732_v37 = vmax.f32 %v1574_v63, 0.0  ;;  %v1734_v39 = vmax.f32 %v1576_v9, 0.0  ;;  %v4045_v18 = vld [vmem:[%s6221_s4 + $0x134] ss:$8 sps:$4 sm:$0xff]  }
 0x123   :  { %v1580_v31 = vadd.f32 %v5011_v53, %v1393_v25  ;;  %v1582_v32 = vadd.f32 %v5013_v61, %v1395_v26  ;;  %2506 = vmatpush1.bf16.msra.mxu1 %v4034_v38  ;;  %1160 = vmatprep.mubr.bf16.mxu0 %v4905_v56  ;;  %v1733_v46 = vmax.f32 %v1575_v23, 0.0  ;;  %v1735_v48 = vmax.f32 %v1577_v24, 0.0 }
 0x124   :  { %v1736_v40 = vmax.f32 %v1579_v28, 0.0  ;;  %v1738_v55 = vmax.f32 %v1581_v29, 0.0  ;;  %2507 = vmatprep.subr.bf16.mxu1 %v4039_v22  ;;  %v4043_v29 = vld [vmem:[%s6221_s4 + $0x130] ss:$8 sps:$4 sm:$0xff]  }
 0x125   :  { %v1737_v56 = vmax.f32 %v1580_v31, 0.0  ;;  %v1739_v49 = vmax.f32 %v1582_v32, 0.0  ;;  %v692_v52 = vpop.f32.mrb[8].mxu0  ;;  %v885_v54 = vpop.f32.mrb[8].mxu1 }
 0x126   :  { %v1397_v57 = vmul.f32 %v5066_v34, %v692_v52  ;;  %v1399_v58 = vmul.f32 %v5066_v34, %v885_v54  ;;  %v694_v59 = vpop.f32.mrb[9].mxu0  ;;  %v887_v60 = vpop.f32.mrb[9].mxu1  ;;  %v1856_v1 = vpack.c.bf16 %v1736_v40, %v1732_v37  ;;  %v5075_v4 = vpack.c.bf16 %v1738_v55, %v1734_v39  ;;  %v4048_v40 = vld [vmem:[%s6221_s4 + $0x144] ss:$8 sps:$4 sm:$0xff]  }
 0x127   :  { %v1398_v5 = vmul.f32 %v5066_v34, %v694_v59  ;;  %v1400_v6 = vmul.f32 %v5066_v34, %v887_v60  ;;  %v696_v43 = vpop.f32.mrb[10].mxu0  ;;  %v889_v7 = vpop.f32.mrb[10].mxu1  ;;  %v1857_v12 = vpack.c.bf16 %v1737_v56, %v1733_v46  ;;  %2508 = vmatpush1.bf16.msra.mxu1 %v4037_v33  ;;  %v5082_v30 = vpack.c.bf16 %v1739_v49, %v1735_v48 }
 0x128   :  { %v1584_v45 = vadd.f32 %v5005_v16, %v1397_v57  ;;  %v1586_v62 = vadd.f32 %v5007_v35, %v1399_v58  ;;  %v1402_v38 = vmul.f32 %v5068_v36, %v696_v43  ;;  %v1404_v63 = vmul.f32 %v5068_v36, %v889_v7  ;;  %v698_v9 = vpop.f32.mrb[11].mxu0  ;;  %v891_v10 = vpop.f32.mrb[11].mxu1  ;;  %2509 = vmatprep.subr.bf16.mxu1 %v4042_v41  ;;  %v4046_v7 = vld [vmem:[%s6221_s4 + $0x140] ss:$8 sps:$4 sm:$0xff]  }
 0x129   :  { %v1585_v20 = vadd.f32 %v5011_v53, %v1398_v5  ;;  %v1587_v21 = vadd.f32 %v5013_v61, %v1400_v6  ;;  %v1403_v22 = vmul.f32 %v5068_v36, %v698_v9  ;;  %v1405_v23 = vmul.f32 %v5068_v36, %v891_v10  ;;  %2354 = vmatprep.mubr.bf16.mxu1 %v1857_v12  ;;  %v5104_v31 = vpop.permute.xlu0 %1249  ;;  %v5106_v32 = vpop.permute.xlu1 %1254  ;;  %v4051_v10 = vld [vmem:[%s6221_s4 + $0x154] ss:$8 sps:$4 sm:$0xff]  }
 0x12a   :  { %v1589_v24 = vadd.f32 %v5005_v16, %v1402_v38  ;;  %v1591_v25 = vadd.f32 %v5007_v35, %v1404_v63  ;;  %1161 = vmatmul.mubr.bf16.gmra.mrb[116].mxu0 %v4926_v2  ;;  %2355 = vmatmul.mubr.bf16.gmra.mrb[68].mxu1 %v1856_v1  ;;  %6256 = vst [vmem:[#allocation3_spill] sm:$0xff] %v5104_v31  ;;  %6257 = vst [vmem:[#allocation4_spill] sm:$0xff] %v5106_v32  ;;  %v1740_v33 = vmax.f32 %v1584_v45, 0.0 }
 0x12b   :  { %v1590_v26 = vadd.f32 %v5011_v53, %v1403_v22  ;;  %v1592_v28 = vadd.f32 %v5013_v61, %v1405_v23  ;;  %1168 = vmatprep.mubr.bf16.mxu0 %v4928_v3  ;;  %2510 = vmatpush1.bf16.msra.mxu1 %v4040_v13  ;;  %v1742_v37 = vmax.f32 %v1586_v62, 0.0  ;;  %v1741_v55 = vmax.f32 %v1585_v20, 0.0 }
 0x12c   :  { %v1744_v39 = vmax.f32 %v1589_v24, 0.0  ;;  %v1746_v2 = vmax.f32 %v1591_v25, 0.0  ;;  %2511 = vmatprep.subr.bf16.mxu1 %v4045_v18  ;;  %v1743_v3 = vmax.f32 %v1587_v21, 0.0 }
 0x12d   :  { %v1745_v41 = vmax.f32 %v1590_v26, 0.0  ;;  %v1747_v46 = vmax.f32 %v1592_v28, 0.0  ;;  %v702_v48 = vpop.f32.mrb[12].mxu0  ;;  %v895_v56 = vpop.f32.mrb[12].mxu1  ;;  %v4049_v28 = vld [vmem:[%s6221_s4 + $0x150] ss:$8 sps:$4 sm:$0xff]  }
 0x12e   :  { %v1407_v49 = vmul.f32 %v5104_v31, %v702_v48  ;;  %v1409_v52 = vmul.f32 %v5104_v31, %v895_v56  ;;  %v704_v54 = vpop.f32.mrb[13].mxu0  ;;  %v897_v57 = vpop.f32.mrb[13].mxu1  ;;  %v1860_v58 = vpack.c.bf16 %v1744_v39, %v1740_v33  ;;  %v5113_v59 = vpack.c.bf16 %v1746_v2, %v1742_v37 }
 0x12f   :  { %v1408_v60 = vmul.f32 %v5104_v31, %v704_v54  ;;  %v1410_v1 = vmul.f32 %v5104_v31, %v897_v57  ;;  %v706_v5 = vpop.f32.mrb[14].mxu0  ;;  %v899_v6 = vpop.f32.mrb[14].mxu1  ;;  %v1861_v43 = vpack.c.bf16 %v1745_v41, %v1741_v55  ;;  %2512 = vmatpush1.bf16.msra.mxu1 %v4043_v29  ;;  %v5120_v12 = vpack.c.bf16 %v1747_v46, %v1743_v3 }
 0x130   :  { %v1594_v13 = vadd.f32 %v5005_v16, %v1407_v49  ;;  %v1596_v45 = vadd.f32 %v5007_v35, %v1409_v52  ;;  %v1412_v62 = vmul.f32 %v5106_v32, %v706_v5  ;;  %v1414_v38 = vmul.f32 %v5106_v32, %v899_v6  ;;  %v708_v63 = vpop.f32.mrb[15].mxu0  ;;  %v901_v9 = vpop.f32.mrb[15].mxu1  ;;  %2513 = vmatprep.subr.bf16.mxu1 %v4048_v40  ;;  %v4054_v40 = vld [vmem:[%s6221_s4 + $0x164] ss:$8 sps:$4 sm:$0xff]  }
 0x131   :  { %v1595_v18 = vadd.f32 %v5011_v53, %v1408_v60  ;;  %v1597_v20 = vadd.f32 %v5013_v61, %v1410_v1  ;;  %v1413_v21 = vmul.f32 %v5106_v32, %v708_v63  ;;  %v1415_v22 = vmul.f32 %v5106_v32, %v901_v9  ;;  %2364 = vmatprep.mubr.bf16.mxu1 %v1861_v43  ;;  %v5142_v29 = vpop.permute.xlu0 %1259  ;;  %v5144_v33 = vpop.permute.xlu1 %1264 }
 0x132   :  { %v1599_v23 = vadd.f32 %v5005_v16, %v1412_v62  ;;  %v1601_v24 = vadd.f32 %v5007_v35, %v1414_v38  ;;  %1169 = vmatmul.mubr.bf16.gmra.mrb[120].mxu0 %v4946_v8  ;;  %2365 = vmatmul.mubr.bf16.gmra.mrb[72].mxu1 %v1860_v58  ;;  %6258 = vst [vmem:[#allocation5_spill] sm:$0xff] %v5142_v29  ;;  %6259 = vst [vmem:[#allocation6_spill] sm:$0xff] %v5144_v33  ;;  %v1748_v37 = vmax.f32 %v1594_v13, 0.0 }
 0x133   :  { %v1600_v25 = vadd.f32 %v5011_v53, %v1413_v21  ;;  %v1602_v26 = vadd.f32 %v5013_v61, %v1415_v22  ;;  %1176 = vmatprep.mubr.bf16.mxu0 %v4948_v11  ;;  %2514 = vmatpush1.bf16.msra.mxu1 %v4046_v7  ;;  %v1750_v39 = vmax.f32 %v1596_v45, 0.0  ;;  %v1749_v55 = vmax.f32 %v1595_v18, 0.0  ;;  %v4052_v7 = vld [vmem:[%s6221_s4 + $0x160] ss:$8 sps:$4 sm:$0xff]   ;;  %v4057_v18 = vld [vmem:[%s6221_s4 + $0x174] ss:$8 sps:$4 sm:$0xff]  }
 0x134   :  { %v1752_v2 = vmax.f32 %v1599_v23, 0.0  ;;  %v1754_v8 = vmax.f32 %v1601_v24, 0.0  ;;  %2515 = vmatprep.subr.bf16.mxu1 %v4051_v10  ;;  %v1751_v11 = vmax.f32 %v1597_v20, 0.0 }
 0x135   :  { %v1753_v3 = vmax.f32 %v1600_v25, 0.0  ;;  %v1755_v41 = vmax.f32 %v1602_v26, 0.0  ;;  %v712_v46 = vpop.f32.mrb[16].mxu0  ;;  %v905_v48 = vpop.f32.mrb[16].mxu1 }
 0x136   :  { %v1417_v56 = vmul.f32 %v5142_v29, %v712_v46  ;;  %v1419_v49 = vmul.f32 %v5142_v29, %v905_v48  ;;  %v714_v52 = vpop.f32.mrb[17].mxu0  ;;  %v907_v54 = vpop.f32.mrb[17].mxu1  ;;  %v1864_v57 = vpack.c.bf16 %v1752_v2, %v1748_v37  ;;  %v5151_v58 = vpack.c.bf16 %v1754_v8, %v1750_v39  ;;  %v4055_v37 = vld [vmem:[%s6221_s4 + $0x170] ss:$8 sps:$4 sm:$0xff]  }
 0x137   :  { %v1418_v60 = vmul.f32 %v5142_v29, %v714_v52  ;;  %v1420_v1 = vmul.f32 %v5142_v29, %v907_v54  ;;  %v716_v5 = vpop.f32.mrb[18].mxu0  ;;  %v909_v6 = vpop.f32.mrb[18].mxu1  ;;  %v1865_v43 = vpack.c.bf16 %v1753_v3, %v1749_v55  ;;  %2516 = vmatpush1.bf16.msra.mxu1 %v4049_v28  ;;  %v5158_v13 = vpack.c.bf16 %v1755_v41, %v1751_v11 }
 0x138   :  { %v1604_v45 = vadd.f32 %v5005_v16, %v1417_v56  ;;  %v1606_v62 = vadd.f32 %v5007_v35, %v1419_v49  ;;  %v1422_v38 = vmul.f32 %v5144_v33, %v716_v5  ;;  %v1424_v63 = vmul.f32 %v5144_v33, %v909_v6  ;;  %v718_v9 = vpop.f32.mrb[19].mxu0  ;;  %v911_v10 = vpop.f32.mrb[19].mxu1  ;;  %2517 = vmatprep.subr.bf16.mxu1 %v4054_v40 }
 0x139   :  { %v1605_v20 = vadd.f32 %v5011_v53, %v1418_v60  ;;  %v1607_v21 = vadd.f32 %v5013_v61, %v1420_v1  ;;  %v1423_v22 = vmul.f32 %v5144_v33, %v718_v9  ;;  %v1425_v23 = vmul.f32 %v5144_v33, %v911_v10  ;;  %2374 = vmatprep.mubr.bf16.mxu1 %v1865_v43  ;;  %v5179_v39 = vpop.permute.xlu0 %1269  ;;  %v5181_v2 = vpop.permute.xlu1 %1274 }
 0x13a   :  { %v1609_v24 = vadd.f32 %v5005_v16, %v1422_v38  ;;  %v1611_v25 = vadd.f32 %v5007_v35, %v1424_v63  ;;  %1177 = vmatmul.mubr.bf16.gmra.mrb[124].mxu0 %v4960_v15  ;;  %2375 = vmatmul.mubr.bf16.gmra.mrb[76].mxu1 %v1864_v57  ;;  %6260 = vst [vmem:[#allocation7_spill] sm:$0xff] %v5179_v39  ;;  %6261 = vst [vmem:[#allocation8_spill] sm:$0xff] %v5181_v2  ;;  %v1756_v8 = vmax.f32 %v1604_v45, 0.0  ;;  %v4060_v15 = vld [vmem:[%s6221_s4 + $0x184] ss:$8 sps:$4 sm:$0xff]  }
 0x13b   :  { %v1610_v26 = vadd.f32 %v5011_v53, %v1423_v22  ;;  %v1612_v28 = vadd.f32 %v5013_v61, %v1425_v23  ;;  %2518 = vmatpush1.bf16.msra.mxu1 %v4052_v7  ;;  %v1758_v40 = vmax.f32 %v1606_v62, 0.0  ;;  %v1757_v3 = vmax.f32 %v1605_v20, 0.0  ;;  %v4058_v38 = vld [vmem:[%s6221_s4 + $0x180] ss:$8 sps:$4 sm:$0xff]   ;;  %v4063_v23 = vld [vmem:[%s6221_s4 + $0x194] ss:$8 sps:$4 sm:$0xff]  }
 0x13c   :  { %v1760_v55 = vmax.f32 %v1609_v24, 0.0  ;;  %v1762_v11 = vmax.f32 %v1611_v25, 0.0  ;;  %2519 = vmatprep.subr.bf16.mxu1 %v4057_v18  ;;  %v1759_v41 = vmax.f32 %v1607_v21, 0.0 }
 0x13d   :  { %v1761_v46 = vmax.f32 %v1610_v26, 0.0  ;;  %v1763_v48 = vmax.f32 %v1612_v28, 0.0  ;;  %v722_v56 = vpop.f32.mrb[20].mxu0  ;;  %v915_v49 = vpop.f32.mrb[20].mxu1 }
 0x13e   :  { %v1427_v52 = vmul.f32 %v5179_v39, %v722_v56  ;;  %v1429_v54 = vmul.f32 %v5179_v39, %v915_v49  ;;  %v724_v57 = vpop.f32.mrb[21].mxu0  ;;  %v917_v60 = vpop.f32.mrb[21].mxu1  ;;  %v1868_v1 = vpack.c.bf16 %v1760_v55, %v1756_v8  ;;  %v5188_v5 = vpack.c.bf16 %v1762_v11, %v1758_v40  ;;  %v4061_v11 = vld [vmem:[%s6221_s4 + $0x190] ss:$8 sps:$4 sm:$0xff]   ;;  %v4066_v49 = vld [vmem:[%s6221_s4 + $0x1a4] ss:$8 sps:$4 sm:$0xff]  }
 0x13f   :  { %v1428_v6 = vmul.f32 %v5179_v39, %v724_v57  ;;  %v1430_v43 = vmul.f32 %v5179_v39, %v917_v60  ;;  %v726_v7 = vpop.f32.mrb[22].mxu0  ;;  %v919_v45 = vpop.f32.mrb[22].mxu1  ;;  %v1869_v62 = vpack.c.bf16 %v1761_v46, %v1757_v3  ;;  %2520 = vmatpush1.bf16.msra.mxu1 %v4055_v37  ;;  %v5195_v63 = vpack.c.bf16 %v1763_v48, %v1759_v41 }
 0x140   :  { %v1614_v9 = vadd.f32 %v5005_v16, %v1427_v52  ;;  %v1616_v10 = vadd.f32 %v5007_v35, %v1429_v54  ;;  %v1432_v18 = vmul.f32 %v5181_v2, %v726_v7  ;;  %v1434_v20 = vmul.f32 %v5181_v2, %v919_v45  ;;  %v728_v21 = vpop.f32.mrb[23].mxu0  ;;  %v921_v22 = vpop.f32.mrb[23].mxu1  ;;  %2521 = vmatprep.subr.bf16.mxu1 %v4060_v15 }
 0x141   :  { %v1615_v24 = vadd.f32 %v5011_v53, %v1428_v6  ;;  %v1617_v25 = vadd.f32 %v5013_v61, %v1430_v43  ;;  %v1433_v26 = vmul.f32 %v5181_v2, %v728_v21  ;;  %v1435_v28 = vmul.f32 %v5181_v2, %v921_v22  ;;  %2384 = vmatprep.mubr.bf16.mxu1 %v1869_v62  ;;  %v5215_v15 = vpop.permute.xlu0 %1279  ;;  %v5217_v3 = vpop.permute.xlu1 %1284 }
 0x142   :  { %v1619_v37 = vadd.f32 %v5005_v16, %v1432_v18  ;;  %v1621_v8 = vadd.f32 %v5007_v35, %v1434_v20  ;;  %2385 = vmatmul.mubr.bf16.gmra.mrb[80].mxu1 %v1868_v1  ;;  %6262 = vst [vmem:[#allocation9_spill] sm:$0xff] %v5215_v15  ;;  %6263 = vst [vmem:[#allocation10_spill] sm:$0xff] %v5217_v3  ;;  %v1764_v41 = vmax.f32 %v1614_v9, 0.0  ;;  %v1766_v46 = vmax.f32 %v1616_v10, 0.0 }
 0x143   :  { %v1620_v40 = vadd.f32 %v5011_v53, %v1433_v26  ;;  %v1622_v55 = vadd.f32 %v5013_v61, %v1435_v28  ;;  %2522 = vmatpush1.bf16.msra.mxu1 %v4058_v38  ;;  %v1765_v52 = vmax.f32 %v1615_v24, 0.0  ;;  %v1767_v54 = vmax.f32 %v1617_v25, 0.0 }
 0x144   :  { %v1768_v48 = vmax.f32 %v1619_v37, 0.0  ;;  %v1770_v56 = vmax.f32 %v1621_v8, 0.0  ;;  %2523 = vmatprep.subr.bf16.mxu1 %v4063_v23  ;;  %v4064_v23 = vld [vmem:[%s6221_s4 + $0x1a0] ss:$8 sps:$4 sm:$0xff]  }
 0x145   :  { %v1769_v57 = vmax.f32 %v1620_v40, 0.0  ;;  %v1771_v60 = vmax.f32 %v1622_v55, 0.0  ;;  %v732_v1 = vpop.f32.mrb[24].mxu0  ;;  %v925_v6 = vpop.f32.mrb[24].mxu1  ;;  %v4069_v55 = vld [vmem:[%s6221_s4 + $0x1b4] ss:$8 sps:$4 sm:$0xff]  }
 0x146   :  { %v1437_v43 = vmul.f32 %v5215_v15, %v732_v1  ;;  %v1439_v7 = vmul.f32 %v5215_v15, %v925_v6  ;;  %v734_v45 = vpop.f32.mrb[25].mxu0  ;;  %v927_v62 = vpop.f32.mrb[25].mxu1  ;;  %v1872_v38 = vpack.c.bf16 %v1768_v48, %v1764_v41  ;;  %v5224_v9 = vpack.c.bf16 %v1770_v56, %v1766_v46 }
 0x147   :  { %v1438_v10 = vmul.f32 %v5215_v15, %v734_v45  ;;  %v1440_v18 = vmul.f32 %v5215_v15, %v927_v62  ;;  %v736_v20 = vpop.f32.mrb[26].mxu0  ;;  %v929_v21 = vpop.f32.mrb[26].mxu1  ;;  %v1873_v22 = vpack.c.bf16 %v1769_v57, %v1765_v52  ;;  %2524 = vmatpush1.bf16.msra.mxu1 %v4061_v11  ;;  %v5231_v24 = vpack.c.bf16 %v1771_v60, %v1767_v54  ;;  %v4067_v57 = vld [vmem:[%s6221_s4 + $0x1b0] ss:$8 sps:$4 sm:$0xff]   ;;  %v4072_v62 = vld [vmem:[%s6221_s4 + $0x1c4] ss:$8 sps:$4 sm:$0xff]  }
 0x148   :  { %v1624_v25 = vadd.f32 %v5005_v16, %v1437_v43  ;;  %v1626_v26 = vadd.f32 %v5007_v35, %v1439_v7  ;;  %v1442_v28 = vmul.f32 %v5217_v3, %v736_v20  ;;  %v1444_v37 = vmul.f32 %v5217_v3, %v929_v21  ;;  %v738_v8 = vpop.f32.mrb[27].mxu0  ;;  %v931_v40 = vpop.f32.mrb[27].mxu1  ;;  %2525 = vmatprep.subr.bf16.mxu1 %v4066_v49 }
 0x149   :  { %v1625_v11 = vadd.f32 %v5011_v53, %v1438_v10  ;;  %v1627_v41 = vadd.f32 %v5013_v61, %v1440_v18  ;;  %v1443_v46 = vmul.f32 %v5217_v3, %v738_v8  ;;  %v1445_v48 = vmul.f32 %v5217_v3, %v931_v40  ;;  %2394 = vmatprep.mubr.bf16.mxu1 %v1873_v22  ;;  %v5251_v60 = vpop.permute.xlu0 %1289  ;;  %v5253_v1 = vpop.permute.xlu1 %1294 }
 0x14a   :  { %v1629_v56 = vadd.f32 %v5005_v16, %v1442_v28  ;;  %v1631_v52 = vadd.f32 %v5007_v35, %v1444_v37  ;;  %2395 = vmatmul.mubr.bf16.gmra.mrb[84].mxu1 %v1872_v38  ;;  %6264 = vst [vmem:[#allocation11_spill] sm:$0xff] %v5251_v60  ;;  %6265 = vst [vmem:[#allocation12_spill] sm:$0xff] %v5253_v1  ;;  %v1772_v6 = vmax.f32 %v1624_v25, 0.0  ;;  %v1774_v43 = vmax.f32 %v1626_v26, 0.0 }
 0x14b   :  { %v1630_v49 = vadd.f32 %v5011_v53, %v1443_v46  ;;  %v1632_v54 = vadd.f32 %v5013_v61, %v1445_v48  ;;  %2526 = vmatpush1.bf16.msra.mxu1 %v4064_v23  ;;  %v1773_v38 = vmax.f32 %v1625_v11, 0.0  ;;  %v1775_v10 = vmax.f32 %v1627_v41, 0.0  ;;  %v4070_v48 = vld [vmem:[%s6221_s4 + $0x1c0] ss:$8 sps:$4 sm:$0xff]  }
 0x14c   :  { %v1776_v7 = vmax.f32 %v1629_v56, 0.0  ;;  %v1778_v45 = vmax.f32 %v1631_v52, 0.0  ;;  %2527 = vmatprep.subr.bf16.mxu1 %v4069_v55 }
 0x14d   :  { %v1777_v18 = vmax.f32 %v1630_v49, 0.0  ;;  %v1779_v20 = vmax.f32 %v1632_v54, 0.0  ;;  %v742_v21 = vpop.f32.mrb[28].mxu0  ;;  %v935_v22 = vpop.f32.mrb[28].mxu1 }
 0x14e   :  { %v1447_v23 = vmul.f32 %v5251_v60, %v742_v21  ;;  %v1449_v28 = vmul.f32 %v5251_v60, %v935_v22  ;;  %v744_v37 = vpop.f32.mrb[29].mxu0  ;;  %v937_v25 = vpop.f32.mrb[29].mxu1  ;;  %v1876_v26 = vpack.c.bf16 %v1776_v7, %v1772_v6  ;;  %v5260_v8 = vpack.c.bf16 %v1778_v45, %v1774_v43 }
 0x14f   :  { %v1448_v40 = vmul.f32 %v5251_v60, %v744_v37  ;;  %v1450_v55 = vmul.f32 %v5251_v60, %v937_v25  ;;  %v746_v46 = vpop.f32.mrb[30].mxu0  ;;  %v939_v11 = vpop.f32.mrb[30].mxu1  ;;  %v1877_v41 = vpack.c.bf16 %v1777_v18, %v1773_v38  ;;  %2528 = vmatpush1.bf16.msra.mxu1 %v4067_v57  ;;  %v5267_v56 = vpack.c.bf16 %v1779_v20, %v1775_v10  ;;  %v4075_v57 = vld [vmem:[%s6221_s4 + $0x1d4] ss:$8 sps:$4 sm:$0xff]  }
 0x150   :  { %v1634_v52 = vadd.f32 %v5005_v16, %v1447_v23  ;;  %v1636_v49 = vadd.f32 %v5007_v35, %v1449_v28  ;;  %v1452_v54 = vmul.f32 %v5253_v1, %v746_v46  ;;  %v1454_v6 = vmul.f32 %v5253_v1, %v939_v11  ;;  %v748_v43 = vpop.f32.mrb[31].mxu0  ;;  %v941_v7 = vpop.f32.mrb[31].mxu1  ;;  %2529 = vmatprep.subr.bf16.mxu1 %v4072_v62  ;;  %v4073_v23 = vld [vmem:[%s6221_s4 + $0x1d0] ss:$8 sps:$4 sm:$0xff]  }
 0x151   :  { %v1635_v45 = vadd.f32 %v5011_v53, %v1448_v40  ;;  %v1637_v38 = vadd.f32 %v5013_v61, %v1450_v55  ;;  %v1453_v10 = vmul.f32 %v5253_v1, %v748_v43  ;;  %v1455_v18 = vmul.f32 %v5253_v1, %v941_v7  ;;  %2404 = vmatprep.mubr.bf16.mxu1 %v1877_v41  ;;  %v5287_v28 = vpop.permute.xlu0 %1299  ;;  %v5289_v37 = vpop.permute.xlu1 %1304 }
 0x152   :  { %v1639_v20 = vadd.f32 %v5005_v16, %v1452_v54  ;;  %v1641_v21 = vadd.f32 %v5007_v35, %v1454_v6  ;;  %2405 = vmatmul.mubr.bf16.gmra.mrb[88].mxu1 %v1876_v26  ;;  %6266 = vst [vmem:[#allocation13_spill] sm:$0xff] %v5287_v28  ;;  %6267 = vst [vmem:[#allocation14_spill] sm:$0xff] %v5289_v37  ;;  %v1780_v25 = vmax.f32 %v1634_v52, 0.0  ;;  %v1782_v40 = vmax.f32 %v1636_v49, 0.0  ;;  %v4078_v26 = vld [vmem:[%s6221_s4 + $0x1e4] ss:$8 sps:$4 sm:$0xff]  }
 0x153   :  { %v1640_v62 = vadd.f32 %v5011_v53, %v1453_v10  ;;  %v1642_v22 = vadd.f32 %v5013_v61, %v1455_v18  ;;  %2530 = vmatpush1.bf16.msra.mxu1 %v4070_v48  ;;  %v1781_v11 = vmax.f32 %v1635_v45, 0.0  ;;  %v1783_v41 = vmax.f32 %v1637_v38, 0.0 }
 0x154   :  { %v1784_v55 = vmax.f32 %v1639_v20, 0.0  ;;  %v1786_v46 = vmax.f32 %v1641_v21, 0.0  ;;  %2531 = vmatprep.subr.bf16.mxu1 %v4075_v57 }
 0x155   :  { %v1785_v48 = vmax.f32 %v1640_v62, 0.0  ;;  %v1787_v54 = vmax.f32 %v1642_v22, 0.0  ;;  %v752_v6 = vpop.f32.mrb[32].mxu0  ;;  %v945_v43 = vpop.f32.mrb[32].mxu1  ;;  %v4076_v62 = vld [vmem:[%s6221_s4 + $0x1e0] ss:$8 sps:$4 sm:$0xff]  }
 0x156   :  { %v1457_v7 = vmul.f32 %v5287_v28, %v752_v6  ;;  %v1459_v10 = vmul.f32 %v5287_v28, %v945_v43  ;;  %v754_v18 = vpop.f32.mrb[33].mxu0  ;;  %v947_v52 = vpop.f32.mrb[33].mxu1  ;;  %v1880_v49 = vpack.c.bf16 %v1784_v55, %v1780_v25  ;;  %v5296_v20 = vpack.c.bf16 %v1786_v46, %v1782_v40 }
 0x157   :  { %v1458_v57 = vmul.f32 %v5287_v28, %v754_v18  ;;  %v1460_v21 = vmul.f32 %v5287_v28, %v947_v52  ;;  %v756_v51 = vpop.f32.mrb[34].mxu0  ;;  %v949_v45 = vpop.f32.mrb[34].mxu1  ;;  %v1881_v38 = vpack.c.bf16 %v1785_v48, %v1781_v11  ;;  %2532 = vmatpush1.bf16.msra.mxu1 %v4073_v23  ;;  %v5303_v22 = vpack.c.bf16 %v1787_v54, %v1783_v41  ;;  %v4081_v23 = vld [vmem:[%s6221_s4 + $0x1f4] ss:$8 sps:$4 sm:$0xff]   ;;  %v4079_v18 = vld [vmem:[%s6221_s4 + $0x1f0] ss:$8 sps:$4 sm:$0xff]  }
 0x158   :  { %v1644_v6 = vadd.f32 %v5005_v16, %v1457_v7  ;;  %v1646_v25 = vadd.f32 %v5007_v35, %v1459_v10  ;;  %v1462_v40 = vmul.f32 %v5289_v37, %v756_v51  ;;  %v1464_v55 = vmul.f32 %v5289_v37, %v949_v45  ;;  %v758_v46 = vpop.f32.mrb[35].mxu0  ;;  %v951_v43 = vpop.f32.mrb[35].mxu1  ;;  %2533 = vmatprep.subr.bf16.mxu1 %v4078_v26 }
 0x159   :  { %v1645_v11 = vadd.f32 %v5011_v53, %v1458_v57  ;;  %v1647_v41 = vadd.f32 %v5013_v61, %v1460_v21  ;;  %v1463_v48 = vmul.f32 %v5289_v37, %v758_v46  ;;  %v1465_v54 = vmul.f32 %v5289_v37, %v951_v43  ;;  %2414 = vmatprep.mubr.bf16.mxu1 %v1881_v38  ;;  %v5323_v52 = vpop.permute.xlu0 %1309  ;;  %v5325_v57 = vpop.permute.xlu1 %1314 }
 0x15a   :  { %v1649_v51 = vadd.f32 %v5005_v16, %v1462_v40  ;;  %v1651_v7 = vadd.f32 %v5007_v35, %v1464_v55  ;;  %2415 = vmatmul.mubr.bf16.gmra.mrb[92].mxu1 %v1880_v49  ;;  %6268 = vst [vmem:[#allocation15_spill] sm:$0xff] %v5323_v52  ;;  %6269 = vst [vmem:[#allocation16_spill] sm:$0xff] %v5325_v57  ;;  %v1788_v21 = vmax.f32 %v1644_v6, 0.0  ;;  %v1790_v45 = vmax.f32 %v1646_v25, 0.0 }
 0x15b   :  { %v1650_v26 = vadd.f32 %v5011_v53, %v1463_v48  ;;  %v1652_v10 = vadd.f32 %v5013_v61, %v1465_v54  ;;  %2534 = vmatpush1.bf16.msra.mxu1 %v4076_v62  ;;  %v1789_v55 = vmax.f32 %v1645_v11, 0.0  ;;  %v1791_v49 = vmax.f32 %v1647_v41, 0.0 }
 0x15c   :  { %v1792_v38 = vmax.f32 %v1649_v51, 0.0  ;;  %v1794_v40 = vmax.f32 %v1651_v7, 0.0  ;;  %2535 = vmatprep.subr.bf16.mxu1 %v4081_v23 }
 0x15d   :  { %v1793_v46 = vmax.f32 %v1650_v26, 0.0  ;;  %v1795_v43 = vmax.f32 %v1652_v10, 0.0  ;;  %v762_v48 = vpop.f32.mrb[36].mxu0  ;;  %v955_v54 = vpop.f32.mrb[36].mxu1 }
 0x15e   :  { %v1467_v62 = vmul.f32 %v5323_v52, %v762_v48  ;;  %v1469_v47 = vmul.f32 %v5323_v52, %v955_v54  ;;  %v764_v27 = vpop.f32.mrb[37].mxu0  ;;  %v957_v37 = vpop.f32.mrb[37].mxu1  ;;  %v1884_v28 = vpack.c.bf16 %v1792_v38, %v1788_v21  ;;  %v5329_v1 = vpack.c.bf16 %v1794_v40, %v1790_v45 }
 0x15f   :  { %v1468_v6 = vmul.f32 %v5323_v52, %v764_v27  ;;  %v1470_v25 = vmul.f32 %v5323_v52, %v957_v37  ;;  %v766_v23 = vpop.f32.mrb[38].mxu0  ;;  %v959_v11 = vpop.f32.mrb[38].mxu1  ;;  %v1885_v41 = vpack.c.bf16 %v1793_v46, %v1789_v55  ;;  %2536 = vmatpush1.bf16.msra.mxu1 %v4079_v18  ;;  %v5333_v51 = vpack.c.bf16 %v1795_v43, %v1791_v49 }
 0x160   :  { %v1654_v7 = vadd.f32 %v5005_v16, %v1467_v62  ;;  %v1656_v26 = vadd.f32 %v5007_v35, %v1469_v47  ;;  %v1472_v10 = vmul.f32 %v5325_v57, %v766_v23  ;;  %v1474_v21 = vmul.f32 %v5325_v57, %v959_v11  ;;  %v768_v45 = vpop.f32.mrb[39].mxu0  ;;  %v961_v38 = vpop.f32.mrb[39].mxu1 }
 0x161   :  { %v1655_v27 = vadd.f32 %v5011_v53, %v1468_v6  ;;  %v1657_v37 = vadd.f32 %v5013_v61, %v1470_v25  ;;  %v1473_v40 = vmul.f32 %v5325_v57, %v768_v45  ;;  %v1475_v18 = vmul.f32 %v5325_v57, %v961_v38  ;;  %2424 = vmatprep.mubr.bf16.mxu1 %v1885_v41  ;;  %v5347_v43 = vpop.permute.xlu0 %1319  ;;  %v5349_v48 = vpop.permute.xlu1 %1324 }
 0x162   :  { %v1659_v55 = vadd.f32 %v5005_v16, %v1472_v10  ;;  %v1661_v49 = vadd.f32 %v5007_v35, %v1474_v21  ;;  %2425 = vmatmul.mubr.bf16.gmra.mrb[96].mxu1 %v1884_v28  ;;  %6270 = vst [vmem:[#allocation17_spill] sm:$0xff] %v5347_v43  ;;  %6271 = vst [vmem:[#allocation18_spill] sm:$0xff] %v5349_v48  ;;  %v1796_v54 = vmax.f32 %v1654_v7, 0.0  ;;  %v1798_v62 = vmax.f32 %v1656_v26, 0.0 }
 0x163   :  { %v1660_v47 = vadd.f32 %v5011_v53, %v1473_v40  ;;  %v1662_v46 = vadd.f32 %v5013_v61, %v1475_v18  ;;  %v1797_v23 = vmax.f32 %v1655_v27, 0.0  ;;  %v1799_v11 = vmax.f32 %v1657_v37, 0.0 }
 0x164   :  { %v1800_v6 = vmax.f32 %v1659_v55, 0.0  ;;  %v1802_v25 = vmax.f32 %v1661_v49, 0.0 }
 0x165   :  { %v1801_v41 = vmax.f32 %v1660_v47, 0.0  ;;  %v1803_v45 = vmax.f32 %v1662_v46, 0.0  ;;  %v772_v10 = vpop.f32.mrb[40].mxu0  ;;  %v965_v38 = vpop.f32.mrb[40].mxu1 }
 0x166   :  { %v1477_v28 = vmul.f32 %v5347_v43, %v772_v10  ;;  %v1479_v21 = vmul.f32 %v5347_v43, %v965_v38  ;;  %v774_v40 = vpop.f32.mrb[41].mxu0  ;;  %v967_v18 = vpop.f32.mrb[41].mxu1  ;;  %v1888_v57 = vpack.c.bf16 %v1800_v6, %v1796_v54  ;;  %v5353_v52 = vpack.c.bf16 %v1802_v25, %v1798_v62 }
 0x167   :  { %v1478_v7 = vmul.f32 %v5347_v43, %v774_v40  ;;  %v1480_v26 = vmul.f32 %v5347_v43, %v967_v18  ;;  %v776_v55 = vpop.f32.mrb[42].mxu0  ;;  %v969_v27 = vpop.f32.mrb[42].mxu1  ;;  %v1889_v37 = vpack.c.bf16 %v1801_v41, %v1797_v23  ;;  %v5357_v49 = vpack.c.bf16 %v1803_v45, %v1799_v11 }
 0x168   :  { %v1664_v47 = vadd.f32 %v5005_v16, %v1477_v28  ;;  %v1666_v46 = vadd.f32 %v5007_v35, %v1479_v21  ;;  %v1482_v10 = vmul.f32 %v5349_v48, %v776_v55  ;;  %v1484_v38 = vmul.f32 %v5349_v48, %v969_v27  ;;  %v778_v54 = vpop.f32.mrb[43].mxu0  ;;  %v971_v62 = vpop.f32.mrb[43].mxu1 }
 0x169   :  { %v1665_v6 = vadd.f32 %v5011_v53, %v1478_v7  ;;  %v1667_v25 = vadd.f32 %v5013_v61, %v1480_v26  ;;  %v1483_v40 = vmul.f32 %v5349_v48, %v778_v54  ;;  %v1485_v23 = vmul.f32 %v5349_v48, %v971_v62  ;;  %2434 = vmatprep.mubr.bf16.mxu1 %v1889_v37  ;;  %v5371_v21 = vpop.permute.xlu0 %1329  ;;  %v5373_v18 = vpop.permute.xlu1 %1334 }
 0x16a   :  { %v1669_v11 = vadd.f32 %v5005_v16, %v1482_v10  ;;  %v1671_v41 = vadd.f32 %v5007_v35, %v1484_v38  ;;  %2435 = vmatmul.mubr.bf16.gmra.mrb[100].mxu1 %v1888_v57  ;;  %6272 = vst [vmem:[#allocation19_spill] sm:$0xff] %v5371_v21  ;;  %6273 = vst [vmem:[#allocation20_spill] sm:$0xff] %v5373_v18  ;;  %v1804_v7 = vmax.f32 %v1664_v47, 0.0  ;;  %v1806_v26 = vmax.f32 %v1666_v46, 0.0 }
 0x16b   :  { %v1670_v45 = vadd.f32 %v5011_v53, %v1483_v40  ;;  %v1672_v28 = vadd.f32 %v5013_v61, %v1485_v23  ;;  %v1805_v54 = vmax.f32 %v1665_v6, 0.0  ;;  %v1807_v62 = vmax.f32 %v1667_v25, 0.0 }
 0x16c   :  { %v1808_v55 = vmax.f32 %v1669_v11, 0.0  ;;  %v1810_v27 = vmax.f32 %v1671_v41, 0.0 }
 0x16d   :  { %v1809_v37 = vmax.f32 %v1670_v45, 0.0  ;;  %v1811_v48 = vmax.f32 %v1672_v28, 0.0  ;;  %v782_v10 = vpop.f32.mrb[44].mxu0  ;;  %v975_v43 = vpop.f32.mrb[44].mxu1 }
 0x16e   :  { %v1487_v57 = vmul.f32 %v5371_v21, %v782_v10  ;;  %v1489_v38 = vmul.f32 %v5371_v21, %v975_v43  ;;  %v784_v40 = vpop.f32.mrb[45].mxu0  ;;  %v977_v23 = vpop.f32.mrb[45].mxu1  ;;  %v1892_v60 = vpack.c.bf16 %v1808_v55, %v1804_v7  ;;  %v5377_v3 = vpack.c.bf16 %v1810_v27, %v1806_v26 }
 0x16f   :  { %v1488_v47 = vmul.f32 %v5371_v21, %v784_v40  ;;  %v1490_v46 = vmul.f32 %v5371_v21, %v977_v23  ;;  %v786_v11 = vpop.f32.mrb[46].mxu0  ;;  %v979_v6 = vpop.f32.mrb[46].mxu1  ;;  %v1893_v25 = vpack.c.bf16 %v1809_v37, %v1805_v54  ;;  %v5381_v41 = vpack.c.bf16 %v1811_v48, %v1807_v62 }
 0x170   :  { %v1674_v45 = vadd.f32 %v5005_v16, %v1487_v57  ;;  %v1676_v28 = vadd.f32 %v5007_v35, %v1489_v38  ;;  %v1492_v43 = vmul.f32 %v5373_v18, %v786_v11  ;;  %v1494_v10 = vmul.f32 %v5373_v18, %v979_v6  ;;  %v788_v7 = vpop.f32.mrb[47].mxu0  ;;  %v981_v26 = vpop.f32.mrb[47].mxu1 }
 0x171   :  { %v1675_v55 = vadd.f32 %v5011_v53, %v1488_v47  ;;  %v1677_v27 = vadd.f32 %v5013_v61, %v1490_v46  ;;  %v1493_v40 = vmul.f32 %v5373_v18, %v788_v7  ;;  %v1495_v54 = vmul.f32 %v5373_v18, %v981_v26  ;;  %2444 = vmatprep.mubr.bf16.mxu1 %v1893_v25  ;;  %v5395_v38 = vpop.permute.xlu0 %1339  ;;  %v5397_v23 = vpop.permute.xlu1 %1344 }
 0x172   :  { %v1679_v48 = vadd.f32 %v5005_v16, %v1492_v43  ;;  %v1681_v62 = vadd.f32 %v5007_v35, %v1494_v10  ;;  %2445 = vmatmul.mubr.bf16.gmra.mrb[104].mxu1 %v1892_v60  ;;  %6274 = vst [vmem:[#allocation21_spill] sm:$0xff] %v5395_v38  ;;  %6275 = vst [vmem:[#allocation22_spill] sm:$0xff] %v5397_v23  ;;  %v1812_v47 = vmax.f32 %v1674_v45, 0.0  ;;  %v1814_v46 = vmax.f32 %v1676_v28, 0.0 }
 0x173   :  { %v1680_v37 = vadd.f32 %v5011_v53, %v1493_v40  ;;  %v1682_v57 = vadd.f32 %v5013_v61, %v1495_v54  ;;  %v1813_v7 = vmax.f32 %v1675_v55, 0.0  ;;  %v1815_v26 = vmax.f32 %v1677_v27, 0.0 }
 0x174   :  { %v1816_v11 = vmax.f32 %v1679_v48, 0.0  ;;  %v1818_v6 = vmax.f32 %v1681_v62, 0.0 }
 0x175   :  { %v1817_v25 = vmax.f32 %v1680_v37, 0.0  ;;  %v1819_v18 = vmax.f32 %v1682_v57, 0.0  ;;  %v792_v43 = vpop.f32.mrb[48].mxu0  ;;  %v985_v21 = vpop.f32.mrb[48].mxu1 }
 0x176   :  { %v1497_v60 = vmul.f32 %v5395_v38, %v792_v43  ;;  %v1499_v10 = vmul.f32 %v5395_v38, %v985_v21  ;;  %v794_v40 = vpop.f32.mrb[49].mxu0  ;;  %v987_v54 = vpop.f32.mrb[49].mxu1  ;;  %v1896_v15 = vpack.c.bf16 %v1816_v11, %v1812_v47  ;;  %v5401_v2 = vpack.c.bf16 %v1818_v6, %v1814_v46 }
 0x177   :  { %v1498_v45 = vmul.f32 %v5395_v38, %v794_v40  ;;  %v1500_v28 = vmul.f32 %v5395_v38, %v987_v54  ;;  %v796_v48 = vpop.f32.mrb[50].mxu0  ;;  %v989_v55 = vpop.f32.mrb[50].mxu1  ;;  %v1897_v27 = vpack.c.bf16 %v1817_v25, %v1813_v7  ;;  %v5405_v62 = vpack.c.bf16 %v1819_v18, %v1815_v26 }
 0x178   :  { %v1684_v37 = vadd.f32 %v5005_v16, %v1497_v60  ;;  %v1686_v57 = vadd.f32 %v5007_v35, %v1499_v10  ;;  %v1502_v21 = vmul.f32 %v5397_v23, %v796_v48  ;;  %v1504_v43 = vmul.f32 %v5397_v23, %v989_v55  ;;  %v798_v47 = vpop.f32.mrb[51].mxu0  ;;  %v991_v46 = vpop.f32.mrb[51].mxu1 }
 0x179   :  { %v1685_v11 = vadd.f32 %v5011_v53, %v1498_v45  ;;  %v1687_v6 = vadd.f32 %v5013_v61, %v1500_v28  ;;  %v1503_v40 = vmul.f32 %v5397_v23, %v798_v47  ;;  %v1505_v7 = vmul.f32 %v5397_v23, %v991_v46  ;;  %2454 = vmatprep.mubr.bf16.mxu1 %v1897_v27  ;;  %v5419_v10 = vpop.permute.xlu0 %1349  ;;  %v5421_v54 = vpop.permute.xlu1 %1354 }
 0x17a   :  { %v1689_v18 = vadd.f32 %v5005_v16, %v1502_v21  ;;  %v1691_v26 = vadd.f32 %v5007_v35, %v1504_v43  ;;  %2455 = vmatmul.mubr.bf16.gmra.mrb[108].mxu1 %v1896_v15  ;;  %6276 = vst [vmem:[#allocation23_spill] sm:$0xff] %v5419_v10  ;;  %6277 = vst [vmem:[#allocation24_spill] sm:$0xff] %v5421_v54  ;;  %v1820_v45 = vmax.f32 %v1684_v37, 0.0  ;;  %v1822_v28 = vmax.f32 %v1686_v57, 0.0 }
 0x17b   :  { %v1690_v25 = vadd.f32 %v5011_v53, %v1503_v40  ;;  %v1692_v60 = vadd.f32 %v5013_v61, %v1505_v7  ;;  %v1821_v47 = vmax.f32 %v1685_v11, 0.0  ;;  %v1823_v46 = vmax.f32 %v1687_v6, 0.0 }
 0x17c   :  { %v1824_v48 = vmax.f32 %v1689_v18, 0.0  ;;  %v1826_v55 = vmax.f32 %v1691_v26, 0.0 }
 0x17d   :  { %v1825_v27 = vmax.f32 %v1690_v25, 0.0  ;;  %v1827_v23 = vmax.f32 %v1692_v60, 0.0  ;;  %v802_v21 = vpop.f32.mrb[52].mxu0  ;;  %v995_v38 = vpop.f32.mrb[52].mxu1 }
 0x17e   :  { %v1507_v15 = vmul.f32 %v5419_v10, %v802_v21  ;;  %v1509_v43 = vmul.f32 %v5419_v10, %v995_v38  ;;  %v804_v40 = vpop.f32.mrb[53].mxu0  ;;  %v997_v7 = vpop.f32.mrb[53].mxu1  ;;  %v1900_v39 = vpack.c.bf16 %v1824_v48, %v1820_v45  ;;  %v5425_v33 = vpack.c.bf16 %v1826_v55, %v1822_v28 }
 0x17f   :  { %v1508_v37 = vmul.f32 %v5419_v10, %v804_v40  ;;  %v1510_v57 = vmul.f32 %v5419_v10, %v997_v7  ;;  %v806_v18 = vpop.f32.mrb[54].mxu0  ;;  %v999_v11 = vpop.f32.mrb[54].mxu1  ;;  %v1901_v6 = vpack.c.bf16 %v1825_v27, %v1821_v47  ;;  %v5429_v26 = vpack.c.bf16 %v1827_v23, %v1823_v46 }
 0x180   :  { %v1694_v25 = vadd.f32 %v5005_v16, %v1507_v15  ;;  %v1696_v60 = vadd.f32 %v5007_v35, %v1509_v43  ;;  %v1512_v38 = vmul.f32 %v5421_v54, %v806_v18  ;;  %v1514_v21 = vmul.f32 %v5421_v54, %v999_v11  ;;  %v808_v45 = vpop.f32.mrb[55].mxu0  ;;  %v1001_v28 = vpop.f32.mrb[55].mxu1 }
 0x181   :  { %v1695_v48 = vadd.f32 %v5011_v53, %v1508_v37  ;;  %v1697_v55 = vadd.f32 %v5013_v61, %v1510_v57  ;;  %v1513_v40 = vmul.f32 %v5421_v54, %v808_v45  ;;  %v1515_v47 = vmul.f32 %v5421_v54, %v1001_v28  ;;  %2464 = vmatprep.mubr.bf16.mxu1 %v1901_v6  ;;  %v5443_v11 = vpop.permute.xlu0 %1359  ;;  %v5445_v57 = vpop.permute.xlu1 %1364 }
 0x182   :  { %v1828_v23 = vmax.f32 %v1694_v25, 0.0  ;;  %v1830_v46 = vmax.f32 %v1696_v60, 0.0  ;;  %v1699_v27 = vadd.f32 %v5005_v16, %v1512_v38  ;;  %v1701_v15 = vadd.f32 %v5007_v35, %v1514_v21  ;;  %2465 = vmatmul.mubr.bf16.gmra.mrb[112].mxu1 %v1900_v39  ;;  %6278 = vst [vmem:[#allocation25_spill] sm:$0xff] %v5443_v11  ;;  %6279 = vst [vmem:[#allocation26_spill] sm:$0xff] %v5445_v57  ;;  %v4082_v39 = vld [vmem:[%s6223_s6 + $0x40] sm:$0xff]  }
 0x183   :  { %v1829_v43 = vmax.f32 %v1695_v48, 0.0  ;;  %v1831_v7 = vmax.f32 %v1697_v55, 0.0  ;;  %v1700_v18 = vadd.f32 %v5011_v53, %v1513_v40  ;;  %v1702_v37 = vadd.f32 %v5013_v61, %v1515_v47  ;;  %v4083_v38 = vld [vmem:[%s6223_s6] sm:$0xff]   ;;  %3631 = vmatprep.subr.bf16.mxu0 %v4082_v39 }
 0x184   :  { %v1832_v45 = vmax.f32 %v1699_v27, 0.0  ;;  %v1834_v28 = vmax.f32 %v1701_v15, 0.0  ;;  %3632 = vmatpush3.bf16.msra.mxu0 %v4083_v38 }
 0x185   :  { %v1833_v6 = vmax.f32 %v1700_v18, 0.0  ;;  %v1835_v25 = vmax.f32 %v1702_v37, 0.0  ;;  %v812_v60 = vpop.f32.mrb[56].mxu0  ;;  %v1005_v54 = vpop.f32.mrb[56].mxu1 }
 0x186   :  { %v1517_v21 = vmul.f32 %v5443_v11, %v812_v60  ;;  %v1519_v48 = vmul.f32 %v5443_v11, %v1005_v54  ;;  %v814_v55 = vpop.f32.mrb[57].mxu0  ;;  %v1007_v40 = vpop.f32.mrb[57].mxu1  ;;  %v1904_v47 = vpack.c.bf16 %v1832_v45, %v1828_v23  ;;  %v5455_v27 = vpack.c.bf16 %v1834_v28, %v1830_v46 }
 0x187   :  { %v1518_v15 = vmul.f32 %v5443_v11, %v814_v55  ;;  %v1520_v18 = vmul.f32 %v5443_v11, %v1007_v40  ;;  %v816_v37 = vpop.f32.mrb[58].mxu0  ;;  %v1009_v10 = vpop.f32.mrb[58].mxu1  ;;  %v1905_v29 = vpack.c.bf16 %v1833_v6, %v1829_v43  ;;  %v5459_v32 = vpack.c.bf16 %v1835_v25, %v1831_v7 }
 0x188   :  { %v1704_v31 = vadd.f32 %v5005_v16, %v1517_v21  ;;  %v1706_v60 = vadd.f32 %v5007_v35, %v1519_v48  ;;  %v1522_v54 = vmul.f32 %v5445_v57, %v816_v37  ;;  %v1524_v23 = vmul.f32 %v5445_v57, %v1009_v10  ;;  %v818_v46 = vpop.f32.mrb[59].mxu0  ;;  %v1011_v45 = vpop.f32.mrb[59].mxu1 }
 0x189   :  { %v1705_v28 = vadd.f32 %v5011_v53, %v1518_v15  ;;  %v1707_v55 = vadd.f32 %v5013_v61, %v1520_v18  ;;  %v1523_v43 = vmul.f32 %v5445_v57, %v818_v46  ;;  %v1525_v7 = vmul.f32 %v5445_v57, %v1011_v45  ;;  %2474 = vmatprep.mubr.bf16.mxu1 %v1905_v29  ;;  %v5473_v15 = vpop.permute.xlu0 %1369  ;;  %v5475_v18 = vpop.permute.xlu1 %1374 }
 0x18a   :  { %v1836_v6 = vmax.f32 %v1704_v31, 0.0  ;;  %v1838_v25 = vmax.f32 %v1706_v60, 0.0  ;;  %v1709_v39 = vadd.f32 %v5005_v16, %v1522_v54  ;;  %v1711_v21 = vadd.f32 %v5007_v35, %v1524_v23  ;;  %2475 = vmatmul.mubr.bf16.gmra.mrb[116].mxu1 %v1904_v47 }
 0x18b   :  { %v1837_v10 = vmax.f32 %v1705_v28, 0.0  ;;  %v1839_v48 = vmax.f32 %v1707_v55, 0.0  ;;  %v1710_v38 = vadd.f32 %v5011_v53, %v1523_v43  ;;  %v1712_v40 = vadd.f32 %v5013_v61, %v1525_v7 }
 0x18c   :  { %v1840_v37 = vmax.f32 %v1709_v39, 0.0  ;;  %v1842_v46 = vmax.f32 %v1711_v21, 0.0 }
 0x18d   :  { %v1841_v29 = vmax.f32 %v1710_v38, 0.0  ;;  %v1843_v31 = vmax.f32 %v1712_v40, 0.0  ;;  %v822_v60 = vpop.f32.mrb[60].mxu0  ;;  %v1015_v45 = vpop.f32.mrb[60].mxu1 }
 0x18e   :  { %v1527_v54 = vmul.f32 %v5473_v15, %v822_v60  ;;  %v1529_v47 = vmul.f32 %v5473_v15, %v1015_v45  ;;  %v824_v23 = vpop.f32.mrb[61].mxu0  ;;  %v1017_v28 = vpop.f32.mrb[61].mxu1  ;;  %v1908_v55 = vpack.c.bf16 %v1840_v37, %v1836_v6  ;;  %v5479_v43 = vpack.c.bf16 %v1842_v46, %v1838_v25 }
 0x18f   :  { %v1528_v7 = vmul.f32 %v5473_v15, %v824_v23  ;;  %v1530_v57 = vmul.f32 %v5473_v15, %v1017_v28  ;;  %v826_v11 = vpop.f32.mrb[62].mxu0  ;;  %v1019_v39 = vpop.f32.mrb[62].mxu1  ;;  %v1909_v21 = vpack.c.bf16 %v1841_v29, %v1837_v10  ;;  %v5483_v38 = vpack.c.bf16 %v1843_v31, %v1839_v48 }
 0x190   :  { %v1714_v40 = vadd.f32 %v5005_v16, %v1527_v54  ;;  %v1716_v60 = vadd.f32 %v5007_v35, %v1529_v47  ;;  %v1532_v45 = vmul.f32 %v5475_v18, %v826_v11  ;;  %v1534_v36 = vmul.f32 %v5475_v18, %v1019_v39  ;;  %v828_v6 = vpop.f32.mrb[63].mxu0  ;;  %v1021_v25 = vpop.f32.mrb[63].mxu1 }
 0x191   :  { %v1715_v37 = vadd.f32 %v5011_v53, %v1528_v7  ;;  %v1717_v46 = vadd.f32 %v5013_v61, %v1530_v57  ;;  %v1533_v23 = vmul.f32 %v5475_v18, %v828_v6  ;;  %v1535_v10 = vmul.f32 %v5475_v18, %v1021_v25  ;;  %2484 = vmatprep.mubr.bf16.mxu1 %v1909_v21  ;;  %v4084_v57 = vld [vmem:[%s6223_s6 + $0x48] sm:$0xff]  }
 0x192   :  { %v1719_v48 = vadd.f32 %v5005_v16, %v1532_v45  ;;  %v1721_v29 = vadd.f32 %v5007_v35, %v1534_v36  ;;  %2485 = vmatmul.mubr.bf16.gmra.mrb[120].mxu1 %v1908_v55  ;;  %v1844_v31 = vmax.f32 %v1714_v40, 0.0  ;;  %v1846_v11 = vmax.f32 %v1716_v60, 0.0  ;;  %3633 = vmatprep.subr.bf16.mxu0 %v4084_v57  ;;  %v4085_v35 = vld [vmem:[%s6223_s6 + $0x8] sm:$0xff]  }
 0x193   :  { %v1720_v54 = vadd.f32 %v5011_v53, %v1533_v23  ;;  %v1722_v47 = vadd.f32 %v5013_v61, %v1535_v10  ;;  %v1845_v39 = vmax.f32 %v1715_v37, 0.0  ;;  %v1847_v6 = vmax.f32 %v1717_v46, 0.0  ;;  %3634 = vmatpush3.bf16.msra.mxu0 %v4085_v35  ;;  %v4086_v23 = vld [vmem:[%s6223_s6 + $0x50] sm:$0xff]  }
 0x194   :  { %v1848_v28 = vmax.f32 %v1719_v48, 0.0  ;;  %v1850_v7 = vmax.f32 %v1721_v29, 0.0  ;;  %v4087_v10 = vld [vmem:[%s6223_s6 + $0x10] sm:$0xff]   ;;  %v4088_v48 = vld [vmem:[%s6223_s6 + $0x58] sm:$0xff]   ;;  %3635 = vmatprep.subr.bf16.mxu0 %v4086_v23 }
 0x195   :  { %v1849_v21 = vmax.f32 %v1720_v54, 0.0  ;;  %v1851_v25 = vmax.f32 %v1722_v47, 0.0  ;;  %v3535_v16 = vpop.f32.mrb[64].mxu0  ;;  %v4090_v54 = vld [vmem:[%s6223_s6 + $0x60] sm:$0xff]  }
 0x196   :  { %v3536_v36 = vpop.f32.mrb[65].mxu0  ;;  %v1912_v53 = vpack.c.bf16 %v1848_v28, %v1844_v31  ;;  %v5503_v55 = vpack.c.bf16 %v1850_v7, %v1846_v11  ;;  %v4089_v31 = vld [vmem:[%s6223_s6 + $0x18] sm:$0xff]  }
 0x197   :  { %v5505_v61 = vadd.f32 %v3536_v36, %v3535_v16  ;;  %v3538_v40 = vpop.f32.mrb[66].mxu0  ;;  %v1913_v60 = vpack.c.bf16 %v1849_v21, %v1845_v39  ;;  %v5507_v45 = vpack.c.bf16 %v1851_v25, %v1847_v6  ;;  %3636 = vmatpush3.bf16.msra.mxu0 %v4087_v10  ;;  %v4092_v39 = vld [vmem:[%s6223_s6 + $0x68] sm:$0xff]   ;;  %v4094_v16 = vld [vmem:[%s6223_s6 + $0x70] sm:$0xff]  }
 0x198   :  { %v3539_v37 = vpop.f32.mrb[67].mxu0  ;;  %3637 = vmatprep.subr.bf16.mxu0 %v4088_v48  ;;  %v4093_v21 = vld [vmem:[%s6223_s6 + $0x28] sm:$0xff]  }
 0x199   :  { %v5509_v46 = vadd.f32 %v3539_v37, %v3538_v40  ;;  %2494 = vmatprep.mubr.bf16.mxu1 %v1913_v60  ;;  %v4096_v40 = vld [vmem:[%s6223_s6 + $0x78] sm:$0xff]  }
 0x19a   :  { %2495 = vmatmul.mubr.bf16.gmra.mrb[124].mxu1 %v1912_v53  ;;  %v4097_v37 = vld [vmem:[%s6223_s6 + $0x38] sm:$0xff]  }
 0x19b   :  { %2537 = vmatprep.mubr.bf16.mxu1 %v5044_v50  ;;  %3638 = vmatpush3.bf16.msra.mxu0 %v4089_v31  ;;  %v4091_v50 = vld [vmem:[%s6223_s6 + $0x20] sm:$0xff]  }
 0x19c   :  { %3639 = vmatprep.subr.bf16.mxu0 %v4090_v54 }
 0x19d   :  { %v3541_v29 = vpop.f32.mrb[68].mxu0 }
 0x19e   :  { %v3542_v11 = vpop.f32.mrb[69].mxu0 }
 0x19f   :  { %v5527_v47 = vadd.f32 %v3542_v11, %v3541_v29  ;;  %v3544_v57 = vpop.f32.mrb[70].mxu0  ;;  %3640 = vmatpush3.bf16.msra.mxu0 %v4091_v50 }
 0x1a0   :  { %v3545_v28 = vpop.f32.mrb[71].mxu0  ;;  %3641 = vmatprep.subr.bf16.mxu0 %v4092_v39 }
 0x1a1   :  { %v5529_v7 = vadd.f32 %v3545_v28, %v3544_v57 }
 0x1a2   :  { %2538 = vmatmul.mubr.bf16.vlgmr.msra.gmra.mrb[64].mxu1 %v5035_v42 }
 0x1a3   :  { %2547 = vmatprep.mubr.bf16.mxu1 %v5082_v30  ;;  %3642 = vmatpush3.bf16.msra.mxu0 %v4093_v21  ;;  %v4095_v30 = vld [vmem:[%s6223_s6 + $0x30] sm:$0xff]  }
 0x1a4   :  { %3643 = vmatprep.subr.bf16.mxu0 %v4094_v16 }
 0x1a5   :  { %v3547_v6 = vpop.f32.mrb[72].mxu0 }
 0x1a6   :  { %v3548_v25 = vpop.f32.mrb[73].mxu0 }
 0x1a7   :  { %v5545_v42 = vadd.f32 %v3548_v25, %v3547_v6  ;;  %v3550_v35 = vpop.f32.mrb[74].mxu0  ;;  %3644 = vmatpush3.bf16.msra.mxu0 %v4095_v30 }
 0x1a8   :  { %v3551_v36 = vpop.f32.mrb[75].mxu0  ;;  %3645 = vmatprep.subr.bf16.mxu0 %v4096_v40 }
 0x1a9   :  { %v5547_v53 = vadd.f32 %v3551_v36, %v3550_v35 }
 0x1aa   :  { %2548 = vmatmul.mubr.bf16.gmra.mrb[68].mxu1 %v5075_v4 }
 0x1ab   :  { %2557 = vmatprep.mubr.bf16.mxu1 %v5120_v12  ;;  %3646 = vmatpush3.bf16.msra.mxu0 %v4097_v37 }
 0x1ad   :  { %v3553_v60 = vpop.f32.mrb[76].mxu0 }
 0x1ae   :  { %v3554_v23 = vpop.f32.mrb[77].mxu0 }
 0x1af   :  { %v5560_v10 = vadd.f32 %v3554_v23, %v3553_v60  ;;  %v3556_v48 = vpop.f32.mrb[78].mxu0 }
 0x1b0   :  { %v3557_v29 = vpop.f32.mrb[79].mxu0 }
 0x1b1   :  { %v5562_v4 = vadd.f32 %v3557_v29, %v3556_v48 }
 0x1b2   :  { %2558 = vmatmul.mubr.bf16.gmra.mrb[72].mxu1 %v5113_v59 }
 0x1b3   :  { %2567 = vmatprep.mubr.bf16.mxu1 %v5158_v13 }
 0x1b5   :  { %v3559_v12 = vpop.f32.mrb[80].mxu0 }
 0x1b6   :  { %v3560_v31 = vpop.f32.mrb[81].mxu0 }
 0x1b7   :  { %v5566_v11 = vadd.f32 %v3560_v31, %v3559_v12  ;;  %v3562_v54 = vpop.f32.mrb[82].mxu0 }
 0x1b8   :  { %v3563_v57 = vpop.f32.mrb[83].mxu0 }
 0x1b9   :  { %v5568_v28 = vadd.f32 %v3563_v57, %v3562_v54 }
 0x1ba   :  { %2568 = vmatmul.mubr.bf16.gmra.mrb[76].mxu1 %v5151_v58 }
 0x1bb   :  { %2577 = vmatprep.mubr.bf16.mxu1 %v5195_v63 }
 0x1bd   :  { %v3565_v50 = vpop.f32.mrb[84].mxu0 }
 0x1be   :  { %v3566_v39 = vpop.f32.mrb[85].mxu0 }
 0x1bf   :  { %v5572_v6 = vadd.f32 %v3566_v39, %v3565_v50  ;;  %v3568_v21 = vpop.f32.mrb[86].mxu0 }
 0x1c0   :  { %v3569_v59 = vpop.f32.mrb[87].mxu0 }
 0x1c1   :  { %v5574_v25 = vadd.f32 %v3569_v59, %v3568_v21 }
 0x1c2   :  { %2578 = vmatmul.mubr.bf16.gmra.mrb[80].mxu1 %v5188_v5 }
 0x1c3   :  { %2587 = vmatprep.mubr.bf16.mxu1 %v5231_v24 }
 0x1c5   :  { %v3571_v13 = vpop.f32.mrb[88].mxu0 }
 0x1c6   :  { %v3572_v16 = vpop.f32.mrb[89].mxu0 }
 0x1c7   :  { %v5578_v35 = vadd.f32 %v3572_v16, %v3571_v13  ;;  %v3574_v36 = vpop.f32.mrb[90].mxu0 }
 0x1c8   :  { %v3575_v58 = vpop.f32.mrb[91].mxu0 }
 0x1c9   :  { %v5580_v30 = vadd.f32 %v3575_v58, %v3574_v36 }
 0x1ca   :  { %2588 = vmatmul.mubr.bf16.gmra.mrb[84].mxu1 %v5224_v9 }
 0x1cb   :  { %2597 = vmatprep.mubr.bf16.mxu1 %v5267_v56 }
 0x1cd   :  { %v3577_v63 = vpop.f32.mrb[92].mxu0 }
 0x1ce   :  { %v3578_v40 = vpop.f32.mrb[93].mxu0 }
 0x1cf   :  { %v5584_v60 = vadd.f32 %v3578_v40, %v3577_v63  ;;  %v3580_v37 = vpop.f32.mrb[94].mxu0 }
 0x1d0   :  { %v3581_v5 = vpop.f32.mrb[95].mxu0 }
 0x1d1   :  { %v5586_v23 = vadd.f32 %v3581_v5, %v3580_v37 }
 0x1d2   :  { %2598 = vmatmul.mubr.bf16.gmra.mrb[88].mxu1 %v5260_v8 }
 0x1d3   :  { %2607 = vmatprep.mubr.bf16.mxu1 %v5303_v22 }
 0x1d5   :  { %v3583_v24 = vpop.f32.mrb[96].mxu0 }
 0x1d6   :  { %v3584_v48 = vpop.f32.mrb[97].mxu0 }
 0x1d7   :  { %v5590_v29 = vadd.f32 %v3584_v48, %v3583_v24  ;;  %v3586_v12 = vpop.f32.mrb[98].mxu0 }
 0x1d8   :  { %v3587_v9 = vpop.f32.mrb[99].mxu0 }
 0x1d9   :  { %v5592_v31 = vadd.f32 %v3587_v9, %v3586_v12 }
 0x1da   :  { %2608 = vmatmul.mubr.bf16.gmra.mrb[92].mxu1 %v5296_v20 }
 0x1db   :  { %2617 = vmatprep.mubr.bf16.mxu1 %v5333_v51 }
 0x1dd   :  { %v3589_v56 = vpop.f32.mrb[100].mxu0 }
 0x1de   :  { %v3590_v54 = vpop.f32.mrb[101].mxu0 }
 0x1df   :  { %v5596_v57 = vadd.f32 %v3590_v54, %v3589_v56  ;;  %v3592_v50 = vpop.f32.mrb[102].mxu0 }
 0x1e0   :  { %v3593_v8 = vpop.f32.mrb[103].mxu0 }
 0x1e1   :  { %v5598_v39 = vadd.f32 %v3593_v8, %v3592_v50 }
 0x1e2   :  { %2618 = vmatmul.mubr.bf16.gmra.mrb[96].mxu1 %v5329_v1 }
 0x1e3   :  { %2627 = vmatprep.mubr.bf16.mxu1 %v5357_v49 }
 0x1e5   :  { %v3595_v22 = vpop.f32.mrb[104].mxu0 }
 0x1e6   :  { %v3596_v21 = vpop.f32.mrb[105].mxu0 }
 0x1e7   :  { %v5602_v59 = vadd.f32 %v3596_v21, %v3595_v22  ;;  %v3598_v13 = vpop.f32.mrb[106].mxu0 }
 0x1e8   :  { %v3599_v20 = vpop.f32.mrb[107].mxu0 }
 0x1e9   :  { %v5604_v16 = vadd.f32 %v3599_v20, %v3598_v13 }
 0x1ea   :  { %2628 = vmatmul.mubr.bf16.gmra.mrb[100].mxu1 %v5353_v52 }
 0x1eb   :  { %2637 = vmatprep.mubr.bf16.mxu1 %v5381_v41 }
 0x1ed   :  { %v3601_v51 = vpop.f32.mrb[108].mxu0 }
 0x1ee   :  { %v3602_v36 = vpop.f32.mrb[109].mxu0 }
 0x1ef   :  { %v5608_v58 = vadd.f32 %v3602_v36, %v3601_v51  ;;  %v3604_v63 = vpop.f32.mrb[110].mxu0 }
 0x1f0   :  { %v3605_v1 = vpop.f32.mrb[111].mxu0 }
 0x1f1   :  { %v5610_v40 = vadd.f32 %v3605_v1, %v3604_v63  ;;  %v6281_v63 = vsub.s32 1, %v4986_v17 }
 0x1f2   :  { %2638 = vmatmul.mubr.bf16.gmra.mrb[104].mxu1 %v5377_v3 }
 0x1f3   :  { %2647 = vmatprep.mubr.bf16.mxu1 %v5405_v62 }
 0x1f5   :  { %v3607_v49 = vpop.f32.mrb[112].mxu0 }
 0x1f6   :  { %v3608_v37 = vpop.f32.mrb[113].mxu0 }
 0x1f7   :  { %v5614_v5 = vadd.f32 %v3608_v37, %v3607_v49  ;;  %v3610_v24 = vpop.f32.mrb[114].mxu0 }
 0x1f8   :  { %v3611_v52 = vpop.f32.mrb[115].mxu0 }
 0x1f9   :  { %v5616_v48 = vadd.f32 %v3611_v52, %v3610_v24 }
 0x1fa   :  { %2648 = vmatmul.mubr.bf16.gmra.mrb[108].mxu1 %v5401_v2 }
 0x1fb   :  { %2657 = vmatprep.mubr.bf16.mxu1 %v5429_v26 }
 0x1fd   :  { %v3613_v41 = vpop.f32.mrb[116].mxu0 }
 0x1fe   :  { %v3614_v12 = vpop.f32.mrb[117].mxu0 }
 0x1ff   :  { %v5620_v9 = vadd.f32 %v3614_v12, %v3613_v41  ;;  %v3616_v56 = vpop.f32.mrb[118].mxu0 }
 0x200   :  { %v3617_v3 = vpop.f32.mrb[119].mxu0 }
 0x201   :  { %v5622_v54 = vadd.f32 %v3617_v3, %v3616_v56 }
 0x202   :  { %2658 = vmatmul.mubr.bf16.gmra.mrb[112].mxu1 %v5425_v33 }
 0x203   :  { %2667 = vmatprep.mubr.bf16.mxu1 %v5459_v32  ;;  %v1980_v32 = vld [vmem:[%s6224_s5] sm:$0x3] }
 0x204   :  { %v5648_v1 = vrot.slane %v1980_v32, %v6281_v63 }
 0x205   :  { %v3619_v62 = vpop.f32.mrb[120].mxu0 }
 0x206   :  { %v3620_v50 = vpop.f32.mrb[121].mxu0 }
 0x207   :  { %v5626_v8 = vadd.f32 %v3620_v50, %v3619_v62  ;;  %v3622_v22 = vpop.f32.mrb[122].mxu0 }
 0x208   :  { %v3623_v2 = vpop.f32.mrb[123].mxu0 }
 0x209   :  { %v5628_v21 = vadd.f32 %v3623_v2, %v3622_v22 }
 0x20a   :  { %2668 = vmatmul.mubr.bf16.gmra.mrb[116].mxu1 %v5455_v27  ;;  %v6280_v27 = vsub.s32 0, %v4986_v17 }
 0x20b   :  { %2677 = vmatprep.mubr.bf16.mxu1 %v5483_v38 }
 0x20c   :  { %v5644_v38 = vrot.slane %v1980_v32, %v6280_v27 }
 0x20d   :  { %v3625_v26 = vpop.f32.mrb[124].mxu0 }
 0x20e   :  { %v3626_v13 = vpop.f32.mrb[125].mxu0 }
 0x20f   :  { %v5632_v20 = vadd.f32 %v3626_v13, %v3625_v26  ;;  %v3628_v51 = vpop.f32.mrb[126].mxu0 }
 0x210   :  { %v3629_v33 = vpop.f32.mrb[127].mxu0 }
 0x211   :  { %v5634_v36 = vadd.f32 %v3629_v33, %v3628_v51 }
 0x212   :  { %2678 = vmatmul.mubr.bf16.gmra.mrb[120].mxu1 %v5479_v43 }
 0x213   :  { %2687 = vmatprep.mubr.bf16.mxu1 %v5507_v45 }
 0x21a   :  { %2688 = vmatmul.mubr.bf16.gmra.mrb[124].mxu1 %v5503_v55 }
 0x275   :  { %v2539_v49 = vpop.f32.mrb[64].mxu1 }
 0x276   :  { %v3743_v37 = vadd.f32 %v2539_v49, %v5644_v38  ;;  %v2541_v43 = vpop.f32.mrb[65].mxu1 }
 0x277   :  { %v3744_v45 = vadd.f32 %v2541_v43, %v5648_v1  ;;  %v2543_v24 = vpop.f32.mrb[66].mxu1 }
 0x278   :  { %v3745_v55 = vadd.f32 %v2543_v24, %v5644_v38  ;;  %v2545_v52 = vpop.f32.mrb[67].mxu1  ;;  %v2698_v12 = vmax.f32 %v3743_v37, 0.0 }
 0x279   :  { %v3746_v41 = vadd.f32 %v2545_v52, %v5648_v1  ;;  %v2699_v3 = vmax.f32 %v3744_v45, 0.0 }
 0x27a   :  { %v2700_v56 = vmax.f32 %v3745_v55, 0.0 }
 0x27b   :  { %v2701_v62 = vmax.f32 %v3746_v41, 0.0 }
 0x27c   :  { %v2762_v50 = vpack.c.bf16 %v2700_v56, %v2698_v12 }
 0x27d   :  { %v2763_v22 = vpack.c.bf16 %v2701_v62, %v2699_v3  ;;  %v2549_v2 = vpop.f32.mrb[68].mxu1 }
 0x27e   :  { %v3747_v26 = vadd.f32 %v2549_v2, %v5644_v38  ;;  %v2551_v13 = vpop.f32.mrb[69].mxu1 }
 0x27f   :  { %v3748_v51 = vadd.f32 %v2551_v13, %v5648_v1  ;;  %v2553_v33 = vpop.f32.mrb[70].mxu1  ;;  %2961 = vmatprep.mubr.bf16.mxu0 %v2763_v22 }
 0x280   :  { %v3749_v32 = vadd.f32 %v2553_v33, %v5644_v38  ;;  %v2555_v27 = vpop.f32.mrb[71].mxu1  ;;  %2962 = vmatmul.mubr.bf16.vlgmr.msra.gmra.mrb[128].mxu0 %v2762_v50  ;;  %v2702_v49 = vmax.f32 %v3747_v26, 0.0 }
 0x281   :  { %v3750_v63 = vadd.f32 %v2555_v27, %v5648_v1  ;;  %v2703_v43 = vmax.f32 %v3748_v51, 0.0 }
 0x282   :  { %v2704_v37 = vmax.f32 %v3749_v32, 0.0 }
 0x283   :  { %v2705_v45 = vmax.f32 %v3750_v63, 0.0 }
 0x284   :  { %v2764_v24 = vpack.c.bf16 %v2704_v37, %v2702_v49 }
 0x285   :  { %v2765_v55 = vpack.c.bf16 %v2705_v45, %v2703_v43  ;;  %v2559_v52 = vpop.f32.mrb[72].mxu1 }
 0x286   :  { %v3751_v41 = vadd.f32 %v2559_v52, %v5644_v38  ;;  %v2561_v12 = vpop.f32.mrb[73].mxu1 }
 0x287   :  { %v3752_v56 = vadd.f32 %v2561_v12, %v5648_v1  ;;  %v2563_v3 = vpop.f32.mrb[74].mxu1  ;;  %2969 = vmatprep.mubr.bf16.mxu0 %v2765_v55 }
 0x288   :  { %v3753_v62 = vadd.f32 %v2563_v3, %v5644_v38  ;;  %v2565_v22 = vpop.f32.mrb[75].mxu1  ;;  %2970 = vmatmul.mubr.bf16.gmra.mrb[132].mxu0 %v2764_v24  ;;  %v2706_v2 = vmax.f32 %v3751_v41, 0.0 }
 0x289   :  { %v3754_v50 = vadd.f32 %v2565_v22, %v5648_v1  ;;  %v2707_v13 = vmax.f32 %v3752_v56, 0.0 }
 0x28a   :  { %v2708_v26 = vmax.f32 %v3753_v62, 0.0 }
 0x28b   :  { %v2709_v51 = vmax.f32 %v3754_v50, 0.0 }
 0x28c   :  { %v2766_v33 = vpack.c.bf16 %v2708_v26, %v2706_v2 }
 0x28d   :  { %v2767_v32 = vpack.c.bf16 %v2709_v51, %v2707_v13  ;;  %v2569_v27 = vpop.f32.mrb[76].mxu1 }
 0x28e   :  { %v3755_v63 = vadd.f32 %v2569_v27, %v5644_v38  ;;  %v2571_v49 = vpop.f32.mrb[77].mxu1 }
 0x28f   :  { %v3756_v37 = vadd.f32 %v2571_v49, %v5648_v1  ;;  %v2573_v43 = vpop.f32.mrb[78].mxu1  ;;  %2977 = vmatprep.mubr.bf16.mxu0 %v2767_v32 }
 0x290   :  { %v3757_v45 = vadd.f32 %v2573_v43, %v5644_v38  ;;  %v2575_v55 = vpop.f32.mrb[79].mxu1  ;;  %2978 = vmatmul.mubr.bf16.gmra.mrb[136].mxu0 %v2766_v33  ;;  %v2710_v52 = vmax.f32 %v3755_v63, 0.0 }
 0x291   :  { %v3758_v24 = vadd.f32 %v2575_v55, %v5648_v1  ;;  %v2711_v12 = vmax.f32 %v3756_v37, 0.0 }
 0x292   :  { %v2712_v41 = vmax.f32 %v3757_v45, 0.0 }
 0x293   :  { %v2713_v56 = vmax.f32 %v3758_v24, 0.0 }
 0x294   :  { %v2768_v3 = vpack.c.bf16 %v2712_v41, %v2710_v52 }
 0x295   :  { %v2769_v62 = vpack.c.bf16 %v2713_v56, %v2711_v12  ;;  %v2579_v22 = vpop.f32.mrb[80].mxu1 }
 0x296   :  { %v3759_v50 = vadd.f32 %v2579_v22, %v5644_v38  ;;  %v2581_v2 = vpop.f32.mrb[81].mxu1 }
 0x297   :  { %v3760_v26 = vadd.f32 %v2581_v2, %v5648_v1  ;;  %v2583_v13 = vpop.f32.mrb[82].mxu1  ;;  %2985 = vmatprep.mubr.bf16.mxu0 %v2769_v62 }
 0x298   :  { %v3761_v51 = vadd.f32 %v2583_v13, %v5644_v38  ;;  %v2585_v32 = vpop.f32.mrb[83].mxu1  ;;  %2986 = vmatmul.mubr.bf16.gmra.mrb[140].mxu0 %v2768_v3  ;;  %v2714_v27 = vmax.f32 %v3759_v50, 0.0 }
 0x299   :  { %v3762_v33 = vadd.f32 %v2585_v32, %v5648_v1  ;;  %v2715_v49 = vmax.f32 %v3760_v26, 0.0 }
 0x29a   :  { %v2716_v63 = vmax.f32 %v3761_v51, 0.0 }
 0x29b   :  { %v2717_v37 = vmax.f32 %v3762_v33, 0.0 }
 0x29c   :  { %v2770_v43 = vpack.c.bf16 %v2716_v63, %v2714_v27 }
 0x29d   :  { %v2771_v45 = vpack.c.bf16 %v2717_v37, %v2715_v49  ;;  %v2589_v55 = vpop.f32.mrb[84].mxu1 }
 0x29e   :  { %v3763_v24 = vadd.f32 %v2589_v55, %v5644_v38  ;;  %v2591_v52 = vpop.f32.mrb[85].mxu1 }
 0x29f   :  { %v3764_v41 = vadd.f32 %v2591_v52, %v5648_v1  ;;  %v2593_v12 = vpop.f32.mrb[86].mxu1  ;;  %2993 = vmatprep.mubr.bf16.mxu0 %v2771_v45 }
 0x2a0   :  { %v3765_v56 = vadd.f32 %v2593_v12, %v5644_v38  ;;  %v2595_v62 = vpop.f32.mrb[87].mxu1  ;;  %2994 = vmatmul.mubr.bf16.gmra.mrb[144].mxu0 %v2770_v43  ;;  %v2718_v22 = vmax.f32 %v3763_v24, 0.0 }
 0x2a1   :  { %v3766_v3 = vadd.f32 %v2595_v62, %v5648_v1  ;;  %v2719_v2 = vmax.f32 %v3764_v41, 0.0 }
 0x2a2   :  { %v2720_v50 = vmax.f32 %v3765_v56, 0.0 }
 0x2a3   :  { %v2721_v26 = vmax.f32 %v3766_v3, 0.0 }
 0x2a4   :  { %v2772_v13 = vpack.c.bf16 %v2720_v50, %v2718_v22 }
 0x2a5   :  { %v2773_v51 = vpack.c.bf16 %v2721_v26, %v2719_v2  ;;  %v2599_v32 = vpop.f32.mrb[88].mxu1 }
 0x2a6   :  { %v3767_v33 = vadd.f32 %v2599_v32, %v5644_v38  ;;  %v2601_v27 = vpop.f32.mrb[89].mxu1 }
 0x2a7   :  { %v3768_v63 = vadd.f32 %v2601_v27, %v5648_v1  ;;  %v2603_v49 = vpop.f32.mrb[90].mxu1  ;;  %3001 = vmatprep.mubr.bf16.mxu0 %v2773_v51 }
 0x2a8   :  { %v3769_v37 = vadd.f32 %v2603_v49, %v5644_v38  ;;  %v2605_v45 = vpop.f32.mrb[91].mxu1  ;;  %3002 = vmatmul.mubr.bf16.gmra.mrb[148].mxu0 %v2772_v13  ;;  %v2722_v55 = vmax.f32 %v3767_v33, 0.0 }
 0x2a9   :  { %v3770_v43 = vadd.f32 %v2605_v45, %v5648_v1  ;;  %v2723_v52 = vmax.f32 %v3768_v63, 0.0 }
 0x2aa   :  { %v2724_v24 = vmax.f32 %v3769_v37, 0.0 }
 0x2ab   :  { %v2725_v41 = vmax.f32 %v3770_v43, 0.0 }
 0x2ac   :  { %v2774_v12 = vpack.c.bf16 %v2724_v24, %v2722_v55 }
 0x2ad   :  { %v2775_v56 = vpack.c.bf16 %v2725_v41, %v2723_v52  ;;  %v2609_v62 = vpop.f32.mrb[92].mxu1 }
 0x2ae   :  { %v3771_v3 = vadd.f32 %v2609_v62, %v5644_v38  ;;  %v2611_v22 = vpop.f32.mrb[93].mxu1 }
 0x2af   :  { %v3772_v50 = vadd.f32 %v2611_v22, %v5648_v1  ;;  %v2613_v2 = vpop.f32.mrb[94].mxu1  ;;  %3009 = vmatprep.mubr.bf16.mxu0 %v2775_v56 }
 0x2b0   :  { %v3773_v26 = vadd.f32 %v2613_v2, %v5644_v38  ;;  %v2615_v51 = vpop.f32.mrb[95].mxu1  ;;  %3010 = vmatmul.mubr.bf16.gmra.mrb[152].mxu0 %v2774_v12  ;;  %v2726_v32 = vmax.f32 %v3771_v3, 0.0 }
 0x2b1   :  { %v3774_v13 = vadd.f32 %v2615_v51, %v5648_v1  ;;  %v2727_v27 = vmax.f32 %v3772_v50, 0.0 }
 0x2b2   :  { %v2728_v33 = vmax.f32 %v3773_v26, 0.0 }
 0x2b3   :  { %v2729_v63 = vmax.f32 %v3774_v13, 0.0 }
 0x2b4   :  { %v2776_v49 = vpack.c.bf16 %v2728_v33, %v2726_v32 }
 0x2b5   :  { %v2777_v37 = vpack.c.bf16 %v2729_v63, %v2727_v27  ;;  %v2619_v45 = vpop.f32.mrb[96].mxu1 }
 0x2b6   :  { %v3775_v43 = vadd.f32 %v2619_v45, %v5644_v38  ;;  %v2621_v55 = vpop.f32.mrb[97].mxu1 }
 0x2b7   :  { %v3776_v24 = vadd.f32 %v2621_v55, %v5648_v1  ;;  %v2623_v52 = vpop.f32.mrb[98].mxu1  ;;  %3017 = vmatprep.mubr.bf16.mxu0 %v2777_v37 }
 0x2b8   :  { %v3777_v41 = vadd.f32 %v2623_v52, %v5644_v38  ;;  %v2625_v56 = vpop.f32.mrb[99].mxu1  ;;  %3018 = vmatmul.mubr.bf16.gmra.mrb[156].mxu0 %v2776_v49  ;;  %v2730_v62 = vmax.f32 %v3775_v43, 0.0 }
 0x2b9   :  { %v3778_v12 = vadd.f32 %v2625_v56, %v5648_v1  ;;  %v2731_v22 = vmax.f32 %v3776_v24, 0.0 }
 0x2ba   :  { %v2732_v3 = vmax.f32 %v3777_v41, 0.0 }
 0x2bb   :  { %v2733_v50 = vmax.f32 %v3778_v12, 0.0 }
 0x2bc   :  { %v2778_v2 = vpack.c.bf16 %v2732_v3, %v2730_v62 }
 0x2bd   :  { %v2779_v26 = vpack.c.bf16 %v2733_v50, %v2731_v22  ;;  %v2629_v51 = vpop.f32.mrb[100].mxu1 }
 0x2be   :  { %v3779_v13 = vadd.f32 %v2629_v51, %v5644_v38  ;;  %v2631_v32 = vpop.f32.mrb[101].mxu1 }
 0x2bf   :  { %v3780_v33 = vadd.f32 %v2631_v32, %v5648_v1  ;;  %v2633_v27 = vpop.f32.mrb[102].mxu1  ;;  %3025 = vmatprep.mubr.bf16.mxu0 %v2779_v26 }
 0x2c0   :  { %v3781_v63 = vadd.f32 %v2633_v27, %v5644_v38  ;;  %v2635_v37 = vpop.f32.mrb[103].mxu1  ;;  %3026 = vmatmul.mubr.bf16.gmra.mrb[160].mxu0 %v2778_v2  ;;  %v2734_v45 = vmax.f32 %v3779_v13, 0.0 }
 0x2c1   :  { %v3782_v49 = vadd.f32 %v2635_v37, %v5648_v1  ;;  %v2735_v55 = vmax.f32 %v3780_v33, 0.0 }
 0x2c2   :  { %v2736_v43 = vmax.f32 %v3781_v63, 0.0 }
 0x2c3   :  { %v2737_v24 = vmax.f32 %v3782_v49, 0.0 }
 0x2c4   :  { %v2780_v52 = vpack.c.bf16 %v2736_v43, %v2734_v45 }
 0x2c5   :  { %v2781_v41 = vpack.c.bf16 %v2737_v24, %v2735_v55  ;;  %v2639_v56 = vpop.f32.mrb[104].mxu1 }
 0x2c6   :  { %v3783_v12 = vadd.f32 %v2639_v56, %v5644_v38  ;;  %v2641_v62 = vpop.f32.mrb[105].mxu1 }
 0x2c7   :  { %v3784_v3 = vadd.f32 %v2641_v62, %v5648_v1  ;;  %v2643_v22 = vpop.f32.mrb[106].mxu1  ;;  %3033 = vmatprep.mubr.bf16.mxu0 %v2781_v41 }
 0x2c8   :  { %v3785_v50 = vadd.f32 %v2643_v22, %v5644_v38  ;;  %v2645_v26 = vpop.f32.mrb[107].mxu1  ;;  %3034 = vmatmul.mubr.bf16.gmra.mrb[164].mxu0 %v2780_v52  ;;  %v2738_v51 = vmax.f32 %v3783_v12, 0.0 }
 0x2c9   :  { %v3786_v2 = vadd.f32 %v2645_v26, %v5648_v1  ;;  %v2739_v32 = vmax.f32 %v3784_v3, 0.0 }
 0x2ca   :  { %v2740_v13 = vmax.f32 %v3785_v50, 0.0 }
 0x2cb   :  { %v2741_v33 = vmax.f32 %v3786_v2, 0.0 }
 0x2cc   :  { %v2782_v27 = vpack.c.bf16 %v2740_v13, %v2738_v51 }
 0x2cd   :  { %v2783_v63 = vpack.c.bf16 %v2741_v33, %v2739_v32  ;;  %v2649_v37 = vpop.f32.mrb[108].mxu1 }
 0x2ce   :  { %v3787_v49 = vadd.f32 %v2649_v37, %v5644_v38  ;;  %v2651_v45 = vpop.f32.mrb[109].mxu1 }
 0x2cf   :  { %v3788_v43 = vadd.f32 %v2651_v45, %v5648_v1  ;;  %v2653_v55 = vpop.f32.mrb[110].mxu1  ;;  %3041 = vmatprep.mubr.bf16.mxu0 %v2783_v63 }
 0x2d0   :  { %v3789_v24 = vadd.f32 %v2653_v55, %v5644_v38  ;;  %v2655_v41 = vpop.f32.mrb[111].mxu1  ;;  %3042 = vmatmul.mubr.bf16.gmra.mrb[168].mxu0 %v2782_v27  ;;  %v2742_v56 = vmax.f32 %v3787_v49, 0.0 }
 0x2d1   :  { %v3790_v52 = vadd.f32 %v2655_v41, %v5648_v1  ;;  %v2743_v62 = vmax.f32 %v3788_v43, 0.0 }
 0x2d2   :  { %v2744_v12 = vmax.f32 %v3789_v24, 0.0 }
 0x2d3   :  { %v2745_v3 = vmax.f32 %v3790_v52, 0.0 }
 0x2d4   :  { %v2784_v22 = vpack.c.bf16 %v2744_v12, %v2742_v56 }
 0x2d5   :  { %v2785_v50 = vpack.c.bf16 %v2745_v3, %v2743_v62  ;;  %v2659_v26 = vpop.f32.mrb[112].mxu1 }
 0x2d6   :  { %v3791_v2 = vadd.f32 %v2659_v26, %v5644_v38  ;;  %v2661_v51 = vpop.f32.mrb[113].mxu1 }
 0x2d7   :  { %v3792_v13 = vadd.f32 %v2661_v51, %v5648_v1  ;;  %v2663_v32 = vpop.f32.mrb[114].mxu1  ;;  %3049 = vmatprep.mubr.bf16.mxu0 %v2785_v50 }
 0x2d8   :  { %v3793_v33 = vadd.f32 %v2663_v32, %v5644_v38  ;;  %v2665_v63 = vpop.f32.mrb[115].mxu1  ;;  %3050 = vmatmul.mubr.bf16.gmra.mrb[172].mxu0 %v2784_v22  ;;  %v2746_v37 = vmax.f32 %v3791_v2, 0.0 }
 0x2d9   :  { %v3794_v27 = vadd.f32 %v2665_v63, %v5648_v1  ;;  %v2747_v45 = vmax.f32 %v3792_v13, 0.0 }
 0x2da   :  { %v2748_v49 = vmax.f32 %v3793_v33, 0.0 }
 0x2db   :  { %v2749_v43 = vmax.f32 %v3794_v27, 0.0 }
 0x2dc   :  { %v2786_v55 = vpack.c.bf16 %v2748_v49, %v2746_v37 }
 0x2dd   :  { %v2787_v24 = vpack.c.bf16 %v2749_v43, %v2747_v45  ;;  %v2669_v41 = vpop.f32.mrb[116].mxu1 }
 0x2de   :  { %v3795_v52 = vadd.f32 %v2669_v41, %v5644_v38  ;;  %v2671_v56 = vpop.f32.mrb[117].mxu1 }
 0x2df   :  { %v3796_v12 = vadd.f32 %v2671_v56, %v5648_v1  ;;  %v2673_v62 = vpop.f32.mrb[118].mxu1  ;;  %3057 = vmatprep.mubr.bf16.mxu0 %v2787_v24 }
 0x2e0   :  { %v3797_v3 = vadd.f32 %v2673_v62, %v5644_v38  ;;  %v2675_v50 = vpop.f32.mrb[119].mxu1  ;;  %3058 = vmatmul.mubr.bf16.gmra.mrb[176].mxu0 %v2786_v55  ;;  %v2750_v26 = vmax.f32 %v3795_v52, 0.0 }
 0x2e1   :  { %v3798_v22 = vadd.f32 %v2675_v50, %v5648_v1  ;;  %v2751_v51 = vmax.f32 %v3796_v12, 0.0 }
 0x2e2   :  { %v2752_v2 = vmax.f32 %v3797_v3, 0.0 }
 0x2e3   :  { %v2753_v13 = vmax.f32 %v3798_v22, 0.0 }
 0x2e4   :  { %v2788_v32 = vpack.c.bf16 %v2752_v2, %v2750_v26 }
 0x2e5   :  { %v2789_v33 = vpack.c.bf16 %v2753_v13, %v2751_v51  ;;  %v2679_v63 = vpop.f32.mrb[120].mxu1 }
 0x2e6   :  { %v3799_v27 = vadd.f32 %v2679_v63, %v5644_v38  ;;  %v2681_v37 = vpop.f32.mrb[121].mxu1 }
 0x2e7   :  { %v3800_v49 = vadd.f32 %v2681_v37, %v5648_v1  ;;  %v2683_v45 = vpop.f32.mrb[122].mxu1  ;;  %3065 = vmatprep.mubr.bf16.mxu0 %v2789_v33 }
 0x2e8   :  { %v3801_v43 = vadd.f32 %v2683_v45, %v5644_v38  ;;  %v2685_v24 = vpop.f32.mrb[123].mxu1  ;;  %3066 = vmatmul.mubr.bf16.gmra.mrb[180].mxu0 %v2788_v32  ;;  %v2754_v41 = vmax.f32 %v3799_v27, 0.0 }
 0x2e9   :  { %v3802_v55 = vadd.f32 %v2685_v24, %v5648_v1  ;;  %v2755_v56 = vmax.f32 %v3800_v49, 0.0 }
 0x2ea   :  { %v2756_v52 = vmax.f32 %v3801_v43, 0.0 }
 0x2eb   :  { %v2757_v12 = vmax.f32 %v3802_v55, 0.0  ;;  %v5717_v55 = vld [vmem:[%s6225_s7] ss:$0 sm:$0xff] }
 0x2ec   :  { %v2790_v62 = vpack.c.bf16 %v2756_v52, %v2754_v41 }
 0x2ed   :  { %v2791_v3 = vpack.c.bf16 %v2757_v12, %v2755_v56  ;;  %v2689_v50 = vpop.f32.mrb[124].mxu1 }
 0x2ee   :  { %v3803_v22 = vadd.f32 %v2689_v50, %v5644_v38  ;;  %v2691_v26 = vpop.f32.mrb[125].mxu1 }
 0x2ef   :  { %v3804_v2 = vadd.f32 %v2691_v26, %v5648_v1  ;;  %v2693_v51 = vpop.f32.mrb[126].mxu1  ;;  %3073 = vmatprep.mubr.bf16.mxu0 %v2791_v3 }
 0x2f0   :  { %v3805_v13 = vadd.f32 %v2693_v51, %v5644_v38  ;;  %v2695_v33 = vpop.f32.mrb[127].mxu1  ;;  %3074 = vmatmul.mubr.bf16.gmra.mrb[184].mxu0 %v2790_v62  ;;  %v2758_v63 = vmax.f32 %v3803_v22, 0.0 }
 0x2f1   :  { %v3806_v32 = vadd.f32 %v2695_v33, %v5648_v1  ;;  %v2759_v37 = vmax.f32 %v3804_v2, 0.0 }
 0x2f2   :  { %v2760_v27 = vmax.f32 %v3805_v13, 0.0 }
 0x2f3   :  { %v2761_v49 = vmax.f32 %v3806_v32, 0.0 }
 0x2f4   :  { %v2792_v45 = vpack.c.bf16 %v2760_v27, %v2758_v63  ;;  %v6282_v63 = vlaneseq }
 0x2f5   :  { %v2793_v43 = vpack.c.bf16 %v2761_v49, %v2759_v37 }
 0x2f6   :  { %v3219_v27 = vand.u32 127, %v6282_v63 }
 0x2f7   :  { %3081 = vmatprep.mubr.bf16.mxu0 %v2793_v43 }
 0x2f8   :  { %3082 = vmatmul.mubr.bf16.gmra.mrb[188].mxu0 %v2792_v45  ;;  %v1557_v45 = vsub.s32 4, %v4986_v17  ;;  %vm3223_vm0 = vcmp.ge.s32.totalorder %v3219_v27, 32  ;;  %vm3224_vm1 = vcmp.lt.s32.totalorder %v3219_v27, 64  ;;  %vm3220_vm2 = vcmp.ge.s32.totalorder %v3219_v27, 64 }
 0x2f9   :  { %vm3221_vm3 = vcmp.lt.s32.totalorder %v3219_v27, 96  ;;  %vm5744_vm4 = vmand %vm3223_vm0, %vm3224_vm1 }
 0x2fa   :  { %vm5748_vm5 = vmand %vm3220_vm2, %vm3221_vm3 }
 0x353   :  { %v3647_v24 = vpop.f32.mrb[128].mxu0 }
 0x354   :  { %v3648_v41 = vpop.f32.mrb[129].mxu0 }
 0x355   :  { %v3649_v38 = vadd.f32 %v3648_v41, %v3647_v24  ;;  %v3650_v52 = vpop.f32.mrb[130].mxu0 }
 0x356   :  { %v3651_v56 = vpop.f32.mrb[131].mxu0 }
 0x357   :  { %v2964_v1 = vadd.f32 %v3649_v38, %v5717_v55  ;;  %v3652_v12 = vadd.f32 %v3651_v56, %v3650_v52  ;;  %v4162_v56 = vld [vmem:[%s6222_s3] sm:$0x1f] }
 0x359   :  { %v3090_v62 = vmul.f32 %v2964_v1, %v2964_v1  ;;  %v2967_v3 = vadd.f32 %v3652_v12, %v5717_v55  ;;  %v5736_v12 = vrot.slane %v4162_v56, %v1557_v45 }
 0x35b   :  { %v3122_v50 = vadd.f32 1e-08, %v3090_v62  ;;  %v3091_v22 = vmul.f32 %v2967_v3, %v2967_v3  ;;  %v3653_v26 = vpop.f32.mrb[132].mxu0  ;;  %v1381_v62 = vmul.f32 %v5505_v61, %v4988_v19  ;;  %v3227_v56 = vsel %vm5744_vm4, %v2967_v3, 0.0 }
 0x35c   :  { %v3654_v2 = vpop.f32.mrb[133].mxu0 }
 0x35d   :  { %4098 = vlog2.f32 %v3122_v50  ;;  %v3123_v51 = vadd.f32 1e-08, %v3091_v22  ;;  %v3655_v13 = vadd.f32 %v3654_v2, %v3653_v26  ;;  %v3656_v33 = vpop.f32.mrb[134].mxu0  ;;  %v1386_v2 = vmul.f32 %v5509_v46, %v4999_v0 }
 0x35e   :  { %v3657_v32 = vpop.f32.mrb[135].mxu0  ;;  %v1568_v0 = vadd.f32 %v5736_v12, %v1381_v62  ;;  %v3226_v46 = vsel %vm5744_vm4, %v2964_v1, 0.0 }
 0x35f   :  { %4100 = vlog2.f32 %v3123_v51  ;;  %v5723_v37 = vadd.f32 %v3655_v13, %v5717_v55  ;;  %v3658_v49 = vadd.f32 %v3657_v32, %v3656_v33 }
 0x361   :  { %v3092_v43 = vmul.f32 %v5723_v37, %v5723_v37  ;;  %v5729_v24 = vadd.f32 %v3658_v49, %v5717_v55 }
 0x363   :  { %v3124_v41 = vadd.f32 1e-08, %v3092_v43  ;;  %v3093_v38 = vmul.f32 %v5729_v24, %v5729_v24  ;;  %v3659_v52 = vpop.f32.mrb[136].mxu0  ;;  %v1573_v43 = vadd.f32 %v5736_v12, %v1386_v2 }
 0x364   :  { %v3660_v17 = vpop.f32.mrb[137].mxu0 }
 0x365   :  { %4102 = vlog2.f32 %v3124_v41  ;;  %v3125_v50 = vadd.f32 1e-08, %v3093_v38  ;;  %v3661_v22 = vadd.f32 %v3660_v17, %v3659_v52  ;;  %v3662_v26 = vpop.f32.mrb[138].mxu0 }
 0x366   :  { %v3663_v13 = vpop.f32.mrb[139].mxu0 }
 0x367   :  { %v4099_v33 = vpop.eup %4098  ;;  %4104 = vlog2.f32 %v3125_v50  ;;  %v5753_v19 = vadd.f32 %v3661_v22, %v5717_v55  ;;  %v3664_v61 = vadd.f32 %v3663_v13, %v3662_v26  ;;  %v1391_v50 = vmul.f32 %v5527_v47, %v5001_v14 }
 0x368   :  { %v3155_v63 = vmul.f32 0.6931472, %v4099_v33 }
 0x369   :  { %v4101_v49 = vpop.eup %4100  ;;  %v3094_v27 = vmul.f32 %v5753_v19, %v5753_v19  ;;  %v5761_v45 = vadd.f32 %v3664_v61, %v5717_v55  ;;  %v1396_v61 = vmul.f32 %v5529_v7, %v5033_v44 }
 0x36a   :  { %v3258_v41 = vsel %vm5748_vm5, %v3155_v63, %v3226_v46  ;;  %v3157_v38 = vmul.f32 0.6931472, %v4101_v49 }
 0x36b   :  { %v3290_v52 = vadd.f32 %v3258_v41, %v1568_v0  ;;  %v3126_v17 = vadd.f32 1e-08, %v3094_v27  ;;  %v3095_v1 = vmul.f32 %v5761_v45, %v5761_v45  ;;  %v3665_v62 = vpop.f32.mrb[140].mxu0  ;;  %v1578_v27 = vadd.f32 %v5736_v12, %v1391_v50 }
 0x36c   :  { %v3259_v22 = vsel %vm5748_vm5, %v3157_v38, %v3227_v56  ;;  %v3666_v26 = vpop.f32.mrb[141].mxu0  ;;  %v1583_v41 = vadd.f32 %v5736_v12, %v1396_v61  ;;  %v1401_v50 = vmul.f32 %v5545_v42, %v5066_v34 }
 0x36d   :  { %3322 = vst [vmem:[%s6226_s8] sm:$0xff] %v3290_v52  ;;  %v3291_v2 = vadd.f32 %v3259_v22, %v1573_v43  ;;  %4106 = vlog2.f32 %v3126_v17  ;;  %v3127_v13 = vadd.f32 1e-08, %v3095_v1  ;;  %v3667_v3 = vadd.f32 %v3666_v26, %v3665_v62  ;;  %v3668_v33 = vpop.f32.mrb[142].mxu0 }
 0x36e   :  { %v3669_v63 = vpop.f32.mrb[143].mxu0  ;;  %v3228_v43 = vsel %vm5744_vm4, %v5723_v37, 0.0  ;;  %v3229_v17 = vsel %vm5744_vm4, %v5729_v24, 0.0 }
 0x36f   :  { %v4103_v49 = vpop.eup %4102  ;;  %3323 = vst [vmem:[%s6226_s8 + $0x8] sm:$0xff] %v3291_v2  ;;  %4108 = vlog2.f32 %v3127_v13  ;;  %v5783_v14 = vadd.f32 %v3667_v3, %v5717_v55  ;;  %v3670_v47 = vadd.f32 %v3669_v63, %v3668_v33  ;;  %v6287_v33 = vld [vmem:[#allocation2_spill] sm:$0xff] }
 0x370   :  { %v3159_v0 = vmul.f32 0.6931472, %v4103_v49  ;;  %v1406_v61 = vmul.f32 %v5547_v53, %v6287_v33 }
 0x371   :  { %v4105_v46 = vpop.eup %4104  ;;  %v3096_v44 = vmul.f32 %v5783_v14, %v5783_v14  ;;  %v5792_v7 = vadd.f32 %v3670_v47, %v5717_v55 }
 0x372   :  { %v3260_v38 = vsel %vm5748_vm5, %v3159_v0, %v3228_v43  ;;  %v3161_v52 = vmul.f32 0.6931472, %v4105_v46  ;;  %v1588_v46 = vadd.f32 %v5736_v12, %v1401_v50 }
 0x373   :  { %v3292_v56 = vadd.f32 %v3260_v38, %v1578_v27  ;;  %v3128_v1 = vadd.f32 1e-08, %v3096_v44  ;;  %v3097_v37 = vmul.f32 %v5792_v7, %v5792_v7  ;;  %v3671_v62 = vpop.f32.mrb[144].mxu0  ;;  %v3230_v27 = vsel %vm5744_vm4, %v5753_v19, 0.0 }
 0x374   :  { %v3261_v22 = vsel %vm5748_vm5, %v3161_v52, %v3229_v17  ;;  %v3672_v26 = vpop.f32.mrb[145].mxu0  ;;  %v1593_v44 = vadd.f32 %v5736_v12, %v1406_v61 }
 0x375   :  { %3324 = vst [vmem:[%s6226_s8 + $0x10] sm:$0xff] %v3292_v56  ;;  %v3293_v2 = vadd.f32 %v3261_v22, %v1583_v41  ;;  %4110 = vlog2.f32 %v3128_v1  ;;  %v3129_v13 = vadd.f32 1e-08, %v3097_v37  ;;  %v3673_v24 = vadd.f32 %v3672_v26, %v3671_v62  ;;  %v3674_v3 = vpop.f32.mrb[146].mxu0  ;;  %v6288_v37 = vld [vmem:[#allocation3_spill] sm:$0xff] }
 0x376   :  { %v3675_v63 = vpop.f32.mrb[147].mxu0  ;;  %v3231_v56 = vsel %vm5744_vm4, %v5761_v45, 0.0  ;;  %v1411_v62 = vmul.f32 %v5560_v10, %v6288_v37 }
 0x377   :  { %v4107_v49 = vpop.eup %4106  ;;  %3325 = vst [vmem:[%s6226_s8 + $0x18] sm:$0xff] %v3293_v2  ;;  %4112 = vlog2.f32 %v3129_v13  ;;  %v5815_v34 = vadd.f32 %v3673_v24, %v5717_v55  ;;  %v3676_v42 = vadd.f32 %v3675_v63, %v3674_v3  ;;  %v6289_v24 = vld [vmem:[#allocation4_spill] sm:$0xff] }
 0x378   :  { %v3163_v47 = vmul.f32 0.6931472, %v4107_v49  ;;  %v1416_v3 = vmul.f32 %v5562_v4, %v6289_v24 }
 0x379   :  { %v4109_v0 = vpop.eup %4108  ;;  %v3098_v53 = vmul.f32 %v5815_v34, %v5815_v34  ;;  %v5824_v43 = vadd.f32 %v3676_v42, %v5717_v55 }
 0x37a   :  { %v3262_v41 = vsel %vm5748_vm5, %v3163_v47, %v3230_v27  ;;  %v3165_v38 = vmul.f32 0.6931472, %v4109_v0  ;;  %v1598_v47 = vadd.f32 %v5736_v12, %v1411_v62  ;;  %v3232_v0 = vsel %vm5744_vm4, %v5783_v14, 0.0 }
 0x37b   :  { %v3294_v52 = vadd.f32 %v3262_v41, %v1588_v46  ;;  %v3130_v17 = vadd.f32 1e-08, %v3098_v53  ;;  %v3099_v19 = vmul.f32 %v5824_v43, %v5824_v43  ;;  %v3677_v1 = vpop.f32.mrb[148].mxu0  ;;  %v1603_v27 = vadd.f32 %v5736_v12, %v1416_v3 }
 0x37c   :  { %v3263_v50 = vsel %vm5748_vm5, %v3165_v38, %v3231_v56  ;;  %v3678_v22 = vpop.f32.mrb[149].mxu0  ;;  %v3233_v38 = vsel %vm5744_vm4, %v5792_v7, 0.0 }
 0x37d   :  { %3326 = vst [vmem:[%s6226_s8 + $0x20] sm:$0xff] %v3294_v52  ;;  %v3295_v26 = vadd.f32 %v3263_v50, %v1593_v44  ;;  %4114 = vlog2.f32 %v3130_v17  ;;  %v3131_v2 = vadd.f32 1e-08, %v3099_v19  ;;  %v3679_v45 = vadd.f32 %v3678_v22, %v3677_v1  ;;  %v3680_v13 = vpop.f32.mrb[150].mxu0  ;;  %v6290_v17 = vld [vmem:[#allocation5_spill] sm:$0xff] }
 0x37e   :  { %v3681_v33 = vpop.f32.mrb[151].mxu0  ;;  %v1421_v19 = vmul.f32 %v5566_v11, %v6290_v17 }
 0x37f   :  { %v4111_v61 = vpop.eup %4110  ;;  %3327 = vst [vmem:[%s6226_s8 + $0x28] sm:$0xff] %v3295_v26  ;;  %4116 = vlog2.f32 %v3131_v2  ;;  %v5847_v10 = vadd.f32 %v3679_v45, %v5717_v55  ;;  %v3682_v63 = vadd.f32 %v3681_v33, %v3680_v13  ;;  %v6291_v26 = vld [vmem:[#allocation6_spill] sm:$0xff] }
 0x380   :  { %v3167_v49 = vmul.f32 0.6931472, %v4111_v61  ;;  %v1426_v2 = vmul.f32 %v5568_v28, %v6291_v26  ;;  %v1608_v61 = vadd.f32 %v5736_v12, %v1421_v19 }
 0x381   :  { %v4113_v42 = vpop.eup %4112  ;;  %v3100_v4 = vmul.f32 %v5847_v10, %v5847_v10  ;;  %v5856_v46 = vadd.f32 %v3682_v63, %v5717_v55  ;;  %v3234_v63 = vsel %vm5744_vm4, %v5815_v34, 0.0 }
 0x382   :  { %v3264_v53 = vsel %vm5748_vm5, %v3167_v49, %v3232_v0  ;;  %v3169_v44 = vmul.f32 0.6931472, %v4113_v42  ;;  %v1613_v42 = vadd.f32 %v5736_v12, %v1426_v2 }
 0x383   :  { %v3296_v41 = vadd.f32 %v3264_v53, %v1598_v47  ;;  %v3132_v52 = vadd.f32 1e-08, %v3100_v4  ;;  %v3101_v14 = vmul.f32 %v5856_v46, %v5856_v46  ;;  %v3683_v56 = vpop.f32.mrb[152].mxu0 }
 0x384   :  { %v3265_v1 = vsel %vm5748_vm5, %v3169_v44, %v3233_v38  ;;  %v3684_v37 = vpop.f32.mrb[153].mxu0 }
 0x385   :  { %3328 = vst [vmem:[%s6226_s8 + $0x30] sm:$0xff] %v3296_v41  ;;  %v3297_v62 = vadd.f32 %v3265_v1, %v1603_v27  ;;  %4118 = vlog2.f32 %v3132_v52  ;;  %v3133_v50 = vadd.f32 1e-08, %v3101_v14  ;;  %v3685_v7 = vadd.f32 %v3684_v37, %v3683_v56  ;;  %v3686_v22 = vpop.f32.mrb[154].mxu0  ;;  %v6292_v41 = vld [vmem:[#allocation7_spill] sm:$0xff]  ;;  %v6293_v1 = vld [vmem:[#allocation8_spill] sm:$0xff] }
 0x386   :  { %v3687_v45 = vpop.f32.mrb[155].mxu0  ;;  %v3235_v27 = vsel %vm5744_vm4, %v5824_v43, 0.0  ;;  %v1431_v38 = vmul.f32 %v5572_v6, %v6292_v41  ;;  %v1436_v37 = vmul.f32 %v5574_v25, %v6293_v1  ;;  %v6295_v41 = vld [vmem:[#allocation10_spill] sm:$0xff] }
 0x387   :  { %v4115_v13 = vpop.eup %4114  ;;  %3329 = vst [vmem:[%s6226_s8 + $0x38] sm:$0xff] %v3297_v62  ;;  %4120 = vlog2.f32 %v3133_v50  ;;  %v5879_v11 = vadd.f32 %v3685_v7, %v5717_v55  ;;  %v3688_v24 = vadd.f32 %v3687_v45, %v3686_v22  ;;  %v3236_v45 = vsel %vm5744_vm4, %v5847_v10, 0.0 }
 0x388   :  { %v3171_v3 = vmul.f32 0.6931472, %v4115_v13  ;;  %v1618_v2 = vadd.f32 %v5736_v12, %v1431_v38  ;;  %v1446_v38 = vmul.f32 %v5580_v30, %v6295_v41 }
 0x389   :  { %v4117_v33 = vpop.eup %4116  ;;  %v3102_v28 = vmul.f32 %v5879_v11, %v5879_v11  ;;  %v5888_v49 = vadd.f32 %v3688_v24, %v5717_v55  ;;  %v1623_v24 = vadd.f32 %v5736_v12, %v1436_v37  ;;  %v3238_v1 = vsel %vm5744_vm4, %v5879_v11, 0.0 }
 0x38a   :  { %v3266_v47 = vsel %vm5748_vm5, %v3171_v3, %v3234_v63  ;;  %v3173_v0 = vmul.f32 0.6931472, %v4117_v33  ;;  %v3237_v63 = vsel %vm5744_vm4, %v5856_v46, 0.0 }
 0x38b   :  { %v3298_v4 = vadd.f32 %v3266_v47, %v1608_v61  ;;  %v3134_v53 = vadd.f32 1e-08, %v3102_v28  ;;  %v3103_v34 = vmul.f32 %v5888_v49, %v5888_v49  ;;  %v3689_v44 = vpop.f32.mrb[156].mxu0  ;;  %v6294_v47 = vld [vmem:[#allocation9_spill] sm:$0xff] }
 0x38c   :  { %v3267_v52 = vsel %vm5748_vm5, %v3173_v0, %v3235_v27  ;;  %v3690_v14 = vpop.f32.mrb[157].mxu0  ;;  %v1441_v0 = vmul.f32 %v5578_v35, %v6294_v47 }
 0x38d   :  { %3330 = vst [vmem:[%s6226_s8 + $0x40] sm:$0xff] %v3298_v4  ;;  %v3299_v56 = vadd.f32 %v3267_v52, %v1613_v42  ;;  %4122 = vlog2.f32 %v3134_v53  ;;  %v3135_v17 = vadd.f32 1e-08, %v3103_v34  ;;  %v3691_v43 = vadd.f32 %v3690_v14, %v3689_v44  ;;  %v3692_v19 = vpop.f32.mrb[158].mxu0 }
 0x38e   :  { %v3693_v62 = vpop.f32.mrb[159].mxu0 }
 0x38f   :  { %v4119_v50 = vpop.eup %4118  ;;  %3331 = vst [vmem:[%s6226_s8 + $0x48] sm:$0xff] %v3299_v56  ;;  %4124 = vlog2.f32 %v3135_v17  ;;  %v5911_v6 = vadd.f32 %v3691_v43, %v5717_v55  ;;  %v3694_v7 = vadd.f32 %v3693_v62, %v3692_v19  ;;  %v1628_v19 = vadd.f32 %v5736_v12, %v1441_v0 }
 0x390   :  { %v3175_v22 = vmul.f32 0.6931472, %v4119_v50  ;;  %v1633_v62 = vadd.f32 %v5736_v12, %v1446_v38 }
 0x391   :  { %v4121_v26 = vpop.eup %4120  ;;  %v3104_v25 = vmul.f32 %v5911_v6, %v5911_v6  ;;  %v5920_v13 = vadd.f32 %v3694_v7, %v5717_v55 }
 0x392   :  { %v3268_v3 = vsel %vm5748_vm5, %v3175_v22, %v3236_v45  ;;  %v3177_v33 = vmul.f32 0.6931472, %v4121_v26  ;;  %v3239_v26 = vsel %vm5744_vm4, %v5888_v49, 0.0 }
 0x393   :  { %v3300_v61 = vadd.f32 %v3268_v3, %v1618_v2  ;;  %v3136_v28 = vadd.f32 1e-08, %v3104_v25  ;;  %v3105_v10 = vmul.f32 %v5920_v13, %v5920_v13  ;;  %v3695_v42 = vpop.f32.mrb[160].mxu0  ;;  %v6296_v25 = vld [vmem:[#allocation11_spill] sm:$0xff] }
 0x394   :  { %v3269_v4 = vsel %vm5748_vm5, %v3177_v33, %v3237_v63  ;;  %v3696_v27 = vpop.f32.mrb[161].mxu0 }
 0x395   :  { %3332 = vst [vmem:[%s6226_s8 + $0x50] sm:$0xff] %v3300_v61  ;;  %v3301_v53 = vadd.f32 %v3269_v4, %v1623_v24  ;;  %4126 = vlog2.f32 %v3136_v28  ;;  %v3137_v34 = vadd.f32 1e-08, %v3105_v10  ;;  %v3697_v46 = vadd.f32 %v3696_v27, %v3695_v42  ;;  %v3698_v44 = vpop.f32.mrb[162].mxu0  ;;  %v6297_v10 = vld [vmem:[#allocation12_spill] sm:$0xff] }
 0x396   :  { %v3699_v52 = vpop.f32.mrb[163].mxu0  ;;  %v1451_v24 = vmul.f32 %v5584_v60, %v6296_v25  ;;  %v1456_v42 = vmul.f32 %v5586_v23, %v6297_v10 }
 0x397   :  { %v4123_v14 = vpop.eup %4122  ;;  %3333 = vst [vmem:[%s6226_s8 + $0x58] sm:$0xff] %v3301_v53  ;;  %4128 = vlog2.f32 %v3137_v34  ;;  %v5943_v35 = vadd.f32 %v3697_v46, %v5717_v55  ;;  %v3700_v56 = vadd.f32 %v3699_v52, %v3698_v44  ;;  %v3240_v46 = vsel %vm5744_vm4, %v5911_v6, 0.0 }
 0x398   :  { %v3179_v17 = vmul.f32 0.6931472, %v4123_v14  ;;  %v1638_v34 = vadd.f32 %v5736_v12, %v1451_v24  ;;  %v1643_v41 = vadd.f32 %v5736_v12, %v1456_v42 }
 0x399   :  { %v4125_v43 = vpop.eup %4124  ;;  %v3106_v30 = vmul.f32 %v5943_v35, %v5943_v35  ;;  %v5952_v37 = vadd.f32 %v3700_v56, %v5717_v55  ;;  %v3241_v56 = vsel %vm5744_vm4, %v5920_v13, 0.0 }
 0x39a   :  { %v3270_v50 = vsel %vm5748_vm5, %v3179_v17, %v3238_v1  ;;  %v3181_v7 = vmul.f32 0.6931472, %v4125_v43 }
 0x39b   :  { %v3302_v22 = vadd.f32 %v3270_v50, %v1628_v19  ;;  %v3138_v2 = vadd.f32 1e-08, %v3106_v30  ;;  %v3107_v11 = vmul.f32 %v5952_v37, %v5952_v37  ;;  %v3701_v45 = vpop.f32.mrb[164].mxu0  ;;  %v6298_v19 = vld [vmem:[#allocation13_spill] sm:$0xff] }
 0x39c   :  { %v3271_v3 = vsel %vm5748_vm5, %v3181_v7, %v3239_v26  ;;  %v3702_v33 = vpop.f32.mrb[165].mxu0  ;;  %v1461_v1 = vmul.f32 %v5590_v29, %v6298_v19  ;;  %v6299_v26 = vld [vmem:[#allocation14_spill] sm:$0xff] }
 0x39d   :  { %3334 = vst [vmem:[%s6226_s8 + $0x60] sm:$0xff] %v3302_v22  ;;  %v3303_v61 = vadd.f32 %v3271_v3, %v1633_v62  ;;  %4130 = vlog2.f32 %v3138_v2  ;;  %v3139_v63 = vadd.f32 1e-08, %v3107_v11  ;;  %v3703_v49 = vadd.f32 %v3702_v33, %v3701_v45  ;;  %v3704_v28 = vpop.f32.mrb[166].mxu0 }
 0x39e   :  { %v3705_v47 = vpop.f32.mrb[167].mxu0  ;;  %v1466_v2 = vmul.f32 %v5592_v31, %v6299_v26  ;;  %v1648_v33 = vadd.f32 %v5736_v12, %v1461_v1 }
 0x39f   :  { %v4127_v0 = vpop.eup %4126  ;;  %3335 = vst [vmem:[%s6226_s8 + $0x68] sm:$0xff] %v3303_v61  ;;  %4132 = vlog2.f32 %v3139_v63  ;;  %v5975_v60 = vadd.f32 %v3703_v49, %v5717_v55  ;;  %v3706_v4 = vadd.f32 %v3705_v47, %v3704_v28  ;;  %v3242_v61 = vsel %vm5744_vm4, %v5943_v35, 0.0 }
 0x3a0   :  { %v3183_v27 = vmul.f32 0.6931472, %v4127_v0  ;;  %v1653_v49 = vadd.f32 %v5736_v12, %v1466_v2  ;;  %v3243_v47 = vsel %vm5744_vm4, %v5952_v37, 0.0 }
 0x3a1   :  { %v4129_v53 = vpop.eup %4128  ;;  %v3108_v23 = vmul.f32 %v5975_v60, %v5975_v60  ;;  %v5984_v44 = vadd.f32 %v3706_v4, %v5717_v55 }
 0x3a2   :  { %v3272_v38 = vsel %vm5748_vm5, %v3183_v27, %v3240_v46  ;;  %v3185_v52 = vmul.f32 0.6931472, %v4129_v53  ;;  %v6300_v27 = vld [vmem:[#allocation15_spill] sm:$0xff] }
 0x3a3   :  { %v3304_v14 = vadd.f32 %v3272_v38, %v1638_v34  ;;  %v3140_v17 = vadd.f32 1e-08, %v3108_v23  ;;  %v3109_v6 = vmul.f32 %v5984_v44, %v5984_v44  ;;  %v3707_v43 = vpop.f32.mrb[168].mxu0  ;;  %v1471_v53 = vmul.f32 %v5596_v57, %v6300_v27 }
 0x3a4   :  { %v3273_v30 = vsel %vm5748_vm5, %v3185_v52, %v3241_v56  ;;  %v3708_v62 = vpop.f32.mrb[169].mxu0  ;;  %v6301_v52 = vld [vmem:[#allocation16_spill] sm:$0xff]  ;;  %v3245_v26 = vsel %vm5744_vm4, %v5984_v44, 0.0 }
 0x3a5   :  { %3336 = vst [vmem:[%s6226_s8 + $0x70] sm:$0xff] %v3304_v14  ;;  %v3305_v50 = vadd.f32 %v3273_v30, %v1643_v41  ;;  %4134 = vlog2.f32 %v3140_v17  ;;  %v3141_v7 = vadd.f32 1e-08, %v3109_v6  ;;  %v3709_v13 = vadd.f32 %v3708_v62, %v3707_v43  ;;  %v3710_v22 = vpop.f32.mrb[170].mxu0 }
 0x3a6   :  { %v3711_v11 = vpop.f32.mrb[171].mxu0  ;;  %v1476_v14 = vmul.f32 %v5598_v39, %v6301_v52  ;;  %v1658_v1 = vadd.f32 %v5736_v12, %v1471_v53  ;;  %v3244_v30 = vsel %vm5744_vm4, %v5975_v60, 0.0 }
 0x3a7   :  { %v4131_v45 = vpop.eup %4130  ;;  %3337 = vst [vmem:[%s6226_s8 + $0x78] sm:$0xff] %v3305_v50  ;;  %4136 = vlog2.f32 %v3141_v7  ;;  %v6007_v29 = vadd.f32 %v3709_v13, %v5717_v55  ;;  %v3712_v25 = vadd.f32 %v3711_v11, %v3710_v22 }
 0x3a8   :  { %v3187_v24 = vmul.f32 0.6931472, %v4131_v45  ;;  %v1663_v50 = vadd.f32 %v5736_v12, %v1476_v14  ;;  %v6302_v45 = vld [vmem:[#allocation17_spill] sm:$0xff]  ;;  %v6304_v14 = vld [vmem:[#allocation19_spill] sm:$0xff] }
 0x3a9   :  { %v4133_v3 = vpop.eup %4132  ;;  %v3110_v31 = vmul.f32 %v6007_v29, %v6007_v29  ;;  %v6016_v63 = vadd.f32 %v3712_v25, %v5717_v55  ;;  %v1481_v25 = vmul.f32 %v5602_v59, %v6302_v45  ;;  %v3246_v27 = vsel %vm5744_vm4, %v6007_v29, 0.0 }
 0x3aa   :  { %v3274_v28 = vsel %vm5748_vm5, %v3187_v24, %v3242_v61  ;;  %v3189_v10 = vmul.f32 0.6931472, %v4133_v3 }
 0x3ab   :  { %v3306_v42 = vadd.f32 %v3274_v28, %v1648_v33  ;;  %v3142_v0 = vadd.f32 1e-08, %v3110_v31  ;;  %v3111_v35 = vmul.f32 %v6016_v63, %v6016_v63  ;;  %v3713_v4 = vpop.f32.mrb[172].mxu0 }
 0x3ac   :  { %v3275_v34 = vsel %vm5748_vm5, %v3189_v10, %v3243_v47  ;;  %v3714_v46 = vpop.f32.mrb[173].mxu0 }
 0x3ad   :  { %3338 = vst [vmem:[%s6226_s8 + $0x80] sm:$0xff] %v3306_v42  ;;  %v3307_v23 = vadd.f32 %v3275_v34, %v1653_v49  ;;  %4138 = vlog2.f32 %v3142_v0  ;;  %v3143_v41 = vadd.f32 1e-08, %v3111_v35  ;;  %v3715_v37 = vadd.f32 %v3714_v46, %v3713_v4  ;;  %v3716_v38 = vpop.f32.mrb[174].mxu0  ;;  %v6303_v49 = vld [vmem:[#allocation18_spill] sm:$0xff] }
 0x3ae   :  { %v3717_v56 = vpop.f32.mrb[175].mxu0  ;;  %v1486_v28 = vmul.f32 %v5604_v16, %v6303_v49  ;;  %v1668_v4 = vadd.f32 %v5736_v12, %v1481_v25 }
 0x3af   :  { %v4135_v17 = vpop.eup %4134  ;;  %3339 = vst [vmem:[%s6226_s8 + $0x88] sm:$0xff] %v3307_v23  ;;  %4140 = vlog2.f32 %v3143_v41  ;;  %v6039_v57 = vadd.f32 %v3715_v37, %v5717_v55  ;;  %v3718_v6 = vadd.f32 %v3717_v56, %v3716_v38  ;;  %v3247_v37 = vsel %vm5744_vm4, %v6016_v63, 0.0 }
 0x3b0   :  { %v3191_v43 = vmul.f32 0.6931472, %v4135_v17  ;;  %v1673_v34 = vadd.f32 %v5736_v12, %v1486_v28  ;;  %v1491_v56 = vmul.f32 %v5608_v58, %v6304_v14 }
 0x3b1   :  { %v4137_v19 = vpop.eup %4136  ;;  %v3112_v39 = vmul.f32 %v6039_v57, %v6039_v57  ;;  %v6048_v62 = vadd.f32 %v3718_v6, %v5717_v55 }
 0x3b2   :  { %v3276_v7 = vsel %vm5748_vm5, %v3191_v43, %v3244_v30  ;;  %v3193_v13 = vmul.f32 0.6931472, %v4137_v19  ;;  %v6305_v30 = vld [vmem:[#allocation20_spill] sm:$0xff] }
 0x3b3   :  { %v3308_v22 = vadd.f32 %v3276_v7, %v1658_v1  ;;  %v3144_v2 = vadd.f32 1e-08, %v3112_v39  ;;  %v3113_v60 = vmul.f32 %v6048_v62, %v6048_v62  ;;  %v3719_v11 = vpop.f32.mrb[176].mxu0  ;;  %v1496_v39 = vmul.f32 %v5610_v40, %v6305_v30 }
 0x3b4   :  { %v3277_v24 = vsel %vm5748_vm5, %v3193_v13, %v3245_v26  ;;  %v3720_v3 = vpop.f32.mrb[177].mxu0 }
 0x3b5   :  { %3340 = vst [vmem:[%s6226_s8 + $0x90] sm:$0xff] %v3308_v22  ;;  %v3309_v33 = vadd.f32 %v3277_v24, %v1663_v50  ;;  %4142 = vlog2.f32 %v3144_v2  ;;  %v3145_v61 = vadd.f32 1e-08, %v3113_v60  ;;  %v3721_v44 = vadd.f32 %v3720_v3, %v3719_v11  ;;  %v3722_v31 = vpop.f32.mrb[178].mxu0 }
 0x3b6   :  { %v3723_v10 = vpop.f32.mrb[179].mxu0  ;;  %v1678_v2 = vadd.f32 %v5736_v12, %v1491_v56  ;;  %v3248_v60 = vsel %vm5744_vm4, %v6039_v57, 0.0  ;;  %v1683_v45 = vadd.f32 %v5736_v12, %v1496_v39 }
 0x3b7   :  { %v4139_v42 = vpop.eup %4138  ;;  %3341 = vst [vmem:[%s6226_s8 + $0x98] sm:$0xff] %v3309_v33  ;;  %4144 = vlog2.f32 %v3145_v61  ;;  %v6071_v59 = vadd.f32 %v3721_v44, %v5717_v55  ;;  %v3724_v47 = vadd.f32 %v3723_v10, %v3722_v31  ;;  %v3249_v33 = vsel %vm5744_vm4, %v6048_v62, 0.0  ;;  %v6306_v31 = vld [vmem:[#allocation21_spill] sm:$0xff] }
 0x3b8   :  { %v3195_v0 = vmul.f32 0.6931472, %v4139_v42  ;;  %v1501_v49 = vmul.f32 %v5614_v5, %v6306_v31 }
 0x3b9   :  { %v4141_v35 = vpop.eup %4140  ;;  %v3114_v16 = vmul.f32 %v6071_v59, %v6071_v59  ;;  %v6080_v53 = vadd.f32 %v3724_v47, %v5717_v55 }
 0x3ba   :  { %v3278_v46 = vsel %vm5748_vm5, %v3195_v0, %v3246_v27  ;;  %v3197_v23 = vmul.f32 0.6931472, %v4141_v35  ;;  %v6307_v35 = vld [vmem:[#allocation22_spill] sm:$0xff] }
 0x3bb   :  { %v3310_v41 = vadd.f32 %v3278_v46, %v1668_v4  ;;  %v3146_v38 = vadd.f32 1e-08, %v3114_v16  ;;  %v3115_v29 = vmul.f32 %v6080_v53, %v6080_v53  ;;  %v3725_v52 = vpop.f32.mrb[180].mxu0  ;;  %v1506_v4 = vmul.f32 %v5616_v48, %v6307_v35 }
 0x3bc   :  { %v3279_v17 = vsel %vm5748_vm5, %v3197_v23, %v3247_v37  ;;  %v3726_v6 = vpop.f32.mrb[181].mxu0  ;;  %v3250_v37 = vsel %vm5744_vm4, %v6071_v59, 0.0 }
 0x3bd   :  { %3342 = vst [vmem:[%s6226_s8 + $0xa0] sm:$0xff] %v3310_v41  ;;  %v3311_v43 = vadd.f32 %v3279_v17, %v1673_v34  ;;  %4146 = vlog2.f32 %v3146_v38  ;;  %v3147_v19 = vadd.f32 1e-08, %v3115_v29  ;;  %v3727_v63 = vadd.f32 %v3726_v6, %v3725_v52  ;;  %v3728_v1 = vpop.f32.mrb[182].mxu0 }
 0x3be   :  { %v3729_v50 = vpop.f32.mrb[183].mxu0  ;;  %v1688_v41 = vadd.f32 %v5736_v12, %v1501_v49  ;;  %v1693_v29 = vadd.f32 %v5736_v12, %v1506_v4  ;;  %v3251_v17 = vsel %vm5744_vm4, %v6080_v53, 0.0  ;;  %v6309_v53 = vld [vmem:[#allocation24_spill] sm:$0xff] }
 0x3bf   :  { %v4143_v7 = vpop.eup %4142  ;;  %3343 = vst [vmem:[%s6226_s8 + $0xa8] sm:$0xff] %v3311_v43  ;;  %4148 = vlog2.f32 %v3147_v19  ;;  %v6103_v58 = vadd.f32 %v3727_v63, %v5717_v55  ;;  %v3730_v13 = vadd.f32 %v3729_v50, %v3728_v1  ;;  %v6308_v63 = vld [vmem:[#allocation23_spill] sm:$0xff] }
 0x3c0   :  { %v3199_v22 = vmul.f32 0.6931472, %v4143_v7  ;;  %v1511_v59 = vmul.f32 %v5620_v9, %v6308_v63 }
 0x3c1   :  { %v4145_v26 = vpop.eup %4144  ;;  %v3116_v40 = vmul.f32 %v6103_v58, %v6103_v58  ;;  %v6112_v11 = vadd.f32 %v3730_v13, %v5717_v55 }
 0x3c2   :  { %v3280_v25 = vsel %vm5748_vm5, %v3199_v22, %v3248_v60  ;;  %v3201_v24 = vmul.f32 0.6931472, %v4145_v26  ;;  %v1516_v22 = vmul.f32 %v5622_v54, %v6309_v53 }
 0x3c3   :  { %v3312_v3 = vadd.f32 %v3280_v25, %v1678_v2  ;;  %v3148_v61 = vadd.f32 1e-08, %v3116_v40  ;;  %v3117_v57 = vmul.f32 %v6112_v11, %v6112_v11  ;;  %v3731_v44 = vpop.f32.mrb[184].mxu0  ;;  %v1698_v25 = vadd.f32 %v5736_v12, %v1511_v59 }
 0x3c4   :  { %v3281_v28 = vsel %vm5748_vm5, %v3201_v24, %v3249_v33  ;;  %v3732_v10 = vpop.f32.mrb[185].mxu0  ;;  %v3252_v24 = vsel %vm5744_vm4, %v6103_v58, 0.0  ;;  %v1703_v33 = vadd.f32 %v5736_v12, %v1516_v22  ;;  %v3253_v31 = vsel %vm5744_vm4, %v6112_v11, 0.0  ;;  %v6310_v58 = vld [vmem:[#allocation25_spill] sm:$0xff] }
 0x3c5   :  { %3344 = vst [vmem:[%s6226_s8 + $0xb0] sm:$0xff] %v3312_v3  ;;  %v3313_v42 = vadd.f32 %v3281_v28, %v1683_v45  ;;  %4150 = vlog2.f32 %v3148_v61  ;;  %v3149_v47 = vadd.f32 1e-08, %v3117_v57  ;;  %v3733_v62 = vadd.f32 %v3732_v10, %v3731_v44  ;;  %v3734_v0 = vpop.f32.mrb[186].mxu0 }
 0x3c6   :  { %v3735_v27 = vpop.f32.mrb[187].mxu0 }
 0x3c7   :  { %v4147_v16 = vpop.eup %4146  ;;  %3345 = vst [vmem:[%s6226_s8 + $0xb8] sm:$0xff] %v3313_v42  ;;  %4152 = vlog2.f32 %v3149_v47  ;;  %v3076_v5 = vadd.f32 %v3733_v62, %v5717_v55  ;;  %v3736_v34 = vadd.f32 %v3735_v27, %v3734_v0  ;;  %v1521_v42 = vmul.f32 %v5626_v8, %v6310_v58  ;;  %v6311_v0 = vld [vmem:[#allocation26_spill] sm:$0xff] }
 0x3c8   :  { %v3203_v46 = vmul.f32 0.6931472, %v4147_v16  ;;  %v1526_v35 = vmul.f32 %v5628_v21, %v6311_v0 }
 0x3c9   :  { %v4149_v23 = vpop.eup %4148  ;;  %v3118_v38 = vmul.f32 %v3076_v5, %v3076_v5  ;;  %v3079_v48 = vadd.f32 %v3736_v34, %v5717_v55  ;;  %v1708_v8 = vadd.f32 %v5736_v12, %v1521_v42  ;;  %v3254_v27 = vsel %vm5744_vm4, %v3076_v5, 0.0 }
 0x3ca   :  { %v3282_v52 = vsel %vm5748_vm5, %v3203_v46, %v3250_v37  ;;  %v3205_v14 = vmul.f32 0.6931472, %v4149_v23  ;;  %v1713_v46 = vadd.f32 %v5736_v12, %v1526_v35  ;;  %v1531_v37 = vmul.f32 %v5632_v20, %v5473_v15 }
 0x3cb   :  { %v3314_v56 = vadd.f32 %v3282_v52, %v1688_v41  ;;  %v3150_v6 = vadd.f32 1e-08, %v3118_v38  ;;  %v3119_v43 = vmul.f32 %v3079_v48, %v3079_v48  ;;  %v3737_v19 = vpop.f32.mrb[188].mxu0  ;;  %v3255_v21 = vsel %vm5744_vm4, %v3079_v48, 0.0 }
 0x3cc   :  { %v3283_v1 = vsel %vm5748_vm5, %v3205_v14, %v3251_v17  ;;  %v3738_v30 = vpop.f32.mrb[189].mxu0  ;;  %v1718_v14 = vadd.f32 %v5736_v12, %v1531_v37 }
 0x3cd   :  { %3346 = vst [vmem:[%s6226_s8 + $0xc0] sm:$0xff] %v3314_v56  ;;  %v3315_v39 = vadd.f32 %v3283_v1, %v1693_v29  ;;  %4154 = vlog2.f32 %v3150_v6  ;;  %v3151_v50 = vadd.f32 1e-08, %v3119_v43  ;;  %v3739_v7 = vadd.f32 %v3738_v30, %v3737_v19  ;;  %v3740_v13 = vpop.f32.mrb[190].mxu0 }
 0x3ce   :  { %v3741_v26 = vpop.f32.mrb[191].mxu0  ;;  %v1536_v29 = vmul.f32 %v5634_v36, %v5475_v18 }
 0x3cf   :  { %v4151_v2 = vpop.eup %4150  ;;  %3347 = vst [vmem:[%s6226_s8 + $0xc8] sm:$0xff] %v3315_v39  ;;  %4156 = vlog2.f32 %v3151_v50  ;;  %v3084_v9 = vadd.f32 %v3739_v7, %v5717_v55  ;;  %v3742_v60 = vadd.f32 %v3741_v26, %v3740_v13 }
 0x3d0   :  { %v3207_v40 = vmul.f32 0.6931472, %v4151_v2  ;;  %v1723_v17 = vadd.f32 %v5736_v12, %v1536_v29 }
 0x3d1   :  { %v4153_v45 = vpop.eup %4152  ;;  %v3120_v3 = vmul.f32 %v3084_v9, %v3084_v9  ;;  %v3087_v54 = vadd.f32 %v3742_v60, %v5717_v55  ;;  %v3256_v15 = vsel %vm5744_vm4, %v3084_v9, 0.0 }
 0x3d2   :  { %v3284_v61 = vsel %vm5748_vm5, %v3207_v40, %v3252_v24  ;;  %v3209_v57 = vmul.f32 0.6931472, %v4153_v45 }
 0x3d3   :  { %v3316_v44 = vadd.f32 %v3284_v61, %v1698_v25  ;;  %v3152_v49 = vadd.f32 1e-08, %v3120_v3  ;;  %v3121_v28 = vmul.f32 %v3087_v54, %v3087_v54  ;;  %v3257_v18 = vsel %vm5744_vm4, %v3087_v54, 0.0 }
 0x3d4   :  { %v3285_v10 = vsel %vm5748_vm5, %v3209_v57, %v3253_v31 }
 0x3d5   :  { %3348 = vst [vmem:[%s6226_s8 + $0xd0] sm:$0xff] %v3316_v44  ;;  %v3317_v55 = vadd.f32 %v3285_v10, %v1703_v33  ;;  %4158 = vlog2.f32 %v3152_v49  ;;  %v3153_v47 = vadd.f32 1e-08, %v3121_v28 }
 0x3d7   :  { %v4155_v62 = vpop.eup %4154  ;;  %3349 = vst [vmem:[%s6226_s8 + $0xd8] sm:$0xff] %v3317_v55  ;;  %4160 = vlog2.f32 %v3153_v47 }
 0x3d8   :  { %v3211_v11 = vmul.f32 0.6931472, %v4155_v62 }
 0x3d9   :  { %v4157_v4 = vpop.eup %4156 }
 0x3da   :  { %v3286_v16 = vsel %vm5748_vm5, %v3211_v11, %v3254_v27  ;;  %v3213_v34 = vmul.f32 0.6931472, %v4157_v4 }
 0x3db   :  { %v3318_v23 = vadd.f32 %v3286_v16, %v1708_v8 }
 0x3dc   :  { %v3287_v41 = vsel %vm5748_vm5, %v3213_v34, %v3255_v21 }
 0x3dd   :  { %3350 = vst [vmem:[%s6226_s8 + $0xe0] sm:$0xff] %v3318_v23  ;;  %v3319_v5 = vadd.f32 %v3287_v41, %v1713_v46 }
 0x3df   :  { %v4159_v38 = vpop.eup %4158  ;;  %3351 = vst [vmem:[%s6226_s8 + $0xe8] sm:$0xff] %v3319_v5 }
 0x3e0   :  { %v3215_v48 = vmul.f32 0.6931472, %v4159_v38 }
 0x3e1   :  { %v4161_v52 = vpop.eup %4160 }
 0x3e2   :  { %v3288_v20 = vsel %vm5748_vm5, %v3215_v48, %v3256_v15  ;;  %v3217_v56 = vmul.f32 0.6931472, %v4161_v52 }
 0x3e3   :  { %v3320_v6 = vadd.f32 %v3288_v20, %v1718_v14 }
 0x3e4   :  { %v3289_v36 = vsel %vm5748_vm5, %v3217_v56, %v3257_v18 }
 0x3e5   :  { %3352 = vst [vmem:[%s6226_s8 + $0xf0] sm:$0xff] %v3320_v6  ;;  %v3321_v43 = vadd.f32 %v3289_v36, %v1723_v17 }
 0x3e7   :  { %3353 = vst [vmem:[%s6226_s8 + $0xf8] sm:$0xff] %v3321_v43 }

</bundles_post_ra>
